<compile_context>
chip_gen: v7x
topology: tpu7x:2x2x1
jax: 0.10.0
libtpu: 0.0.40
codegen_flags: <defaults>
</compile_context>

<pallas_src>
import functools

import jax
import jax.numpy as jnp
from jax.experimental import pallas as pl
from jax.experimental.pallas import tpu as pltpu

# ----------------------------- model hyper-params -----------------------------
INPUT_DIM = 16
HIDDEN_DIM = 32
NUM_LAYERS = 2
BATCH = 2
SEQ = 8

_VMEM = pl.BlockSpec(memory_space=pltpu.MemorySpace.VMEM)


# =============================== fused Pallas kernel ===============================
def _fused_bilstm_attn_kernel(
    x2_ref,                                # (T*B, Din)  time-major flat
    wih0_ref, whh0_ref, b0_ref,            # (Din, 8H), (2H, 8H), (1, 8H)
    wih1_ref, whh1_ref, b1_ref,            # (2H, 8H),  (2H, 8H), (1, 8H)
    wa1_ref, ba1_ref, wa2_ref, ba2_ref,    # (2H, H), (1, H), (1, H), (1, 1)
    wf1_ref, bf1_ref, wf2_ref, bf2_ref,    # (2H, H), (1, H), (1, H), (1, 1)
    out_ref,                               # (B, 1)
    attn_ref,                              # (B, T)   lane-dense attention weights
    h0_ref,                                # VMEM scratch (T*B, 2H): layer-0 outputs
    h1_ref,                                # VMEM scratch (T*B, 2H): layer-1 outputs
):
    B, T = attn_ref.shape
    H2 = h0_ref.shape[1]          # 2H  (merged [fwd | bwd] state width)
    H = H2 // 2
    G = 4 * H2                    # 8H  merged gate width [i_f i_b | f_f f_b | g_f g_b | o_f o_b]

    # Lane mask selecting the forward-direction sub-block of every gate group.
    lane = jax.lax.broadcasted_iota(jnp.int32, (B, G), 1)
    fwd_mask = (lane % H2) < H

    def run_layer(xc_all, whh, h_out_ref):
        """Merged fwd/bwd recurrence, fully unrolled over T (static, small)."""
        h = jnp.zeros((B, H2), jnp.float32)
        c = jnp.zeros((B, H2), jnp.float32)
        for t in range(T):
            tb = T - 1 - t
            # forward lanes take the time-t input contribution, backward lanes time T-1-t
            pre = jnp.where(fwd_mask,
                            xc_all[t * B:(t + 1) * B],
                            xc_all[tb * B:(tb + 1) * B])
            gates = pre + jnp.dot(h, whh, preferred_element_type=jnp.float32)
            sig = jax.nn.sigmoid(gates)              # single EUP pass over all 8H gate lanes
            i_g = sig[:, 0 * H2:1 * H2]
            f_g = sig[:, 1 * H2:2 * H2]
            g_g = 2.0 * sig[:, 2 * H2:3 * H2] - 1.0  # tanh(x) = 2*sigmoid(2x)-1 (2x folded into weights)
            o_g = sig[:, 3 * H2:4 * H2]
            c = f_g * c + i_g * g_g
            h = o_g * jnp.tanh(c)
            # Store at ORIGINAL time positions with PyTorch [fwd | bwd] feature layout.
            h_out_ref[t * B:(t + 1) * B, 0:H] = h[:, 0:H]
            h_out_ref[tb * B:(tb + 1) * B, H:H2] = h[:, H:H2]

    # ----------------------------- layer 0 -----------------------------
    xc0 = (jnp.dot(x2_ref[...], wih0_ref[...], preferred_element_type=jnp.float32)
           + b0_ref[...])                                                   # (T*B, 8H)
    run_layer(xc0, whh0_ref[...], h0_ref)

    # ----------------------------- layer 1 -----------------------------
    xc1 = (jnp.dot(h0_ref[...], wih1_ref[...], preferred_element_type=jnp.float32)
           + b1_ref[...])                                                   # (T*B, 8H)
    run_layer(xc1, whh1_ref[...], h1_ref)

    # ------------------------ attention + MLP head ------------------------
    h1_all = h1_ref[...]                                                    # (T*B, 2H)
    hdn = jnp.tanh(
        jnp.dot(h1_all, wa1_ref[...], preferred_element_type=jnp.float32)
        + ba1_ref[...])                                                     # (T*B, H)
    # width-1 matmul replaced by broadcast-multiply + lane reduce
    r = jnp.sum(hdn * wa2_ref[...], axis=-1, keepdims=True) + ba2_ref[...]  # (T*B, 1)
    # time-major (T*B, 1) -> lane-dense (B, T)
    scores = jnp.concatenate([r[t * B:(t + 1) * B, :] for t in range(T)], axis=1)

    # TODO(synk): masked_fill(-inf) attention-mask branch not implemented (mask=None only).
    m = jnp.max(scores, axis=1, keepdims=True)
    e = jnp.exp(scores - m)
    w = e / jnp.sum(e, axis=1, keepdims=True)                               # (B, T)

    # context = sum_t w[b, t] * lstm_out[b, t, :]   (merged (B, 2H) slabs)
    ctx = w[:, 0:1] * h1_all[0:B, :]
    for t in range(1, T):
        ctx = ctx + w[:, t:t + 1] * h1_all[t * B:(t + 1) * B, :]            # (B, 2H)

    hf = jnp.maximum(
        jnp.dot(ctx, wf1_ref[...], preferred_element_type=jnp.float32)
        + bf1_ref[...], 0.0)                                                # (B, H)
    # dropout -> identity (eval mode)
    out = jnp.sum(hf * wf2_ref[...], axis=-1, keepdims=True) + bf2_ref[...]  # (B, 1)

    out_ref[...] = out.astype(out_ref.dtype)
    attn_ref[...] = w.astype(attn_ref.dtype)


# =============================== wrapper ===============================
def attention_bilstm_forward(x, packed):
    """x: (B, T, input_dim) -> (out (B, 1), attention_weights (B, T, 1))."""
    B, T, Din = x.shape
    H = packed["wa1"].shape[1]
    # Single tiny layout op outside the kernel: batch-first -> time-major flat.
    x2 = jnp.transpose(x, (1, 0, 2)).reshape(T * B, Din)

    out, attn = pl.pallas_call(
        _fused_bilstm_attn_kernel,
        out_shape=(
            jax.ShapeDtypeStruct((B, 1), jnp.float32),
            jax.ShapeDtypeStruct((B, T), jnp.float32),
        ),
        in_specs=[_VMEM] * 15,
        out_specs=(_VMEM, _VMEM),
        scratch_shapes=[
            pltpu.VMEM((T * B, 2 * H), jnp.float32),
            pltpu.VMEM((T * B, 2 * H), jnp.float32),
        ],
    )(x2,
      packed["wih0"], packed["whh0"], packed["b0"],
      packed["wih1"], packed["whh1"], packed["b1"],
      packed["wa1"], packed["ba1"], packed["wa2"], packed["ba2"],
      packed["wf1"], packed["bf1"], packed["wf2"], packed["bf2"])
    return out, attn[:, :, None]


# =============================== parameter setup ===============================
def init_params(key, input_dim=INPUT_DIM, hidden_dim=HIDDEN_DIM, num_layers=NUM_LAYERS):
    """Raw PyTorch-layout parameters (used by the reference)."""
    H = hidden_dim
    k = 1.0 / jnp.sqrt(jnp.float32(H))

    def unif(key, shape):
        return jax.random.uniform(key, shape, jnp.float32, minval=-k, maxval=k)

    lstm = []
    for layer in range(num_layers):
        in_size = input_dim if layer == 0 else 2 * H
        dirs = []
        for _d in range(2):
            key, k1, k2, k3, k4 = jax.random.split(key, 5)
            dirs.append({
                "wih": unif(k1, (4 * H, in_size)),   # gate order [i, f, g, o]
                "whh": unif(k2, (4 * H, H)),
                "bih": unif(k3, (4 * H,)),
                "bhh": unif(k4, (4 * H,)),
            })
        lstm.append(dirs)

    params = {"lstm": lstm}
    key, k1, k2, k3, k4, k5, k6, k7, k8 = jax.random.split(key, 9)
    params["wa1"] = unif(k1, (H, 2 * H))     # attention Linear(2H -> H)
    params["ba1"] = unif(k2, (H,))
    params["wa2"] = unif(k3, (1, H))         # attention Linear(H -> 1)
    params["ba2"] = unif(k4, (1,))
    params["wf1"] = unif(k5, (H, 2 * H))     # fc1
    params["bf1"] = unif(k6, (H,))
    params["wf2"] = unif(k7, (1, H))         # fc2
    params["bf2"] = unif(k8, (1,))
    return params


def _merge_dir(wih_f, whh_f, bf, wih_b, whh_b, bb, H):
    """Pack one bidirectional LSTM layer into merged-direction kernel weights.

    Inputs are PyTorch layout: wih (4H, in), whh (4H, H), b (4H,), gate order [i,f,g,o].
    Output column layout: [i_f i_b | f_f f_b | g_f g_b | o_f o_b], g columns scaled by 2
    (so the kernel can use tanh(x) = 2*sigmoid(2x) - 1).
    Returns wih_m (in, 8H), whh_m (2H, 8H) block-diagonal, b_m (1, 8H).
    """
    gate_scale = (1.0, 1.0, 2.0, 1.0)

    def blocks(w_t):  # (rows, 4H) -> list of 4 (rows, H), scaled
        return [w_t[:, g * H:(g + 1) * H] * gate_scale[g] for g in range(4)]

    gf, gb = blocks(wih_f.T), blocks(wih_b.T)
    wih_m = jnp.concatenate([blk for g in range(4) for blk in (gf[g], gb[g])], axis=1)

    hf, hb = blocks(whh_f.T), blocks(whh_b.T)
    z = jnp.zeros((H, H), jnp.float32)
    top = jnp.concatenate([blk for g in range(4) for blk in (hf[g], z)], axis=1)
    bot = jnp.concatenate([blk for g in range(4) for blk in (z, hb[g])], axis=1)
    whh_m = jnp.concatenate([top, bot], axis=0)                      # (2H, 8H) block-diag

    b_m = jnp.concatenate(
        [jnp.concatenate([bf[g * H:(g + 1) * H] * gate_scale[g],
                          bb[g * H:(g + 1) * H] * gate_scale[g]]) for g in range(4)])[None, :]
    return wih_m, whh_m, b_m


def pack_params(params, hidden_dim=HIDDEN_DIM):
    """One-time packing of raw params into the fused-kernel operand layout."""
    H = hidden_dim
    packed = {}
    for li, dirs in enumerate(params["lstm"]):
        f, b = dirs[0], dirs[1]
        wih_m, whh_m, b_m = _merge_dir(f["wih"], f["whh"], f["bih"] + f["bhh"],
                                       b["wih"], b["whh"], b["bih"] + b["bhh"], H)
        packed[f"wih{li}"] = wih_m
        packed[f"whh{li}"] = whh_m
        packed[f"b{li}"] = b_m
    packed["wa1"] = params["wa1"].T           # (2H, H)
    packed["ba1"] = params["ba1"][None, :]    # (1, H)
    packed["wa2"] = params["wa2"]             # (1, H) row (broadcast-mul + lane reduce)
    packed["ba2"] = params["ba2"][None, :]    # (1, 1)
    packed["wf1"] = params["wf1"].T           # (2H, H)
    packed["bf1"] = params["bf1"][None, :]    # (1, H)
    packed["wf2"] = params["wf2"]             # (1, H) row
    packed["bf2"] = params["bf2"][None, :]    # (1, 1)
    return packed


# =============================== pure-JAX reference ===============================
def _ref_lstm_dir(x_tm, wih, whh, b, H):
    B = x_tm.shape[1]

    def step(carry, x_t):
        h, c = carry
        gates = x_t @ wih.T + h @ whh.T + b
        i_g = jax.nn.sigmoid(gates[:, :H])
        f_g = jax.nn.sigmoid(gates[:, H:2 * H])
        g_g = jnp.tanh(gates[:, 2 * H:3 * H])
        o_g = jax.nn.sigmoid(gates[:, 3 * H:])
        c = f_g * c + i_g * g_g
        h = o_g * jnp.tanh(c)
        return (h, c), h

    init = (jnp.zeros((B, H), jnp.float32), jnp.zeros((B, H), jnp.float32))
    _, hs = jax.lax.scan(step, init, x_tm)
    return hs  # (T, B, H)


def reference_forward(x, params, H=HIDDEN_DIM):
    layer_in = x
    for dirs in params["lstm"]:
        outs = []
        for d, p in enumerate(dirs):
            xin = layer_in if d == 0 else jnp.flip(layer_in, axis=1)
            h_tm = _ref_lstm_dir(jnp.transpose(xin, (1, 0, 2)),
                                 p["wih"], p["whh"], p["bih"] + p["bhh"], H)
            h = jnp.transpose(h_tm, (1, 0, 2))
            if d == 1:
                h = jnp.flip(h, axis=1)
            outs.append(h)
        layer_in = jnp.concatenate(outs, axis=-1)

    lo = layer_in
    B, T, H2 = lo.shape
    hdn = jnp.tanh(lo.reshape(B * T, H2) @ params["wa1"].T + params["ba1"])
    scores = (hdn @ params["wa2"].T + params["ba2"]).reshape(B, T)
    w = jax.nn.softmax(scores, axis=1)
    context = jnp.sum(w[:, :, None] * lo, axis=1)
    h1 = jnp.maximum(context @ params["wf1"].T + params["bf1"], 0.0)
    out = h1 @ params["wf2"].T + params["bf2"]
    return out, w[:, :, None]


# =============================== main ===============================
if __name__ == "__main__":
    key = jax.random.PRNGKey(0)
    key, pkey, xkey = jax.random.split(key, 3)

    params = init_params(pkey)
    packed = pack_params(params)
    x = jax.random.normal(xkey, (BATCH, SEQ, INPUT_DIM), jnp.float32)

    fwd = jax.jit(functools.partial(attention_bilstm_forward, packed=packed))
    out, attn = fwd(x)
    out = jax.block_until_ready(out)
    attn = jax.block_until_ready(attn)

    ref_out, ref_attn = reference_forward(x, params)

    assert out.shape == (BATCH, 1)
    assert attn.shape == (BATCH, SEQ, 1)
    assert jnp.allclose(out, ref_out, atol=2e-4, rtol=2e-4)
    assert jnp.allclose(attn, ref_attn, atol=2e-4, rtol=2e-4)

    print("KERNEL_OK")
</pallas_src>

<mosaic_0001>
module attributes {stable_mosaic.version = 11 : i64} {
  func.func @_fused_bilstm_attn_kernel(%arg0: memref<16x16xf32, #tpu.memory_space<vmem>>, %arg1: memref<16x256xf32, #tpu.memory_space<vmem>>, %arg2: memref<64x256xf32, #tpu.memory_space<vmem>>, %arg3: memref<1x256xf32, #tpu.memory_space<vmem>>, %arg4: memref<64x256xf32, #tpu.memory_space<vmem>>, %arg5: memref<64x256xf32, #tpu.memory_space<vmem>>, %arg6: memref<1x256xf32, #tpu.memory_space<vmem>>, %arg7: memref<64x32xf32, #tpu.memory_space<vmem>>, %arg8: memref<1x32xf32, #tpu.memory_space<vmem>>, %arg9: memref<1x32xf32, #tpu.memory_space<vmem>>, %arg10: memref<1x1xf32, #tpu.memory_space<vmem>>, %arg11: memref<64x32xf32, #tpu.memory_space<vmem>>, %arg12: memref<1x32xf32, #tpu.memory_space<vmem>>, %arg13: memref<1x32xf32, #tpu.memory_space<vmem>>, %arg14: memref<1x1xf32, #tpu.memory_space<vmem>>, %arg15: memref<2x1xf32, #tpu.memory_space<vmem>>, %arg16: memref<2x8xf32, #tpu.memory_space<vmem>>, %arg17: memref<16x64xf32, #tpu.memory_space<vmem>>, %arg18: memref<16x64xf32, #tpu.memory_space<vmem>>) attributes {dimension_semantics = [], scalar_prefetch = 0 : i64, scratch_operands = 2 : i64, tpu.core_type = #tpu.core_type<tc>} {
    %0 = tpu.iota {dimensions = array<i32: 1>} : vector<2x256xi32>
    %c64_i32 = arith.constant 64 : i32
    %c0_i32 = arith.constant 0 : i32
    %1 = arith.cmpi eq, %c64_i32, %c0_i32 : i32
    %c1_i32 = arith.constant 1 : i32
    %2 = arith.select %1, %c1_i32, %c64_i32 : i32
    %3 = vector.broadcast %2 : i32 to vector<2x256xi32>
    %4 = arith.remsi %0, %3 : vector<2x256xi32>
    %c0_i32_0 = arith.constant 0 : i32
    %5 = vector.broadcast %c0_i32_0 : i32 to vector<2x256xi32>
    %6 = arith.cmpi ne, %4, %5 : vector<2x256xi32>
    %c0_i32_1 = arith.constant 0 : i32
    %7 = vector.broadcast %c0_i32_1 : i32 to vector<2x256xi32>
    %8 = arith.cmpi slt, %4, %7 : vector<2x256xi32>
    %c0_i32_2 = arith.constant 0 : i32
    %9 = arith.cmpi slt, %2, %c0_i32_2 : i32
    %10 = vector.broadcast %9 : i1 to vector<2x256xi1>
    %11 = vector.broadcast %10 : vector<2x256xi1> to vector<2x256xi1>
    %12 = arith.xori %8, %11 : vector<2x256xi1>
    %13 = arith.andi %12, %6 : vector<2x256xi1>
    %14 = vector.broadcast %2 : i32 to vector<2x256xi32>
    %15 = arith.addi %4, %14 : vector<2x256xi32>
    %16 = arith.select %13, %15, %4 : vector<2x256xi1>, vector<2x256xi32>
    %c32_i32 = arith.constant 32 : i32
    %17 = vector.broadcast %c32_i32 : i32 to vector<2x256xi32>
    %18 = arith.cmpi slt, %16, %17 : vector<2x256xi32>
    %c0 = arith.constant 0 : index
    %c0_3 = arith.constant 0 : index
    %19 = vector.load %arg0[%c0, %c0_3] : memref<16x16xf32, #tpu.memory_space<vmem>>, vector<16x16xf32>
    %c0_4 = arith.constant 0 : index
    %c0_5 = arith.constant 0 : index
    %20 = vector.load %arg1[%c0_4, %c0_5] : memref<16x256xf32, #tpu.memory_space<vmem>>, vector<16x256xf32>
    %cst = arith.constant dense<0.000000e+00> : vector<16x256xf32>
    %21 = tpu.matmul %19, %20, %cst {dimension_numbers = #tpu.dot_dimension_numbers<[1], [0], [0], [1], [0, 0, 1, 1], [], []>} : vector<16x16xf32>, vector<16x256xf32>, vector<16x256xf32> -> vector<16x256xf32>
    %c0_6 = arith.constant 0 : index
    %c0_7 = arith.constant 0 : index
    %22 = vector.load %arg3[%c0_6, %c0_7] : memref<1x256xf32, #tpu.memory_space<vmem>>, vector<1x256xf32>
    %23 = vector.broadcast %22 : vector<1x256xf32> to vector<16x256xf32>
    %24 = arith.addf %21, %23 : vector<16x256xf32>
    %c0_8 = arith.constant 0 : index
    %c0_9 = arith.constant 0 : index
    %25 = vector.load %arg2[%c0_8, %c0_9] : memref<64x256xf32, #tpu.memory_space<vmem>>, vector<64x256xf32>
    %cst_10 = arith.constant 0.000000e+00 : f32
    %26 = vector.broadcast %cst_10 : f32 to vector<2x64xf32>
    %cst_11 = arith.constant 0.000000e+00 : f32
    %27 = vector.broadcast %cst_11 : f32 to vector<2x64xf32>
    %28 = vector.extract_strided_slice %24 {offsets = [0, 0], sizes = [2, 256], strides = [1, 1]} : vector<16x256xf32> to vector<2x256xf32>
    %29 = vector.extract_strided_slice %24 {offsets = [14, 0], sizes = [2, 256], strides = [1, 1]} : vector<16x256xf32> to vector<2x256xf32>
    %30 = arith.select %18, %28, %29 : vector<2x256xi1>, vector<2x256xf32>
    %cst_12 = arith.constant dense<0.000000e+00> : vector<2x256xf32>
    %31 = tpu.matmul %26, %25, %cst_12 {dimension_numbers = #tpu.dot_dimension_numbers<[1], [0], [0], [1], [0, 0, 1, 1], [], []>} : vector<2x64xf32>, vector<64x256xf32>, vector<2x256xf32> -> vector<2x256xf32>
    %32 = arith.addf %30, %31 : vector<2x256xf32>
    %33 = arith.negf %32 : vector<2x256xf32>
    %34 = math.exp %33 : vector<2x256xf32>
    %cst_13 = arith.constant 1.000000e+00 : f32
    %35 = vector.broadcast %cst_13 : f32 to vector<2x256xf32>
    %36 = arith.addf %35, %34 : vector<2x256xf32>
    %37 = arith.divf %35, %36 : vector<2x256xf32>
    %38 = vector.extract_strided_slice %37 {offsets = [0, 0], sizes = [2, 64], strides = [1, 1]} : vector<2x256xf32> to vector<2x64xf32>
    %39 = vector.extract_strided_slice %37 {offsets = [0, 64], sizes = [2, 64], strides = [1, 1]} : vector<2x256xf32> to vector<2x64xf32>
    %40 = vector.extract_strided_slice %37 {offsets = [0, 128], sizes = [2, 64], strides = [1, 1]} : vector<2x256xf32> to vector<2x64xf32>
    %cst_14 = arith.constant 2.000000e+00 : f32
    %41 = vector.broadcast %cst_14 : f32 to vector<2x64xf32>
    %42 = arith.mulf %41, %40 : vector<2x64xf32>
    %cst_15 = arith.constant 1.000000e+00 : f32
    %43 = vector.broadcast %cst_15 : f32 to vector<2x64xf32>
    %44 = arith.subf %42, %43 : vector<2x64xf32>
    %45 = vector.extract_strided_slice %37 {offsets = [0, 192], sizes = [2, 64], strides = [1, 1]} : vector<2x256xf32> to vector<2x64xf32>
    %46 = arith.mulf %39, %27 : vector<2x64xf32>
    %47 = arith.mulf %38, %44 : vector<2x64xf32>
    %48 = arith.addf %46, %47 : vector<2x64xf32>
    %49 = math.tanh %48 : vector<2x64xf32>
    %50 = arith.mulf %45, %49 : vector<2x64xf32>
    %51 = vector.extract_strided_slice %50 {offsets = [0, 0], sizes = [2, 32], strides = [1, 1]} : vector<2x64xf32> to vector<2x32xf32>
    %c0_16 = arith.constant 0 : index
    %c0_17 = arith.constant 0 : index
    %52 = vector.load %arg17[%c0_16, %c0_17] : memref<16x64xf32, #tpu.memory_space<vmem>>, vector<2x32xf32>
    tpu.vector_store %arg17[%c0_16, %c0_17], %51 {strides = array<i32>} : memref<16x64xf32, #tpu.memory_space<vmem>>, vector<2x32xf32>,
    %53 = vector.extract_strided_slice %50 {offsets = [0, 32], sizes = [2, 32], strides = [1, 1]} : vector<2x64xf32> to vector<2x32xf32>
    %c14 = arith.constant 14 : index
    %c32 = arith.constant 32 : index
    %54 = vector.load %arg17[%c14, %c32] : memref<16x64xf32, #tpu.memory_space<vmem>>, vector<2x32xf32>
    tpu.vector_store %arg17[%c14, %c32], %53 {strides = array<i32>} : memref<16x64xf32, #tpu.memory_space<vmem>>, vector<2x32xf32>,
    %55 = vector.extract_strided_slice %24 {offsets = [2, 0], sizes = [2, 256], strides = [1, 1]} : vector<16x256xf32> to vector<2x256xf32>
    %56 = vector.extract_strided_slice %24 {offsets = [12, 0], sizes = [2, 256], strides = [1, 1]} : vector<16x256xf32> to vector<2x256xf32>
    %57 = arith.select %18, %55, %56 : vector<2x256xi1>, vector<2x256xf32>
    %cst_18 = arith.constant dense<0.000000e+00> : vector<2x256xf32>
    %58 = tpu.matmul %50, %25, %cst_18 {dimension_numbers = #tpu.dot_dimension_numbers<[1], [0], [0], [1], [0, 0, 1, 1], [], []>} : vector<2x64xf32>, vector<64x256xf32>, vector<2x256xf32> -> vector<2x256xf32>
    %59 = arith.addf %57, %58 : vector<2x256xf32>
    %60 = arith.negf %59 : vector<2x256xf32>
    %61 = math.exp %60 : vector<2x256xf32>
    %cst_19 = arith.constant 1.000000e+00 : f32
    %62 = vector.broadcast %cst_19 : f32 to vector<2x256xf32>
    %63 = arith.addf %62, %61 : vector<2x256xf32>
    %64 = arith.divf %62, %63 : vector<2x256xf32>
    %65 = vector.extract_strided_slice %64 {offsets = [0, 0], sizes = [2, 64], strides = [1, 1]} : vector<2x256xf32> to vector<2x64xf32>
    %66 = vector.extract_strided_slice %64 {offsets = [0, 64], sizes = [2, 64], strides = [1, 1]} : vector<2x256xf32> to vector<2x64xf32>
    %67 = vector.extract_strided_slice %64 {offsets = [0, 128], sizes = [2, 64], strides = [1, 1]} : vector<2x256xf32> to vector<2x64xf32>
    %cst_20 = arith.constant 2.000000e+00 : f32
    %68 = vector.broadcast %cst_20 : f32 to vector<2x64xf32>
    %69 = arith.mulf %68, %67 : vector<2x64xf32>
    %cst_21 = arith.constant 1.000000e+00 : f32
    %70 = vector.broadcast %cst_21 : f32 to vector<2x64xf32>
    %71 = arith.subf %69, %70 : vector<2x64xf32>
    %72 = vector.extract_strided_slice %64 {offsets = [0, 192], sizes = [2, 64], strides = [1, 1]} : vector<2x256xf32> to vector<2x64xf32>
    %73 = arith.mulf %66, %48 : vector<2x64xf32>
    %74 = arith.mulf %65, %71 : vector<2x64xf32>
    %75 = arith.addf %73, %74 : vector<2x64xf32>
    %76 = math.tanh %75 : vector<2x64xf32>
    %77 = arith.mulf %72, %76 : vector<2x64xf32>
    %78 = vector.extract_strided_slice %77 {offsets = [0, 0], sizes = [2, 32], strides = [1, 1]} : vector<2x64xf32> to vector<2x32xf32>
    %c2 = arith.constant 2 : index
    %c0_22 = arith.constant 0 : index
    %79 = vector.load %arg17[%c2, %c0_22] : memref<16x64xf32, #tpu.memory_space<vmem>>, vector<2x32xf32>
    tpu.vector_store %arg17[%c2, %c0_22], %78 {strides = array<i32>} : memref<16x64xf32, #tpu.memory_space<vmem>>, vector<2x32xf32>,
    %80 = vector.extract_strided_slice %77 {offsets = [0, 32], sizes = [2, 32], strides = [1, 1]} : vector<2x64xf32> to vector<2x32xf32>
    %c12 = arith.constant 12 : index
    %c32_23 = arith.constant 32 : index
    %81 = vector.load %arg17[%c12, %c32_23] : memref<16x64xf32, #tpu.memory_space<vmem>>, vector<2x32xf32>
    tpu.vector_store %arg17[%c12, %c32_23], %80 {strides = array<i32>} : memref<16x64xf32, #tpu.memory_space<vmem>>, vector<2x32xf32>,
    %82 = vector.extract_strided_slice %24 {offsets = [4, 0], sizes = [2, 256], strides = [1, 1]} : vector<16x256xf32> to vector<2x256xf32>
    %83 = vector.extract_strided_slice %24 {offsets = [10, 0], sizes = [2, 256], strides = [1, 1]} : vector<16x256xf32> to vector<2x256xf32>
    %84 = arith.select %18, %82, %83 : vector<2x256xi1>, vector<2x256xf32>
    %cst_24 = arith.constant dense<0.000000e+00> : vector<2x256xf32>
    %85 = tpu.matmul %77, %25, %cst_24 {dimension_numbers = #tpu.dot_dimension_numbers<[1], [0], [0], [1], [0, 0, 1, 1], [], []>} : vector<2x64xf32>, vector<64x256xf32>, vector<2x256xf32> -> vector<2x256xf32>
    %86 = arith.addf %84, %85 : vector<2x256xf32>
    %87 = arith.negf %86 : vector<2x256xf32>
    %88 = math.exp %87 : vector<2x256xf32>
    %cst_25 = arith.constant 1.000000e+00 : f32
    %89 = vector.broadcast %cst_25 : f32 to vector<2x256xf32>
    %90 = arith.addf %89, %88 : vector<2x256xf32>
    %91 = arith.divf %89, %90 : vector<2x256xf32>
    %92 = vector.extract_strided_slice %91 {offsets = [0, 0], sizes = [2, 64], strides = [1, 1]} : vector<2x256xf32> to vector<2x64xf32>
    %93 = vector.extract_strided_slice %91 {offsets = [0, 64], sizes = [2, 64], strides = [1, 1]} : vector<2x256xf32> to vector<2x64xf32>
    %94 = vector.extract_strided_slice %91 {offsets = [0, 128], sizes = [2, 64], strides = [1, 1]} : vector<2x256xf32> to vector<2x64xf32>
    %cst_26 = arith.constant 2.000000e+00 : f32
    %95 = vector.broadcast %cst_26 : f32 to vector<2x64xf32>
    %96 = arith.mulf %95, %94 : vector<2x64xf32>
    %cst_27 = arith.constant 1.000000e+00 : f32
    %97 = vector.broadcast %cst_27 : f32 to vector<2x64xf32>
    %98 = arith.subf %96, %97 : vector<2x64xf32>
    %99 = vector.extract_strided_slice %91 {offsets = [0, 192], sizes = [2, 64], strides = [1, 1]} : vector<2x256xf32> to vector<2x64xf32>
    %100 = arith.mulf %93, %75 : vector<2x64xf32>
    %101 = arith.mulf %92, %98 : vector<2x64xf32>
    %102 = arith.addf %100, %101 : vector<2x64xf32>
    %103 = math.tanh %102 : vector<2x64xf32>
    %104 = arith.mulf %99, %103 : vector<2x64xf32>
    %105 = vector.extract_strided_slice %104 {offsets = [0, 0], sizes = [2, 32], strides = [1, 1]} : vector<2x64xf32> to vector<2x32xf32>
    %c4 = arith.constant 4 : index
    %c0_28 = arith.constant 0 : index
    %106 = vector.load %arg17[%c4, %c0_28] : memref<16x64xf32, #tpu.memory_space<vmem>>, vector<2x32xf32>
    tpu.vector_store %arg17[%c4, %c0_28], %105 {strides = array<i32>} : memref<16x64xf32, #tpu.memory_space<vmem>>, vector<2x32xf32>,
    %107 = vector.extract_strided_slice %104 {offsets = [0, 32], sizes = [2, 32], strides = [1, 1]} : vector<2x64xf32> to vector<2x32xf32>
    %c10 = arith.constant 10 : index
    %c32_29 = arith.constant 32 : index
    %108 = vector.load %arg17[%c10, %c32_29] : memref<16x64xf32, #tpu.memory_space<vmem>>, vector<2x32xf32>
    tpu.vector_store %arg17[%c10, %c32_29], %107 {strides = array<i32>} : memref<16x64xf32, #tpu.memory_space<vmem>>, vector<2x32xf32>,
    %109 = vector.extract_strided_slice %24 {offsets = [6, 0], sizes = [2, 256], strides = [1, 1]} : vector<16x256xf32> to vector<2x256xf32>
    %110 = vector.extract_strided_slice %24 {offsets = [8, 0], sizes = [2, 256], strides = [1, 1]} : vector<16x256xf32> to vector<2x256xf32>
    %111 = arith.select %18, %109, %110 : vector<2x256xi1>, vector<2x256xf32>
    %cst_30 = arith.constant dense<0.000000e+00> : vector<2x256xf32>
    %112 = tpu.matmul %104, %25, %cst_30 {dimension_numbers = #tpu.dot_dimension_numbers<[1], [0], [0], [1], [0, 0, 1, 1], [], []>} : vector<2x64xf32>, vector<64x256xf32>, vector<2x256xf32> -> vector<2x256xf32>
    %113 = arith.addf %111, %112 : vector<2x256xf32>
    %114 = arith.negf %113 : vector<2x256xf32>
    %115 = math.exp %114 : vector<2x256xf32>
    %cst_31 = arith.constant 1.000000e+00 : f32
    %116 = vector.broadcast %cst_31 : f32 to vector<2x256xf32>
    %117 = arith.addf %116, %115 : vector<2x256xf32>
    %118 = arith.divf %116, %117 : vector<2x256xf32>
    %119 = vector.extract_strided_slice %118 {offsets = [0, 0], sizes = [2, 64], strides = [1, 1]} : vector<2x256xf32> to vector<2x64xf32>
    %120 = vector.extract_strided_slice %118 {offsets = [0, 64], sizes = [2, 64], strides = [1, 1]} : vector<2x256xf32> to vector<2x64xf32>
    %121 = vector.extract_strided_slice %118 {offsets = [0, 128], sizes = [2, 64], strides = [1, 1]} : vector<2x256xf32> to vector<2x64xf32>
    %cst_32 = arith.constant 2.000000e+00 : f32
    %122 = vector.broadcast %cst_32 : f32 to vector<2x64xf32>
    %123 = arith.mulf %122, %121 : vector<2x64xf32>
    %cst_33 = arith.constant 1.000000e+00 : f32
    %124 = vector.broadcast %cst_33 : f32 to vector<2x64xf32>
    %125 = arith.subf %123, %124 : vector<2x64xf32>
    %126 = vector.extract_strided_slice %118 {offsets = [0, 192], sizes = [2, 64], strides = [1, 1]} : vector<2x256xf32> to vector<2x64xf32>
    %127 = arith.mulf %120, %102 : vector<2x64xf32>
    %128 = arith.mulf %119, %125 : vector<2x64xf32>
    %129 = arith.addf %127, %128 : vector<2x64xf32>
    %130 = math.tanh %129 : vector<2x64xf32>
    %131 = arith.mulf %126, %130 : vector<2x64xf32>
    %132 = vector.extract_strided_slice %131 {offsets = [0, 0], sizes = [2, 32], strides = [1, 1]} : vector<2x64xf32> to vector<2x32xf32>
    %c6 = arith.constant 6 : index
    %c0_34 = arith.constant 0 : index
    %133 = vector.load %arg17[%c6, %c0_34] : memref<16x64xf32, #tpu.memory_space<vmem>>, vector<2x32xf32>
    tpu.vector_store %arg17[%c6, %c0_34], %132 {strides = array<i32>} : memref<16x64xf32, #tpu.memory_space<vmem>>, vector<2x32xf32>,
    %134 = vector.extract_strided_slice %131 {offsets = [0, 32], sizes = [2, 32], strides = [1, 1]} : vector<2x64xf32> to vector<2x32xf32>
    %c8 = arith.constant 8 : index
    %c32_35 = arith.constant 32 : index
    %135 = vector.load %arg17[%c8, %c32_35] : memref<16x64xf32, #tpu.memory_space<vmem>>, vector<2x32xf32>
    tpu.vector_store %arg17[%c8, %c32_35], %134 {strides = array<i32>} : memref<16x64xf32, #tpu.memory_space<vmem>>, vector<2x32xf32>,
    %136 = vector.extract_strided_slice %24 {offsets = [8, 0], sizes = [2, 256], strides = [1, 1]} : vector<16x256xf32> to vector<2x256xf32>
    %137 = vector.extract_strided_slice %24 {offsets = [6, 0], sizes = [2, 256], strides = [1, 1]} : vector<16x256xf32> to vector<2x256xf32>
    %138 = arith.select %18, %136, %137 : vector<2x256xi1>, vector<2x256xf32>
    %cst_36 = arith.constant dense<0.000000e+00> : vector<2x256xf32>
    %139 = tpu.matmul %131, %25, %cst_36 {dimension_numbers = #tpu.dot_dimension_numbers<[1], [0], [0], [1], [0, 0, 1, 1], [], []>} : vector<2x64xf32>, vector<64x256xf32>, vector<2x256xf32> -> vector<2x256xf32>
    %140 = arith.addf %138, %139 : vector<2x256xf32>
    %141 = arith.negf %140 : vector<2x256xf32>
    %142 = math.exp %141 : vector<2x256xf32>
    %cst_37 = arith.constant 1.000000e+00 : f32
    %143 = vector.broadcast %cst_37 : f32 to vector<2x256xf32>
    %144 = arith.addf %143, %142 : vector<2x256xf32>
    %145 = arith.divf %143, %144 : vector<2x256xf32>
    %146 = vector.extract_strided_slice %145 {offsets = [0, 0], sizes = [2, 64], strides = [1, 1]} : vector<2x256xf32> to vector<2x64xf32>
    %147 = vector.extract_strided_slice %145 {offsets = [0, 64], sizes = [2, 64], strides = [1, 1]} : vector<2x256xf32> to vector<2x64xf32>
    %148 = vector.extract_strided_slice %145 {offsets = [0, 128], sizes = [2, 64], strides = [1, 1]} : vector<2x256xf32> to vector<2x64xf32>
    %cst_38 = arith.constant 2.000000e+00 : f32
    %149 = vector.broadcast %cst_38 : f32 to vector<2x64xf32>
    %150 = arith.mulf %149, %148 : vector<2x64xf32>
    %cst_39 = arith.constant 1.000000e+00 : f32
    %151 = vector.broadcast %cst_39 : f32 to vector<2x64xf32>
    %152 = arith.subf %150, %151 : vector<2x64xf32>
    %153 = vector.extract_strided_slice %145 {offsets = [0, 192], sizes = [2, 64], strides = [1, 1]} : vector<2x256xf32> to vector<2x64xf32>
    %154 = arith.mulf %147, %129 : vector<2x64xf32>
    %155 = arith.mulf %146, %152 : vector<2x64xf32>
    %156 = arith.addf %154, %155 : vector<2x64xf32>
    %157 = math.tanh %156 : vector<2x64xf32>
    %158 = arith.mulf %153, %157 : vector<2x64xf32>
    %159 = vector.extract_strided_slice %158 {offsets = [0, 0], sizes = [2, 32], strides = [1, 1]} : vector<2x64xf32> to vector<2x32xf32>
    %c8_40 = arith.constant 8 : index
    %c0_41 = arith.constant 0 : index
    %160 = vector.load %arg17[%c8_40, %c0_41] : memref<16x64xf32, #tpu.memory_space<vmem>>, vector<2x32xf32>
    tpu.vector_store %arg17[%c8_40, %c0_41], %159 {strides = array<i32>} : memref<16x64xf32, #tpu.memory_space<vmem>>, vector<2x32xf32>,
    %161 = vector.extract_strided_slice %158 {offsets = [0, 32], sizes = [2, 32], strides = [1, 1]} : vector<2x64xf32> to vector<2x32xf32>
    %c6_42 = arith.constant 6 : index
    %c32_43 = arith.constant 32 : index
    %162 = vector.load %arg17[%c6_42, %c32_43] : memref<16x64xf32, #tpu.memory_space<vmem>>, vector<2x32xf32>
    tpu.vector_store %arg17[%c6_42, %c32_43], %161 {strides = array<i32>} : memref<16x64xf32, #tpu.memory_space<vmem>>, vector<2x32xf32>,
    %163 = vector.extract_strided_slice %24 {offsets = [10, 0], sizes = [2, 256], strides = [1, 1]} : vector<16x256xf32> to vector<2x256xf32>
    %164 = vector.extract_strided_slice %24 {offsets = [4, 0], sizes = [2, 256], strides = [1, 1]} : vector<16x256xf32> to vector<2x256xf32>
    %165 = arith.select %18, %163, %164 : vector<2x256xi1>, vector<2x256xf32>
    %cst_44 = arith.constant dense<0.000000e+00> : vector<2x256xf32>
    %166 = tpu.matmul %158, %25, %cst_44 {dimension_numbers = #tpu.dot_dimension_numbers<[1], [0], [0], [1], [0, 0, 1, 1], [], []>} : vector<2x64xf32>, vector<64x256xf32>, vector<2x256xf32> -> vector<2x256xf32>
    %167 = arith.addf %165, %166 : vector<2x256xf32>
    %168 = arith.negf %167 : vector<2x256xf32>
    %169 = math.exp %168 : vector<2x256xf32>
    %cst_45 = arith.constant 1.000000e+00 : f32
    %170 = vector.broadcast %cst_45 : f32 to vector<2x256xf32>
    %171 = arith.addf %170, %169 : vector<2x256xf32>
    %172 = arith.divf %170, %171 : vector<2x256xf32>
    %173 = vector.extract_strided_slice %172 {offsets = [0, 0], sizes = [2, 64], strides = [1, 1]} : vector<2x256xf32> to vector<2x64xf32>
    %174 = vector.extract_strided_slice %172 {offsets = [0, 64], sizes = [2, 64], strides = [1, 1]} : vector<2x256xf32> to vector<2x64xf32>
    %175 = vector.extract_strided_slice %172 {offsets = [0, 128], sizes = [2, 64], strides = [1, 1]} : vector<2x256xf32> to vector<2x64xf32>
    %cst_46 = arith.constant 2.000000e+00 : f32
    %176 = vector.broadcast %cst_46 : f32 to vector<2x64xf32>
    %177 = arith.mulf %176, %175 : vector<2x64xf32>
    %cst_47 = arith.constant 1.000000e+00 : f32
    %178 = vector.broadcast %cst_47 : f32 to vector<2x64xf32>
    %179 = arith.subf %177, %178 : vector<2x64xf32>
    %180 = vector.extract_strided_slice %172 {offsets = [0, 192], sizes = [2, 64], strides = [1, 1]} : vector<2x256xf32> to vector<2x64xf32>
    %181 = arith.mulf %174, %156 : vector<2x64xf32>
    %182 = arith.mulf %173, %179 : vector<2x64xf32>
    %183 = arith.addf %181, %182 : vector<2x64xf32>
    %184 = math.tanh %183 : vector<2x64xf32>
    %185 = arith.mulf %180, %184 : vector<2x64xf32>
    %186 = vector.extract_strided_slice %185 {offsets = [0, 0], sizes = [2, 32], strides = [1, 1]} : vector<2x64xf32> to vector<2x32xf32>
    %c10_48 = arith.constant 10 : index
    %c0_49 = arith.constant 0 : index
    %187 = vector.load %arg17[%c10_48, %c0_49] : memref<16x64xf32, #tpu.memory_space<vmem>>, vector<2x32xf32>
    tpu.vector_store %arg17[%c10_48, %c0_49], %186 {strides = array<i32>} : memref<16x64xf32, #tpu.memory_space<vmem>>, vector<2x32xf32>,
    %188 = vector.extract_strided_slice %185 {offsets = [0, 32], sizes = [2, 32], strides = [1, 1]} : vector<2x64xf32> to vector<2x32xf32>
    %c4_50 = arith.constant 4 : index
    %c32_51 = arith.constant 32 : index
    %189 = vector.load %arg17[%c4_50, %c32_51] : memref<16x64xf32, #tpu.memory_space<vmem>>, vector<2x32xf32>
    tpu.vector_store %arg17[%c4_50, %c32_51], %188 {strides = array<i32>} : memref<16x64xf32, #tpu.memory_space<vmem>>, vector<2x32xf32>,
    %190 = vector.extract_strided_slice %24 {offsets = [12, 0], sizes = [2, 256], strides = [1, 1]} : vector<16x256xf32> to vector<2x256xf32>
    %191 = vector.extract_strided_slice %24 {offsets = [2, 0], sizes = [2, 256], strides = [1, 1]} : vector<16x256xf32> to vector<2x256xf32>
    %192 = arith.select %18, %190, %191 : vector<2x256xi1>, vector<2x256xf32>
    %cst_52 = arith.constant dense<0.000000e+00> : vector<2x256xf32>
    %193 = tpu.matmul %185, %25, %cst_52 {dimension_numbers = #tpu.dot_dimension_numbers<[1], [0], [0], [1], [0, 0, 1, 1], [], []>} : vector<2x64xf32>, vector<64x256xf32>, vector<2x256xf32> -> vector<2x256xf32>
    %194 = arith.addf %192, %193 : vector<2x256xf32>
    %195 = arith.negf %194 : vector<2x256xf32>
    %196 = math.exp %195 : vector<2x256xf32>
    %cst_53 = arith.constant 1.000000e+00 : f32
    %197 = vector.broadcast %cst_53 : f32 to vector<2x256xf32>
    %198 = arith.addf %197, %196 : vector<2x256xf32>
    %199 = arith.divf %197, %198 : vector<2x256xf32>
    %200 = vector.extract_strided_slice %199 {offsets = [0, 0], sizes = [2, 64], strides = [1, 1]} : vector<2x256xf32> to vector<2x64xf32>
    %201 = vector.extract_strided_slice %199 {offsets = [0, 64], sizes = [2, 64], strides = [1, 1]} : vector<2x256xf32> to vector<2x64xf32>
    %202 = vector.extract_strided_slice %199 {offsets = [0, 128], sizes = [2, 64], strides = [1, 1]} : vector<2x256xf32> to vector<2x64xf32>
    %cst_54 = arith.constant 2.000000e+00 : f32
    %203 = vector.broadcast %cst_54 : f32 to vector<2x64xf32>
    %204 = arith.mulf %203, %202 : vector<2x64xf32>
    %cst_55 = arith.constant 1.000000e+00 : f32
    %205 = vector.broadcast %cst_55 : f32 to vector<2x64xf32>
    %206 = arith.subf %204, %205 : vector<2x64xf32>
    %207 = vector.extract_strided_slice %199 {offsets = [0, 192], sizes = [2, 64], strides = [1, 1]} : vector<2x256xf32> to vector<2x64xf32>
    %208 = arith.mulf %201, %183 : vector<2x64xf32>
    %209 = arith.mulf %200, %206 : vector<2x64xf32>
    %210 = arith.addf %208, %209 : vector<2x64xf32>
    %211 = math.tanh %210 : vector<2x64xf32>
    %212 = arith.mulf %207, %211 : vector<2x64xf32>
    %213 = vector.extract_strided_slice %212 {offsets = [0, 0], sizes = [2, 32], strides = [1, 1]} : vector<2x64xf32> to vector<2x32xf32>
    %c12_56 = arith.constant 12 : index
    %c0_57 = arith.constant 0 : index
    %214 = vector.load %arg17[%c12_56, %c0_57] : memref<16x64xf32, #tpu.memory_space<vmem>>, vector<2x32xf32>
    tpu.vector_store %arg17[%c12_56, %c0_57], %213 {strides = array<i32>} : memref<16x64xf32, #tpu.memory_space<vmem>>, vector<2x32xf32>,
    %215 = vector.extract_strided_slice %212 {offsets = [0, 32], sizes = [2, 32], strides = [1, 1]} : vector<2x64xf32> to vector<2x32xf32>
    %c2_58 = arith.constant 2 : index
    %c32_59 = arith.constant 32 : index
    %216 = vector.load %arg17[%c2_58, %c32_59] : memref<16x64xf32, #tpu.memory_space<vmem>>, vector<2x32xf32>
    tpu.vector_store %arg17[%c2_58, %c32_59], %215 {strides = array<i32>} : memref<16x64xf32, #tpu.memory_space<vmem>>, vector<2x32xf32>,
    %217 = vector.extract_strided_slice %24 {offsets = [14, 0], sizes = [2, 256], strides = [1, 1]} : vector<16x256xf32> to vector<2x256xf32>
    %218 = vector.extract_strided_slice %24 {offsets = [0, 0], sizes = [2, 256], strides = [1, 1]} : vector<16x256xf32> to vector<2x256xf32>
    %219 = arith.select %18, %217, %218 : vector<2x256xi1>, vector<2x256xf32>
    %cst_60 = arith.constant dense<0.000000e+00> : vector<2x256xf32>
    %220 = tpu.matmul %212, %25, %cst_60 {dimension_numbers = #tpu.dot_dimension_numbers<[1], [0], [0], [1], [0, 0, 1, 1], [], []>} : vector<2x64xf32>, vector<64x256xf32>, vector<2x256xf32> -> vector<2x256xf32>
    %221 = arith.addf %219, %220 : vector<2x256xf32>
    %222 = arith.negf %221 : vector<2x256xf32>
    %223 = math.exp %222 : vector<2x256xf32>
    %cst_61 = arith.constant 1.000000e+00 : f32
    %224 = vector.broadcast %cst_61 : f32 to vector<2x256xf32>
    %225 = arith.addf %224, %223 : vector<2x256xf32>
    %226 = arith.divf %224, %225 : vector<2x256xf32>
    %227 = vector.extract_strided_slice %226 {offsets = [0, 0], sizes = [2, 64], strides = [1, 1]} : vector<2x256xf32> to vector<2x64xf32>
    %228 = vector.extract_strided_slice %226 {offsets = [0, 64], sizes = [2, 64], strides = [1, 1]} : vector<2x256xf32> to vector<2x64xf32>
    %229 = vector.extract_strided_slice %226 {offsets = [0, 128], sizes = [2, 64], strides = [1, 1]} : vector<2x256xf32> to vector<2x64xf32>
    %cst_62 = arith.constant 2.000000e+00 : f32
    %230 = vector.broadcast %cst_62 : f32 to vector<2x64xf32>
    %231 = arith.mulf %230, %229 : vector<2x64xf32>
    %cst_63 = arith.constant 1.000000e+00 : f32
    %232 = vector.broadcast %cst_63 : f32 to vector<2x64xf32>
    %233 = arith.subf %231, %232 : vector<2x64xf32>
    %234 = vector.extract_strided_slice %226 {offsets = [0, 192], sizes = [2, 64], strides = [1, 1]} : vector<2x256xf32> to vector<2x64xf32>
    %235 = arith.mulf %228, %210 : vector<2x64xf32>
    %236 = arith.mulf %227, %233 : vector<2x64xf32>
    %237 = arith.addf %235, %236 : vector<2x64xf32>
    %238 = math.tanh %237 : vector<2x64xf32>
    %239 = arith.mulf %234, %238 : vector<2x64xf32>
    %240 = vector.extract_strided_slice %239 {offsets = [0, 0], sizes = [2, 32], strides = [1, 1]} : vector<2x64xf32> to vector<2x32xf32>
    %c14_64 = arith.constant 14 : index
    %c0_65 = arith.constant 0 : index
    %241 = vector.load %arg17[%c14_64, %c0_65] : memref<16x64xf32, #tpu.memory_space<vmem>>, vector<2x32xf32>
    tpu.vector_store %arg17[%c14_64, %c0_65], %240 {strides = array<i32>} : memref<16x64xf32, #tpu.memory_space<vmem>>, vector<2x32xf32>,
    %242 = vector.extract_strided_slice %239 {offsets = [0, 32], sizes = [2, 32], strides = [1, 1]} : vector<2x64xf32> to vector<2x32xf32>
    %c0_66 = arith.constant 0 : index
    %c32_67 = arith.constant 32 : index
    %243 = vector.load %arg17[%c0_66, %c32_67] : memref<16x64xf32, #tpu.memory_space<vmem>>, vector<2x32xf32>
    tpu.vector_store %arg17[%c0_66, %c32_67], %242 {strides = array<i32>} : memref<16x64xf32, #tpu.memory_space<vmem>>, vector<2x32xf32>,
    %c0_68 = arith.constant 0 : index
    %c0_69 = arith.constant 0 : index
    %244 = vector.load %arg17[%c0_68, %c0_69] : memref<16x64xf32, #tpu.memory_space<vmem>>, vector<16x64xf32>
    %c0_70 = arith.constant 0 : index
    %c0_71 = arith.constant 0 : index
    %245 = vector.load %arg4[%c0_70, %c0_71] : memref<64x256xf32, #tpu.memory_space<vmem>>, vector<64x256xf32>
    %cst_72 = arith.constant dense<0.000000e+00> : vector<16x256xf32>
    %246 = tpu.matmul %244, %245, %cst_72 {dimension_numbers = #tpu.dot_dimension_numbers<[1], [0], [0], [1], [0, 0, 1, 1], [], []>} : vector<16x64xf32>, vector<64x256xf32>, vector<16x256xf32> -> vector<16x256xf32>
    %c0_73 = arith.constant 0 : index
    %c0_74 = arith.constant 0 : index
    %247 = vector.load %arg6[%c0_73, %c0_74] : memref<1x256xf32, #tpu.memory_space<vmem>>, vector<1x256xf32>
    %248 = vector.broadcast %247 : vector<1x256xf32> to vector<16x256xf32>
    %249 = arith.addf %246, %248 : vector<16x256xf32>
    %c0_75 = arith.constant 0 : index
    %c0_76 = arith.constant 0 : index
    %250 = vector.load %arg5[%c0_75, %c0_76] : memref<64x256xf32, #tpu.memory_space<vmem>>, vector<64x256xf32>
    %cst_77 = arith.constant 0.000000e+00 : f32
    %251 = vector.broadcast %cst_77 : f32 to vector<2x64xf32>
    %cst_78 = arith.constant 0.000000e+00 : f32
    %252 = vector.broadcast %cst_78 : f32 to vector<2x64xf32>
    %253 = vector.extract_strided_slice %249 {offsets = [0, 0], sizes = [2, 256], strides = [1, 1]} : vector<16x256xf32> to vector<2x256xf32>
    %254 = vector.extract_strided_slice %249 {offsets = [14, 0], sizes = [2, 256], strides = [1, 1]} : vector<16x256xf32> to vector<2x256xf32>
    %255 = arith.select %18, %253, %254 : vector<2x256xi1>, vector<2x256xf32>
    %cst_79 = arith.constant dense<0.000000e+00> : vector<2x256xf32>
    %256 = tpu.matmul %251, %250, %cst_79 {dimension_numbers = #tpu.dot_dimension_numbers<[1], [0], [0], [1], [0, 0, 1, 1], [], []>} : vector<2x64xf32>, vector<64x256xf32>, vector<2x256xf32> -> vector<2x256xf32>
    %257 = arith.addf %255, %256 : vector<2x256xf32>
    %258 = arith.negf %257 : vector<2x256xf32>
    %259 = math.exp %258 : vector<2x256xf32>
    %cst_80 = arith.constant 1.000000e+00 : f32
    %260 = vector.broadcast %cst_80 : f32 to vector<2x256xf32>
    %261 = arith.addf %260, %259 : vector<2x256xf32>
    %262 = arith.divf %260, %261 : vector<2x256xf32>
    %263 = vector.extract_strided_slice %262 {offsets = [0, 0], sizes = [2, 64], strides = [1, 1]} : vector<2x256xf32> to vector<2x64xf32>
    %264 = vector.extract_strided_slice %262 {offsets = [0, 64], sizes = [2, 64], strides = [1, 1]} : vector<2x256xf32> to vector<2x64xf32>
    %265 = vector.extract_strided_slice %262 {offsets = [0, 128], sizes = [2, 64], strides = [1, 1]} : vector<2x256xf32> to vector<2x64xf32>
    %cst_81 = arith.constant 2.000000e+00 : f32
    %266 = vector.broadcast %cst_81 : f32 to vector<2x64xf32>
    %267 = arith.mulf %266, %265 : vector<2x64xf32>
    %cst_82 = arith.constant 1.000000e+00 : f32
    %268 = vector.broadcast %cst_82 : f32 to vector<2x64xf32>
    %269 = arith.subf %267, %268 : vector<2x64xf32>
    %270 = vector.extract_strided_slice %262 {offsets = [0, 192], sizes = [2, 64], strides = [1, 1]} : vector<2x256xf32> to vector<2x64xf32>
    %271 = arith.mulf %264, %252 : vector<2x64xf32>
    %272 = arith.mulf %263, %269 : vector<2x64xf32>
    %273 = arith.addf %271, %272 : vector<2x64xf32>
    %274 = math.tanh %273 : vector<2x64xf32>
    %275 = arith.mulf %270, %274 : vector<2x64xf32>
    %276 = vector.extract_strided_slice %275 {offsets = [0, 0], sizes = [2, 32], strides = [1, 1]} : vector<2x64xf32> to vector<2x32xf32>
    %c0_83 = arith.constant 0 : index
    %c0_84 = arith.constant 0 : index
    %277 = vector.load %arg18[%c0_83, %c0_84] : memref<16x64xf32, #tpu.memory_space<vmem>>, vector<2x32xf32>
    tpu.vector_store %arg18[%c0_83, %c0_84], %276 {strides = array<i32>} : memref<16x64xf32, #tpu.memory_space<vmem>>, vector<2x32xf32>,
    %278 = vector.extract_strided_slice %275 {offsets = [0, 32], sizes = [2, 32], strides = [1, 1]} : vector<2x64xf32> to vector<2x32xf32>
    %c14_85 = arith.constant 14 : index
    %c32_86 = arith.constant 32 : index
    %279 = vector.load %arg18[%c14_85, %c32_86] : memref<16x64xf32, #tpu.memory_space<vmem>>, vector<2x32xf32>
    tpu.vector_store %arg18[%c14_85, %c32_86], %278 {strides = array<i32>} : memref<16x64xf32, #tpu.memory_space<vmem>>, vector<2x32xf32>,
    %280 = vector.extract_strided_slice %249 {offsets = [2, 0], sizes = [2, 256], strides = [1, 1]} : vector<16x256xf32> to vector<2x256xf32>
    %281 = vector.extract_strided_slice %249 {offsets = [12, 0], sizes = [2, 256], strides = [1, 1]} : vector<16x256xf32> to vector<2x256xf32>
    %282 = arith.select %18, %280, %281 : vector<2x256xi1>, vector<2x256xf32>
    %cst_87 = arith.constant dense<0.000000e+00> : vector<2x256xf32>
    %283 = tpu.matmul %275, %250, %cst_87 {dimension_numbers = #tpu.dot_dimension_numbers<[1], [0], [0], [1], [0, 0, 1, 1], [], []>} : vector<2x64xf32>, vector<64x256xf32>, vector<2x256xf32> -> vector<2x256xf32>
    %284 = arith.addf %282, %283 : vector<2x256xf32>
    %285 = arith.negf %284 : vector<2x256xf32>
    %286 = math.exp %285 : vector<2x256xf32>
    %cst_88 = arith.constant 1.000000e+00 : f32
    %287 = vector.broadcast %cst_88 : f32 to vector<2x256xf32>
    %288 = arith.addf %287, %286 : vector<2x256xf32>
    %289 = arith.divf %287, %288 : vector<2x256xf32>
    %290 = vector.extract_strided_slice %289 {offsets = [0, 0], sizes = [2, 64], strides = [1, 1]} : vector<2x256xf32> to vector<2x64xf32>
    %291 = vector.extract_strided_slice %289 {offsets = [0, 64], sizes = [2, 64], strides = [1, 1]} : vector<2x256xf32> to vector<2x64xf32>
    %292 = vector.extract_strided_slice %289 {offsets = [0, 128], sizes = [2, 64], strides = [1, 1]} : vector<2x256xf32> to vector<2x64xf32>
    %cst_89 = arith.constant 2.000000e+00 : f32
    %293 = vector.broadcast %cst_89 : f32 to vector<2x64xf32>
    %294 = arith.mulf %293, %292 : vector<2x64xf32>
    %cst_90 = arith.constant 1.000000e+00 : f32
    %295 = vector.broadcast %cst_90 : f32 to vector<2x64xf32>
    %296 = arith.subf %294, %295 : vector<2x64xf32>
    %297 = vector.extract_strided_slice %289 {offsets = [0, 192], sizes = [2, 64], strides = [1, 1]} : vector<2x256xf32> to vector<2x64xf32>
    %298 = arith.mulf %291, %273 : vector<2x64xf32>
    %299 = arith.mulf %290, %296 : vector<2x64xf32>
    %300 = arith.addf %298, %299 : vector<2x64xf32>
    %301 = math.tanh %300 : vector<2x64xf32>
    %302 = arith.mulf %297, %301 : vector<2x64xf32>
    %303 = vector.extract_strided_slice %302 {offsets = [0, 0], sizes = [2, 32], strides = [1, 1]} : vector<2x64xf32> to vector<2x32xf32>
    %c2_91 = arith.constant 2 : index
    %c0_92 = arith.constant 0 : index
    %304 = vector.load %arg18[%c2_91, %c0_92] : memref<16x64xf32, #tpu.memory_space<vmem>>, vector<2x32xf32>
    tpu.vector_store %arg18[%c2_91, %c0_92], %303 {strides = array<i32>} : memref<16x64xf32, #tpu.memory_space<vmem>>, vector<2x32xf32>,
    %305 = vector.extract_strided_slice %302 {offsets = [0, 32], sizes = [2, 32], strides = [1, 1]} : vector<2x64xf32> to vector<2x32xf32>
    %c12_93 = arith.constant 12 : index
    %c32_94 = arith.constant 32 : index
    %306 = vector.load %arg18[%c12_93, %c32_94] : memref<16x64xf32, #tpu.memory_space<vmem>>, vector<2x32xf32>
    tpu.vector_store %arg18[%c12_93, %c32_94], %305 {strides = array<i32>} : memref<16x64xf32, #tpu.memory_space<vmem>>, vector<2x32xf32>,
    %307 = vector.extract_strided_slice %249 {offsets = [4, 0], sizes = [2, 256], strides = [1, 1]} : vector<16x256xf32> to vector<2x256xf32>
    %308 = vector.extract_strided_slice %249 {offsets = [10, 0], sizes = [2, 256], strides = [1, 1]} : vector<16x256xf32> to vector<2x256xf32>
    %309 = arith.select %18, %307, %308 : vector<2x256xi1>, vector<2x256xf32>
    %cst_95 = arith.constant dense<0.000000e+00> : vector<2x256xf32>
    %310 = tpu.matmul %302, %250, %cst_95 {dimension_numbers = #tpu.dot_dimension_numbers<[1], [0], [0], [1], [0, 0, 1, 1], [], []>} : vector<2x64xf32>, vector<64x256xf32>, vector<2x256xf32> -> vector<2x256xf32>
    %311 = arith.addf %309, %310 : vector<2x256xf32>
    %312 = arith.negf %311 : vector<2x256xf32>
    %313 = math.exp %312 : vector<2x256xf32>
    %cst_96 = arith.constant 1.000000e+00 : f32
    %314 = vector.broadcast %cst_96 : f32 to vector<2x256xf32>
    %315 = arith.addf %314, %313 : vector<2x256xf32>
    %316 = arith.divf %314, %315 : vector<2x256xf32>
    %317 = vector.extract_strided_slice %316 {offsets = [0, 0], sizes = [2, 64], strides = [1, 1]} : vector<2x256xf32> to vector<2x64xf32>
    %318 = vector.extract_strided_slice %316 {offsets = [0, 64], sizes = [2, 64], strides = [1, 1]} : vector<2x256xf32> to vector<2x64xf32>
    %319 = vector.extract_strided_slice %316 {offsets = [0, 128], sizes = [2, 64], strides = [1, 1]} : vector<2x256xf32> to vector<2x64xf32>
    %cst_97 = arith.constant 2.000000e+00 : f32
    %320 = vector.broadcast %cst_97 : f32 to vector<2x64xf32>
    %321 = arith.mulf %320, %319 : vector<2x64xf32>
    %cst_98 = arith.constant 1.000000e+00 : f32
    %322 = vector.broadcast %cst_98 : f32 to vector<2x64xf32>
    %323 = arith.subf %321, %322 : vector<2x64xf32>
    %324 = vector.extract_strided_slice %316 {offsets = [0, 192], sizes = [2, 64], strides = [1, 1]} : vector<2x256xf32> to vector<2x64xf32>
    %325 = arith.mulf %318, %300 : vector<2x64xf32>
    %326 = arith.mulf %317, %323 : vector<2x64xf32>
    %327 = arith.addf %325, %326 : vector<2x64xf32>
    %328 = math.tanh %327 : vector<2x64xf32>
    %329 = arith.mulf %324, %328 : vector<2x64xf32>
    %330 = vector.extract_strided_slice %329 {offsets = [0, 0], sizes = [2, 32], strides = [1, 1]} : vector<2x64xf32> to vector<2x32xf32>
    %c4_99 = arith.constant 4 : index
    %c0_100 = arith.constant 0 : index
    %331 = vector.load %arg18[%c4_99, %c0_100] : memref<16x64xf32, #tpu.memory_space<vmem>>, vector<2x32xf32>
    tpu.vector_store %arg18[%c4_99, %c0_100], %330 {strides = array<i32>} : memref<16x64xf32, #tpu.memory_space<vmem>>, vector<2x32xf32>,
    %332 = vector.extract_strided_slice %329 {offsets = [0, 32], sizes = [2, 32], strides = [1, 1]} : vector<2x64xf32> to vector<2x32xf32>
    %c10_101 = arith.constant 10 : index
    %c32_102 = arith.constant 32 : index
    %333 = vector.load %arg18[%c10_101, %c32_102] : memref<16x64xf32, #tpu.memory_space<vmem>>, vector<2x32xf32>
    tpu.vector_store %arg18[%c10_101, %c32_102], %332 {strides = array<i32>} : memref<16x64xf32, #tpu.memory_space<vmem>>, vector<2x32xf32>,
    %334 = vector.extract_strided_slice %249 {offsets = [6, 0], sizes = [2, 256], strides = [1, 1]} : vector<16x256xf32> to vector<2x256xf32>
    %335 = vector.extract_strided_slice %249 {offsets = [8, 0], sizes = [2, 256], strides = [1, 1]} : vector<16x256xf32> to vector<2x256xf32>
    %336 = arith.select %18, %334, %335 : vector<2x256xi1>, vector<2x256xf32>
    %cst_103 = arith.constant dense<0.000000e+00> : vector<2x256xf32>
    %337 = tpu.matmul %329, %250, %cst_103 {dimension_numbers = #tpu.dot_dimension_numbers<[1], [0], [0], [1], [0, 0, 1, 1], [], []>} : vector<2x64xf32>, vector<64x256xf32>, vector<2x256xf32> -> vector<2x256xf32>
    %338 = arith.addf %336, %337 : vector<2x256xf32>
    %339 = arith.negf %338 : vector<2x256xf32>
    %340 = math.exp %339 : vector<2x256xf32>
    %cst_104 = arith.constant 1.000000e+00 : f32
    %341 = vector.broadcast %cst_104 : f32 to vector<2x256xf32>
    %342 = arith.addf %341, %340 : vector<2x256xf32>
    %343 = arith.divf %341, %342 : vector<2x256xf32>
    %344 = vector.extract_strided_slice %343 {offsets = [0, 0], sizes = [2, 64], strides = [1, 1]} : vector<2x256xf32> to vector<2x64xf32>
    %345 = vector.extract_strided_slice %343 {offsets = [0, 64], sizes = [2, 64], strides = [1, 1]} : vector<2x256xf32> to vector<2x64xf32>
    %346 = vector.extract_strided_slice %343 {offsets = [0, 128], sizes = [2, 64], strides = [1, 1]} : vector<2x256xf32> to vector<2x64xf32>
    %cst_105 = arith.constant 2.000000e+00 : f32
    %347 = vector.broadcast %cst_105 : f32 to vector<2x64xf32>
    %348 = arith.mulf %347, %346 : vector<2x64xf32>
    %cst_106 = arith.constant 1.000000e+00 : f32
    %349 = vector.broadcast %cst_106 : f32 to vector<2x64xf32>
    %350 = arith.subf %348, %349 : vector<2x64xf32>
    %351 = vector.extract_strided_slice %343 {offsets = [0, 192], sizes = [2, 64], strides = [1, 1]} : vector<2x256xf32> to vector<2x64xf32>
    %352 = arith.mulf %345, %327 : vector<2x64xf32>
    %353 = arith.mulf %344, %350 : vector<2x64xf32>
    %354 = arith.addf %352, %353 : vector<2x64xf32>
    %355 = math.tanh %354 : vector<2x64xf32>
    %356 = arith.mulf %351, %355 : vector<2x64xf32>
    %357 = vector.extract_strided_slice %356 {offsets = [0, 0], sizes = [2, 32], strides = [1, 1]} : vector<2x64xf32> to vector<2x32xf32>
    %c6_107 = arith.constant 6 : index
    %c0_108 = arith.constant 0 : index
    %358 = vector.load %arg18[%c6_107, %c0_108] : memref<16x64xf32, #tpu.memory_space<vmem>>, vector<2x32xf32>
    tpu.vector_store %arg18[%c6_107, %c0_108], %357 {strides = array<i32>} : memref<16x64xf32, #tpu.memory_space<vmem>>, vector<2x32xf32>,
    %359 = vector.extract_strided_slice %356 {offsets = [0, 32], sizes = [2, 32], strides = [1, 1]} : vector<2x64xf32> to vector<2x32xf32>
    %c8_109 = arith.constant 8 : index
    %c32_110 = arith.constant 32 : index
    %360 = vector.load %arg18[%c8_109, %c32_110] : memref<16x64xf32, #tpu.memory_space<vmem>>, vector<2x32xf32>
    tpu.vector_store %arg18[%c8_109, %c32_110], %359 {strides = array<i32>} : memref<16x64xf32, #tpu.memory_space<vmem>>, vector<2x32xf32>,
    %361 = vector.extract_strided_slice %249 {offsets = [8, 0], sizes = [2, 256], strides = [1, 1]} : vector<16x256xf32> to vector<2x256xf32>
    %362 = vector.extract_strided_slice %249 {offsets = [6, 0], sizes = [2, 256], strides = [1, 1]} : vector<16x256xf32> to vector<2x256xf32>
    %363 = arith.select %18, %361, %362 : vector<2x256xi1>, vector<2x256xf32>
    %cst_111 = arith.constant dense<0.000000e+00> : vector<2x256xf32>
    %364 = tpu.matmul %356, %250, %cst_111 {dimension_numbers = #tpu.dot_dimension_numbers<[1], [0], [0], [1], [0, 0, 1, 1], [], []>} : vector<2x64xf32>, vector<64x256xf32>, vector<2x256xf32> -> vector<2x256xf32>
    %365 = arith.addf %363, %364 : vector<2x256xf32>
    %366 = arith.negf %365 : vector<2x256xf32>
    %367 = math.exp %366 : vector<2x256xf32>
    %cst_112 = arith.constant 1.000000e+00 : f32
    %368 = vector.broadcast %cst_112 : f32 to vector<2x256xf32>
    %369 = arith.addf %368, %367 : vector<2x256xf32>
    %370 = arith.divf %368, %369 : vector<2x256xf32>
    %371 = vector.extract_strided_slice %370 {offsets = [0, 0], sizes = [2, 64], strides = [1, 1]} : vector<2x256xf32> to vector<2x64xf32>
    %372 = vector.extract_strided_slice %370 {offsets = [0, 64], sizes = [2, 64], strides = [1, 1]} : vector<2x256xf32> to vector<2x64xf32>
    %373 = vector.extract_strided_slice %370 {offsets = [0, 128], sizes = [2, 64], strides = [1, 1]} : vector<2x256xf32> to vector<2x64xf32>
    %cst_113 = arith.constant 2.000000e+00 : f32
    %374 = vector.broadcast %cst_113 : f32 to vector<2x64xf32>
    %375 = arith.mulf %374, %373 : vector<2x64xf32>
    %cst_114 = arith.constant 1.000000e+00 : f32
    %376 = vector.broadcast %cst_114 : f32 to vector<2x64xf32>
    %377 = arith.subf %375, %376 : vector<2x64xf32>
    %378 = vector.extract_strided_slice %370 {offsets = [0, 192], sizes = [2, 64], strides = [1, 1]} : vector<2x256xf32> to vector<2x64xf32>
    %379 = arith.mulf %372, %354 : vector<2x64xf32>
    %380 = arith.mulf %371, %377 : vector<2x64xf32>
    %381 = arith.addf %379, %380 : vector<2x64xf32>
    %382 = math.tanh %381 : vector<2x64xf32>
    %383 = arith.mulf %378, %382 : vector<2x64xf32>
    %384 = vector.extract_strided_slice %383 {offsets = [0, 0], sizes = [2, 32], strides = [1, 1]} : vector<2x64xf32> to vector<2x32xf32>
    %c8_115 = arith.constant 8 : index
    %c0_116 = arith.constant 0 : index
    %385 = vector.load %arg18[%c8_115, %c0_116] : memref<16x64xf32, #tpu.memory_space<vmem>>, vector<2x32xf32>
    tpu.vector_store %arg18[%c8_115, %c0_116], %384 {strides = array<i32>} : memref<16x64xf32, #tpu.memory_space<vmem>>, vector<2x32xf32>,
    %386 = vector.extract_strided_slice %383 {offsets = [0, 32], sizes = [2, 32], strides = [1, 1]} : vector<2x64xf32> to vector<2x32xf32>
    %c6_117 = arith.constant 6 : index
    %c32_118 = arith.constant 32 : index
    %387 = vector.load %arg18[%c6_117, %c32_118] : memref<16x64xf32, #tpu.memory_space<vmem>>, vector<2x32xf32>
    tpu.vector_store %arg18[%c6_117, %c32_118], %386 {strides = array<i32>} : memref<16x64xf32, #tpu.memory_space<vmem>>, vector<2x32xf32>,
    %388 = vector.extract_strided_slice %249 {offsets = [10, 0], sizes = [2, 256], strides = [1, 1]} : vector<16x256xf32> to vector<2x256xf32>
    %389 = vector.extract_strided_slice %249 {offsets = [4, 0], sizes = [2, 256], strides = [1, 1]} : vector<16x256xf32> to vector<2x256xf32>
    %390 = arith.select %18, %388, %389 : vector<2x256xi1>, vector<2x256xf32>
    %cst_119 = arith.constant dense<0.000000e+00> : vector<2x256xf32>
    %391 = tpu.matmul %383, %250, %cst_119 {dimension_numbers = #tpu.dot_dimension_numbers<[1], [0], [0], [1], [0, 0, 1, 1], [], []>} : vector<2x64xf32>, vector<64x256xf32>, vector<2x256xf32> -> vector<2x256xf32>
    %392 = arith.addf %390, %391 : vector<2x256xf32>
    %393 = arith.negf %392 : vector<2x256xf32>
    %394 = math.exp %393 : vector<2x256xf32>
    %cst_120 = arith.constant 1.000000e+00 : f32
    %395 = vector.broadcast %cst_120 : f32 to vector<2x256xf32>
    %396 = arith.addf %395, %394 : vector<2x256xf32>
    %397 = arith.divf %395, %396 : vector<2x256xf32>
    %398 = vector.extract_strided_slice %397 {offsets = [0, 0], sizes = [2, 64], strides = [1, 1]} : vector<2x256xf32> to vector<2x64xf32>
    %399 = vector.extract_strided_slice %397 {offsets = [0, 64], sizes = [2, 64], strides = [1, 1]} : vector<2x256xf32> to vector<2x64xf32>
    %400 = vector.extract_strided_slice %397 {offsets = [0, 128], sizes = [2, 64], strides = [1, 1]} : vector<2x256xf32> to vector<2x64xf32>
    %cst_121 = arith.constant 2.000000e+00 : f32
    %401 = vector.broadcast %cst_121 : f32 to vector<2x64xf32>
    %402 = arith.mulf %401, %400 : vector<2x64xf32>
    %cst_122 = arith.constant 1.000000e+00 : f32
    %403 = vector.broadcast %cst_122 : f32 to vector<2x64xf32>
    %404 = arith.subf %402, %403 : vector<2x64xf32>
    %405 = vector.extract_strided_slice %397 {offsets = [0, 192], sizes = [2, 64], strides = [1, 1]} : vector<2x256xf32> to vector<2x64xf32>
    %406 = arith.mulf %399, %381 : vector<2x64xf32>
    %407 = arith.mulf %398, %404 : vector<2x64xf32>
    %408 = arith.addf %406, %407 : vector<2x64xf32>
    %409 = math.tanh %408 : vector<2x64xf32>
    %410 = arith.mulf %405, %409 : vector<2x64xf32>
    %411 = vector.extract_strided_slice %410 {offsets = [0, 0], sizes = [2, 32], strides = [1, 1]} : vector<2x64xf32> to vector<2x32xf32>
    %c10_123 = arith.constant 10 : index
    %c0_124 = arith.constant 0 : index
    %412 = vector.load %arg18[%c10_123, %c0_124] : memref<16x64xf32, #tpu.memory_space<vmem>>, vector<2x32xf32>
    tpu.vector_store %arg18[%c10_123, %c0_124], %411 {strides = array<i32>} : memref<16x64xf32, #tpu.memory_space<vmem>>, vector<2x32xf32>,
    %413 = vector.extract_strided_slice %410 {offsets = [0, 32], sizes = [2, 32], strides = [1, 1]} : vector<2x64xf32> to vector<2x32xf32>
    %c4_125 = arith.constant 4 : index
    %c32_126 = arith.constant 32 : index
    %414 = vector.load %arg18[%c4_125, %c32_126] : memref<16x64xf32, #tpu.memory_space<vmem>>, vector<2x32xf32>
    tpu.vector_store %arg18[%c4_125, %c32_126], %413 {strides = array<i32>} : memref<16x64xf32, #tpu.memory_space<vmem>>, vector<2x32xf32>,
    %415 = vector.extract_strided_slice %249 {offsets = [12, 0], sizes = [2, 256], strides = [1, 1]} : vector<16x256xf32> to vector<2x256xf32>
    %416 = vector.extract_strided_slice %249 {offsets = [2, 0], sizes = [2, 256], strides = [1, 1]} : vector<16x256xf32> to vector<2x256xf32>
    %417 = arith.select %18, %415, %416 : vector<2x256xi1>, vector<2x256xf32>
    %cst_127 = arith.constant dense<0.000000e+00> : vector<2x256xf32>
    %418 = tpu.matmul %410, %250, %cst_127 {dimension_numbers = #tpu.dot_dimension_numbers<[1], [0], [0], [1], [0, 0, 1, 1], [], []>} : vector<2x64xf32>, vector<64x256xf32>, vector<2x256xf32> -> vector<2x256xf32>
    %419 = arith.addf %417, %418 : vector<2x256xf32>
    %420 = arith.negf %419 : vector<2x256xf32>
    %421 = math.exp %420 : vector<2x256xf32>
    %cst_128 = arith.constant 1.000000e+00 : f32
    %422 = vector.broadcast %cst_128 : f32 to vector<2x256xf32>
    %423 = arith.addf %422, %421 : vector<2x256xf32>
    %424 = arith.divf %422, %423 : vector<2x256xf32>
    %425 = vector.extract_strided_slice %424 {offsets = [0, 0], sizes = [2, 64], strides = [1, 1]} : vector<2x256xf32> to vector<2x64xf32>
    %426 = vector.extract_strided_slice %424 {offsets = [0, 64], sizes = [2, 64], strides = [1, 1]} : vector<2x256xf32> to vector<2x64xf32>
    %427 = vector.extract_strided_slice %424 {offsets = [0, 128], sizes = [2, 64], strides = [1, 1]} : vector<2x256xf32> to vector<2x64xf32>
    %cst_129 = arith.constant 2.000000e+00 : f32
    %428 = vector.broadcast %cst_129 : f32 to vector<2x64xf32>
    %429 = arith.mulf %428, %427 : vector<2x64xf32>
    %cst_130 = arith.constant 1.000000e+00 : f32
    %430 = vector.broadcast %cst_130 : f32 to vector<2x64xf32>
    %431 = arith.subf %429, %430 : vector<2x64xf32>
    %432 = vector.extract_strided_slice %424 {offsets = [0, 192], sizes = [2, 64], strides = [1, 1]} : vector<2x256xf32> to vector<2x64xf32>
    %433 = arith.mulf %426, %408 : vector<2x64xf32>
    %434 = arith.mulf %425, %431 : vector<2x64xf32>
    %435 = arith.addf %433, %434 : vector<2x64xf32>
    %436 = math.tanh %435 : vector<2x64xf32>
    %437 = arith.mulf %432, %436 : vector<2x64xf32>
    %438 = vector.extract_strided_slice %437 {offsets = [0, 0], sizes = [2, 32], strides = [1, 1]} : vector<2x64xf32> to vector<2x32xf32>
    %c12_131 = arith.constant 12 : index
    %c0_132 = arith.constant 0 : index
    %439 = vector.load %arg18[%c12_131, %c0_132] : memref<16x64xf32, #tpu.memory_space<vmem>>, vector<2x32xf32>
    tpu.vector_store %arg18[%c12_131, %c0_132], %438 {strides = array<i32>} : memref<16x64xf32, #tpu.memory_space<vmem>>, vector<2x32xf32>,
    %440 = vector.extract_strided_slice %437 {offsets = [0, 32], sizes = [2, 32], strides = [1, 1]} : vector<2x64xf32> to vector<2x32xf32>
    %c2_133 = arith.constant 2 : index
    %c32_134 = arith.constant 32 : index
    %441 = vector.load %arg18[%c2_133, %c32_134] : memref<16x64xf32, #tpu.memory_space<vmem>>, vector<2x32xf32>
    tpu.vector_store %arg18[%c2_133, %c32_134], %440 {strides = array<i32>} : memref<16x64xf32, #tpu.memory_space<vmem>>, vector<2x32xf32>,
    %442 = vector.extract_strided_slice %249 {offsets = [14, 0], sizes = [2, 256], strides = [1, 1]} : vector<16x256xf32> to vector<2x256xf32>
    %443 = vector.extract_strided_slice %249 {offsets = [0, 0], sizes = [2, 256], strides = [1, 1]} : vector<16x256xf32> to vector<2x256xf32>
    %444 = arith.select %18, %442, %443 : vector<2x256xi1>, vector<2x256xf32>
    %cst_135 = arith.constant dense<0.000000e+00> : vector<2x256xf32>
    %445 = tpu.matmul %437, %250, %cst_135 {dimension_numbers = #tpu.dot_dimension_numbers<[1], [0], [0], [1], [0, 0, 1, 1], [], []>} : vector<2x64xf32>, vector<64x256xf32>, vector<2x256xf32> -> vector<2x256xf32>
    %446 = arith.addf %444, %445 : vector<2x256xf32>
    %447 = arith.negf %446 : vector<2x256xf32>
    %448 = math.exp %447 : vector<2x256xf32>
    %cst_136 = arith.constant 1.000000e+00 : f32
    %449 = vector.broadcast %cst_136 : f32 to vector<2x256xf32>
    %450 = arith.addf %449, %448 : vector<2x256xf32>
    %451 = arith.divf %449, %450 : vector<2x256xf32>
    %452 = vector.extract_strided_slice %451 {offsets = [0, 0], sizes = [2, 64], strides = [1, 1]} : vector<2x256xf32> to vector<2x64xf32>
    %453 = vector.extract_strided_slice %451 {offsets = [0, 64], sizes = [2, 64], strides = [1, 1]} : vector<2x256xf32> to vector<2x64xf32>
    %454 = vector.extract_strided_slice %451 {offsets = [0, 128], sizes = [2, 64], strides = [1, 1]} : vector<2x256xf32> to vector<2x64xf32>
    %cst_137 = arith.constant 2.000000e+00 : f32
    %455 = vector.broadcast %cst_137 : f32 to vector<2x64xf32>
    %456 = arith.mulf %455, %454 : vector<2x64xf32>
    %cst_138 = arith.constant 1.000000e+00 : f32
    %457 = vector.broadcast %cst_138 : f32 to vector<2x64xf32>
    %458 = arith.subf %456, %457 : vector<2x64xf32>
    %459 = vector.extract_strided_slice %451 {offsets = [0, 192], sizes = [2, 64], strides = [1, 1]} : vector<2x256xf32> to vector<2x64xf32>
    %460 = arith.mulf %453, %435 : vector<2x64xf32>
    %461 = arith.mulf %452, %458 : vector<2x64xf32>
    %462 = arith.addf %460, %461 : vector<2x64xf32>
    %463 = math.tanh %462 : vector<2x64xf32>
    %464 = arith.mulf %459, %463 : vector<2x64xf32>
    %465 = vector.extract_strided_slice %464 {offsets = [0, 0], sizes = [2, 32], strides = [1, 1]} : vector<2x64xf32> to vector<2x32xf32>
    %c14_139 = arith.constant 14 : index
    %c0_140 = arith.constant 0 : index
    %466 = vector.load %arg18[%c14_139, %c0_140] : memref<16x64xf32, #tpu.memory_space<vmem>>, vector<2x32xf32>
    tpu.vector_store %arg18[%c14_139, %c0_140], %465 {strides = array<i32>} : memref<16x64xf32, #tpu.memory_space<vmem>>, vector<2x32xf32>,
    %467 = vector.extract_strided_slice %464 {offsets = [0, 32], sizes = [2, 32], strides = [1, 1]} : vector<2x64xf32> to vector<2x32xf32>
    %c0_141 = arith.constant 0 : index
    %c32_142 = arith.constant 32 : index
    %468 = vector.load %arg18[%c0_141, %c32_142] : memref<16x64xf32, #tpu.memory_space<vmem>>, vector<2x32xf32>
    tpu.vector_store %arg18[%c0_141, %c32_142], %467 {strides = array<i32>} : memref<16x64xf32, #tpu.memory_space<vmem>>, vector<2x32xf32>,
    %c0_143 = arith.constant 0 : index
    %c0_144 = arith.constant 0 : index
    %469 = vector.load %arg18[%c0_143, %c0_144] : memref<16x64xf32, #tpu.memory_space<vmem>>, vector<16x64xf32>
    %c0_145 = arith.constant 0 : index
    %c0_146 = arith.constant 0 : index
    %470 = vector.load %arg7[%c0_145, %c0_146] : memref<64x32xf32, #tpu.memory_space<vmem>>, vector<64x32xf32>
    %cst_147 = arith.constant dense<0.000000e+00> : vector<16x32xf32>
    %471 = tpu.matmul %469, %470, %cst_147 {dimension_numbers = #tpu.dot_dimension_numbers<[1], [0], [0], [1], [0, 0, 1, 1], [], []>} : vector<16x64xf32>, vector<64x32xf32>, vector<16x32xf32> -> vector<16x32xf32>
    %c0_148 = arith.constant 0 : index
    %c0_149 = arith.constant 0 : index
    %472 = vector.load %arg8[%c0_148, %c0_149] : memref<1x32xf32, #tpu.memory_space<vmem>>, vector<1x32xf32>
    %473 = vector.broadcast %472 : vector<1x32xf32> to vector<16x32xf32>
    %474 = arith.addf %471, %473 : vector<16x32xf32>
    %475 = math.tanh %474 : vector<16x32xf32>
    %c0_150 = arith.constant 0 : index
    %c0_151 = arith.constant 0 : index
    %476 = vector.load %arg9[%c0_150, %c0_151] : memref<1x32xf32, #tpu.memory_space<vmem>>, vector<1x32xf32>
    %477 = vector.broadcast %476 : vector<1x32xf32> to vector<16x32xf32>
    %478 = arith.mulf %475, %477 : vector<16x32xf32>
    %cst_152 = arith.constant dense<0.000000e+00> : vector<16xf32>
    %479 = vector.multi_reduction <add>, %478, %cst_152 [1] : vector<16x32xf32> to vector<16xf32>
    %480 = vector.shape_cast %479 : vector<16xf32> to vector<16x1xf32>
    %c0_153 = arith.constant 0 : index
    %c0_154 = arith.constant 0 : index
    %481 = vector.load %arg10[%c0_153, %c0_154] : memref<1x1xf32, #tpu.memory_space<vmem>>, vector<1x1xf32>
    %482 = vector.broadcast %481 : vector<1x1xf32> to vector<16x1xf32>
    %483 = arith.addf %480, %482 : vector<16x1xf32>
    %484 = vector.extract_strided_slice %483 {offsets = [0, 0], sizes = [2, 1], strides = [1, 1]} : vector<16x1xf32> to vector<2x1xf32>
    %485 = vector.extract_strided_slice %483 {offsets = [2, 0], sizes = [2, 1], strides = [1, 1]} : vector<16x1xf32> to vector<2x1xf32>
    %486 = vector.extract_strided_slice %483 {offsets = [4, 0], sizes = [2, 1], strides = [1, 1]} : vector<16x1xf32> to vector<2x1xf32>
    %487 = vector.extract_strided_slice %483 {offsets = [6, 0], sizes = [2, 1], strides = [1, 1]} : vector<16x1xf32> to vector<2x1xf32>
    %488 = vector.extract_strided_slice %483 {offsets = [8, 0], sizes = [2, 1], strides = [1, 1]} : vector<16x1xf32> to vector<2x1xf32>
    %489 = vector.extract_strided_slice %483 {offsets = [10, 0], sizes = [2, 1], strides = [1, 1]} : vector<16x1xf32> to vector<2x1xf32>
    %490 = vector.extract_strided_slice %483 {offsets = [12, 0], sizes = [2, 1], strides = [1, 1]} : vector<16x1xf32> to vector<2x1xf32>
    %491 = vector.extract_strided_slice %483 {offsets = [14, 0], sizes = [2, 1], strides = [1, 1]} : vector<16x1xf32> to vector<2x1xf32>
    %492 = tpu.concatenate %484, %485, %486, %487, %488, %489, %490, %491 in 1 : vector<2x1xf32>, vector<2x1xf32>, vector<2x1xf32>, vector<2x1xf32>, vector<2x1xf32>, vector<2x1xf32>, vector<2x1xf32>, vector<2x1xf32> -> vector<2x8xf32>
    %cst_155 = arith.constant dense<0xFF800000> : vector<2xf32>
    %493 = vector.multi_reduction <maximumf>, %492, %cst_155 [1] : vector<2x8xf32> to vector<2xf32>
    %494 = vector.shape_cast %493 : vector<2xf32> to vector<2x1xf32>
    %495 = vector.broadcast %494 : vector<2x1xf32> to vector<2x8xf32>
    %496 = arith.subf %492, %495 : vector<2x8xf32>
    %497 = math.exp %496 : vector<2x8xf32>
    %cst_156 = arith.constant dense<0.000000e+00> : vector<2xf32>
    %498 = vector.multi_reduction <add>, %497, %cst_156 [1] : vector<2x8xf32> to vector<2xf32>
    %499 = vector.shape_cast %498 : vector<2xf32> to vector<2x1xf32>
    %500 = vector.broadcast %499 : vector<2x1xf32> to vector<2x8xf32>
    %501 = arith.divf %497, %500 : vector<2x8xf32>
    %502 = vector.extract_strided_slice %501 {offsets = [0, 0], sizes = [2, 1], strides = [1, 1]} : vector<2x8xf32> to vector<2x1xf32>
    %503 = vector.extract_strided_slice %469 {offsets = [0, 0], sizes = [2, 64], strides = [1, 1]} : vector<16x64xf32> to vector<2x64xf32>
    %504 = vector.broadcast %502 : vector<2x1xf32> to vector<2x64xf32>
    %505 = arith.mulf %504, %503 : vector<2x64xf32>
    %506 = vector.extract_strided_slice %501 {offsets = [0, 1], sizes = [2, 1], strides = [1, 1]} : vector<2x8xf32> to vector<2x1xf32>
    %507 = vector.extract_strided_slice %469 {offsets = [2, 0], sizes = [2, 64], strides = [1, 1]} : vector<16x64xf32> to vector<2x64xf32>
    %508 = vector.broadcast %506 : vector<2x1xf32> to vector<2x64xf32>
    %509 = arith.mulf %508, %507 : vector<2x64xf32>
    %510 = arith.addf %505, %509 : vector<2x64xf32>
    %511 = vector.extract_strided_slice %501 {offsets = [0, 2], sizes = [2, 1], strides = [1, 1]} : vector<2x8xf32> to vector<2x1xf32>
    %512 = vector.extract_strided_slice %469 {offsets = [4, 0], sizes = [2, 64], strides = [1, 1]} : vector<16x64xf32> to vector<2x64xf32>
    %513 = vector.broadcast %511 : vector<2x1xf32> to vector<2x64xf32>
    %514 = arith.mulf %513, %512 : vector<2x64xf32>
    %515 = arith.addf %510, %514 : vector<2x64xf32>
    %516 = vector.extract_strided_slice %501 {offsets = [0, 3], sizes = [2, 1], strides = [1, 1]} : vector<2x8xf32> to vector<2x1xf32>
    %517 = vector.extract_strided_slice %469 {offsets = [6, 0], sizes = [2, 64], strides = [1, 1]} : vector<16x64xf32> to vector<2x64xf32>
    %518 = vector.broadcast %516 : vector<2x1xf32> to vector<2x64xf32>
    %519 = arith.mulf %518, %517 : vector<2x64xf32>
    %520 = arith.addf %515, %519 : vector<2x64xf32>
    %521 = vector.extract_strided_slice %501 {offsets = [0, 4], sizes = [2, 1], strides = [1, 1]} : vector<2x8xf32> to vector<2x1xf32>
    %522 = vector.extract_strided_slice %469 {offsets = [8, 0], sizes = [2, 64], strides = [1, 1]} : vector<16x64xf32> to vector<2x64xf32>
    %523 = vector.broadcast %521 : vector<2x1xf32> to vector<2x64xf32>
    %524 = arith.mulf %523, %522 : vector<2x64xf32>
    %525 = arith.addf %520, %524 : vector<2x64xf32>
    %526 = vector.extract_strided_slice %501 {offsets = [0, 5], sizes = [2, 1], strides = [1, 1]} : vector<2x8xf32> to vector<2x1xf32>
    %527 = vector.extract_strided_slice %469 {offsets = [10, 0], sizes = [2, 64], strides = [1, 1]} : vector<16x64xf32> to vector<2x64xf32>
    %528 = vector.broadcast %526 : vector<2x1xf32> to vector<2x64xf32>
    %529 = arith.mulf %528, %527 : vector<2x64xf32>
    %530 = arith.addf %525, %529 : vector<2x64xf32>
    %531 = vector.extract_strided_slice %501 {offsets = [0, 6], sizes = [2, 1], strides = [1, 1]} : vector<2x8xf32> to vector<2x1xf32>
    %532 = vector.extract_strided_slice %469 {offsets = [12, 0], sizes = [2, 64], strides = [1, 1]} : vector<16x64xf32> to vector<2x64xf32>
    %533 = vector.broadcast %531 : vector<2x1xf32> to vector<2x64xf32>
    %534 = arith.mulf %533, %532 : vector<2x64xf32>
    %535 = arith.addf %530, %534 : vector<2x64xf32>
    %536 = vector.extract_strided_slice %501 {offsets = [0, 7], sizes = [2, 1], strides = [1, 1]} : vector<2x8xf32> to vector<2x1xf32>
    %537 = vector.extract_strided_slice %469 {offsets = [14, 0], sizes = [2, 64], strides = [1, 1]} : vector<16x64xf32> to vector<2x64xf32>
    %538 = vector.broadcast %536 : vector<2x1xf32> to vector<2x64xf32>
    %539 = arith.mulf %538, %537 : vector<2x64xf32>
    %540 = arith.addf %535, %539 : vector<2x64xf32>
    %c0_157 = arith.constant 0 : index
    %c0_158 = arith.constant 0 : index
    %541 = vector.load %arg11[%c0_157, %c0_158] : memref<64x32xf32, #tpu.memory_space<vmem>>, vector<64x32xf32>
    %cst_159 = arith.constant dense<0.000000e+00> : vector<2x32xf32>
    %542 = tpu.matmul %540, %541, %cst_159 {dimension_numbers = #tpu.dot_dimension_numbers<[1], [0], [0], [1], [0, 0, 1, 1], [], []>} : vector<2x64xf32>, vector<64x32xf32>, vector<2x32xf32> -> vector<2x32xf32>
    %c0_160 = arith.constant 0 : index
    %c0_161 = arith.constant 0 : index
    %543 = vector.load %arg12[%c0_160, %c0_161] : memref<1x32xf32, #tpu.memory_space<vmem>>, vector<1x32xf32>
    %544 = vector.broadcast %543 : vector<1x32xf32> to vector<2x32xf32>
    %545 = arith.addf %542, %544 : vector<2x32xf32>
    %cst_162 = arith.constant 0.000000e+00 : f32
    %546 = vector.broadcast %cst_162 : f32 to vector<2x32xf32>
    %547 = arith.maximumf %545, %546 : vector<2x32xf32>
    %c0_163 = arith.constant 0 : index
    %c0_164 = arith.constant 0 : index
    %548 = vector.load %arg13[%c0_163, %c0_164] : memref<1x32xf32, #tpu.memory_space<vmem>>, vector<1x32xf32>
    %549 = vector.broadcast %548 : vector<1x32xf32> to vector<2x32xf32>
    %550 = arith.mulf %547, %549 : vector<2x32xf32>
    %cst_165 = arith.constant dense<0.000000e+00> : vector<2xf32>
    %551 = vector.multi_reduction <add>, %550, %cst_165 [1] : vector<2x32xf32> to vector<2xf32>
    %552 = vector.shape_cast %551 : vector<2xf32> to vector<2x1xf32>
    %c0_166 = arith.constant 0 : index
    %c0_167 = arith.constant 0 : index
    %553 = vector.load %arg14[%c0_166, %c0_167] : memref<1x1xf32, #tpu.memory_space<vmem>>, vector<1x1xf32>
    %554 = vector.broadcast %553 : vector<1x1xf32> to vector<2x1xf32>
    %555 = arith.addf %552, %554 : vector<2x1xf32>
    %c0_168 = arith.constant 0 : index
    %c0_169 = arith.constant 0 : index
    %556 = vector.load %arg15[%c0_168, %c0_169] : memref<2x1xf32, #tpu.memory_space<vmem>>, vector<2x1xf32>
    tpu.vector_store %arg15[%c0_168, %c0_169], %555 {strides = array<i32>} : memref<2x1xf32, #tpu.memory_space<vmem>>, vector<2x1xf32>,
    %c0_170 = arith.constant 0 : index
    %c0_171 = arith.constant 0 : index
    %557 = vector.load %arg16[%c0_170, %c0_171] : memref<2x8xf32, #tpu.memory_space<vmem>>, vector<2x8xf32>
    tpu.vector_store %arg16[%c0_170, %c0_171], %501 {strides = array<i32>} : memref<2x8xf32, #tpu.memory_space<vmem>>, vector<2x8xf32>,
    return
  }
}

</mosaic_0001>

<bundles_post_ra>
// kernel: attention_bilstm_forward.1
= control target key start
LH: loop header
LB: loop body
LE: loop exit
PB: predicated region body
PF: predicated region fallthrough
CT: control target
= control target key end

     0   :  { %s4154_s0 = inlined_call_operand.vmem [shape: f32[16,16], index: 0, kind: input, shape index: {}]   ;;  %s4155_s1 = inlined_call_operand.hbm [shape: f32[16,256], index: 1, kind: input, shape index: {}]   ;;  %s4156_s2 = inlined_call_operand.hbm [shape: f32[64,256], index: 2, kind: input, shape index: {}]   ;;  %s4157_s3 = inlined_call_operand.vmem [shape: f32[1,256], index: 3, kind: input, shape index: {}]   ;;  %s4158_s4 = inlined_call_operand.hbm [shape: f32[64,256], index: 4, kind: input, shape index: {}]   ;;  %s4159_s5 = inlined_call_operand.hbm [shape: f32[64,256], index: 5, kind: input, shape index: {}]   ;;  %s4160_s6 = inlined_call_operand.vmem [shape: f32[1,256], index: 6, kind: input, shape index: {}]   ;;  %s4161_s7 = inlined_call_operand.hbm [shape: f32[64,32], index: 7, kind: input, shape index: {}]   ;;  %s4162_s8 = inlined_call_operand.vmem [shape: f32[1,32], index: 8, kind: input, shape index: {}]   ;;  %s4163_s9 = inlined_call_operand.vmem [shape: f32[1,32], index: 9, kind: input, shape index: {}]   ;;  %s4164_s10 = inlined_call_operand.<no memory space> [shape: f32[1,1], index: 10, kind: input, shape index: {}]   ;;  %s4165_s11 = inlined_call_operand.vmem [shape: f32[64,32], index: 11, kind: input, shape index: {}]   ;;  %s4166_s12 = inlined_call_operand.vmem [shape: f32[1,32], index: 12, kind: input, shape index: {}]   ;;  %s4167_s13 = inlined_call_operand.vmem [shape: f32[1,32], index: 13, kind: input, shape index: {}]   ;;  %s4168_s15 = inlined_call_operand.vmem [shape: f32[2,1], index: 15, kind: output, shape index: {0}]   ;;  %s4169_s16 = inlined_call_operand.hbm [shape: f32[2,8], index: 16, kind: output, shape index: {1}]   ;;  %s4170_s14 = inlined_call_operand.<no memory space> [shape: f32[1,1], index: 14, kind: input, shape index: {}]  }
   0x1   :  { %4172 = sst [smem:[#allocation20_spill]] %s4154_s0  ;;  %v22_v0 = vstv %s4164_s10  ;;  %v24_v1 = vstv %s4170_s14 }
   0x2   :  { %23 = vst [vmem:[#allocation4] sm:$0x1] %v22_v0  ;;  %25 = vst [vmem:[#allocation5] sm:$0x1] %v24_v1 }
   0x3   :  { %26 = vsyncpa [#allocation7], 0 }
   0x4   :  { %27 = vsyncpa [#allocation10], 0 }
   0x5   :  { %28 = vsyncpa [#allocation13], 0 }
   0x6   :  { %29 = vsyncpa [#allocation8], 0  ;;  %s3427_s25 = smov [#allocation9]   ;;  %s3428_s27 = smov [#allocation12]  }
   0x7   :  { %s49_s26 = sshll.u32 %s3427_s25, 4  ;;  %s75_s28 = sshll.u32 %s3428_s27, 4  ;;  %s50_s26 = int_to_ptr.vmem [resolvable:$true] %s49_s26  ;;  %s3547_s28 = int_to_ptr.vmem [resolvable:$true] %s75_s28 }
   0x8   :  { %s3287_s10 = scalar_lea.hbm %s4156_s2, 2048 }
   0x9   :  { %p3288_p0 = scmp.ne.s32.totalorder %s4156_s2, %s3287_s10  ;;  %p3291_p1 = scmp.lt.u32.totalorder %s3287_s10, %s4156_s2 }
   0xb   :  { %p3293_p2 = pnand %p3291_p1, %p3288_p0 }
   0xd   :  { %3296 = shalt.err (!%p3293_p2)
}
   0xe   :  { %s3297_s19 = scalar_lea.vmem %s50_s26, 2048  ;;  %p3302_p4 = scmp.lt.s32.totalorder %s50_s26, %s50_s26 }
   0xf   :  { %p3298_p3 = scmp.ne.s32.totalorder %s50_s26, %s3297_s19  ;;  %p3303_p5 = scmp.lt.s32.totalorder %s3297_s19, %s3297_s19 }
  0x11   :  { %p3304_p6 = por %p3303_p5, %p3302_p4 }
  0x13   :  { %p3305_p7 = pnand %p3304_p6, %p3298_p3 }
  0x15   :  { %3308 = shalt.err (!%p3305_p7)
}
  0x16   :  { %s3429_s20 = smov 256   ;;  %s3430_s21 = smov 16  }
  0x17   :  { %55 = dma.hbm_to_vmem [thread:$0]  %s4156_s2, 2048, %s50_s26, [#allocation10], %s3429_s20, %s3429_s20, %s3430_s21  }
  0x18   :  { %s3309_s27 = scalar_lea.hbm %s4159_s5, 2048 }
  0x19   :  { %p3310_p8 = scmp.ne.s32.totalorder %s4159_s5, %s3309_s27  ;;  %p3313_p9 = scmp.lt.u32.totalorder %s3309_s27, %s4159_s5 }
  0x1b   :  { %p3315_p10 = pnand %p3313_p9, %p3310_p8 }
  0x1d   :  { %3318 = shalt.err (!%p3315_p10)
}
  0x1e   :  { %s3319_s17 = scalar_lea.vmem %s3547_s28, 2048  ;;  %p3324_p12 = scmp.lt.s32.totalorder %s3547_s28, %s3547_s28 }
  0x1f   :  { %p3320_p11 = scmp.ne.s32.totalorder %s3547_s28, %s3319_s17  ;;  %p3325_p13 = scmp.lt.s32.totalorder %s3319_s17, %s3319_s17 }
  0x21   :  { %p3326_p0 = por %p3325_p13, %p3324_p12 }
  0x23   :  { %p3327_p1 = pnand %p3326_p0, %p3320_p11 }
  0x25   :  { %3330 = shalt.err (!%p3327_p1)
}
  0x26   :  { %81 = dma.hbm_to_vmem [thread:$0]  %s4159_s5, 2048, %s3547_s28, [#allocation13], %s3429_s20, %s3429_s20, %s3430_s21  }
  0x27   :  { %s3431_s14 = smov [#allocation6]   ;;  %s3432_s19 = smov [#allocation11]  }
  0x28   :  { %s37_s18 = sshll.u32 %s3431_s14, 4  ;;  %s63_s22 = sshll.u32 %s3432_s19, 4  ;;  %s38_s18 = int_to_ptr.vmem [resolvable:$true] %s37_s18  ;;  %s3584_s22 = int_to_ptr.vmem [resolvable:$true] %s63_s22 }
  0x29   :  { %s3331_s25 = scalar_lea.hbm %s4155_s1, 512 }
  0x2a   :  { %p3332_p2 = scmp.ne.s32.totalorder %s4155_s1, %s3331_s25  ;;  %p3335_p3 = scmp.lt.u32.totalorder %s3331_s25, %s4155_s1 }
  0x2c   :  { %p3337_p4 = pnand %p3335_p3, %p3332_p2 }
  0x2e   :  { %3340 = shalt.err (!%p3337_p4)
}
  0x2f   :  { %s3341_s5 = scalar_lea.vmem %s38_s18, 512  ;;  %p3346_p6 = scmp.lt.s32.totalorder %s38_s18, %s38_s18 }
  0x30   :  { %p3342_p5 = scmp.ne.s32.totalorder %s38_s18, %s3341_s5  ;;  %p3347_p7 = scmp.lt.s32.totalorder %s3341_s5, %s3341_s5 }
  0x32   :  { %p3348_p8 = por %p3347_p7, %p3346_p6 }
  0x34   :  { %p3349_p9 = pnand %p3348_p8, %p3342_p5 }
  0x36   :  { %3352 = shalt.err (!%p3349_p9)
}
  0x37   :  { %43 = dma.hbm_to_vmem [thread:$0]  %s4155_s1, 512, %s38_s18, [#allocation7], %s3429_s20, %s3429_s20, %s3430_s21  }
  0x38   :  { %s3353_s26 = scalar_lea.hbm %s4158_s4, 2048 }
  0x39   :  { %p3354_p10 = scmp.ne.s32.totalorder %s4158_s4, %s3353_s26  ;;  %p3357_p11 = scmp.lt.u32.totalorder %s3353_s26, %s4158_s4 }
  0x3b   :  { %p3359_p12 = pnand %p3357_p11, %p3354_p10 }
  0x3d   :  { %3362 = shalt.err (!%p3359_p12)
}
  0x3e   :  { %s3363_s25 = scalar_lea.vmem %s3584_s22, 2048  ;;  %p3368_p0 = scmp.lt.s32.totalorder %s3584_s22, %s3584_s22 }
  0x3f   :  { %p3364_p13 = scmp.ne.s32.totalorder %s3584_s22, %s3363_s25  ;;  %p3369_p1 = scmp.lt.s32.totalorder %s3363_s25, %s3363_s25 }
  0x41   :  { %p3370_p2 = por %p3369_p1, %p3368_p0 }
  0x43   :  { %p3371_p3 = pnand %p3370_p2, %p3364_p13 }
  0x45   :  { %3374 = shalt.err (!%p3371_p3)
}
  0x46   :  { %69 = dma.hbm_to_vmem [thread:$0]  %s4158_s4, 2048, %s3584_s22, [#allocation10], %s3429_s20, %s3429_s20, %s3430_s21  }
  0x47   :  { %s3433_s27 = smov [#allocation14]   ;;  %s3375_s5 = scalar_lea.hbm %s4161_s7, 1024 }
  0x48   :  { %s89_s29 = sshll.u32 %s3433_s27, 4  ;;  %p3376_p4 = scmp.ne.s32.totalorder %s4161_s7, %s3375_s5  ;;  %s90_s29 = int_to_ptr.vmem [resolvable:$true] %s89_s29 }
  0x49   :  { %p3379_p5 = scmp.lt.u32.totalorder %s3375_s5, %s4161_s7 }
  0x4b   :  { %p3381_p6 = pnand %p3379_p5, %p3376_p4 }
  0x4d   :  { %3384 = shalt.err (!%p3381_p6)
}
  0x4e   :  { %s3385_s26 = scalar_lea.vmem %s90_s29, 1024  ;;  %p3390_p8 = scmp.lt.s32.totalorder %s90_s29, %s90_s29 }
  0x4f   :  { %p3386_p7 = scmp.ne.s32.totalorder %s90_s29, %s3385_s26  ;;  %p3391_p9 = scmp.lt.s32.totalorder %s3385_s26, %s3385_s26 }
  0x51   :  { %p3392_p10 = por %p3391_p9, %p3390_p8 }
  0x53   :  { %p3393_p11 = pnand %p3392_p10, %p3386_p7 }
  0x55   :  { %3396 = shalt.err (!%p3393_p11)
}
  0x56   :  { %s3434_s4 = smov 128   ;;  %s3435_s20 = smov 8  }
  0x57   :  { %95 = dma.hbm_to_vmem [thread:$0]  %s4161_s7, 1024, %s90_s29, [#allocation13], %s3434_s4, %s3434_s4, %s3435_s20  }
  0x58   :  { %3419 = dma.done.wait [#allocation7], 512  }
  0x59   :  { %3420 = vsyncadd [#allocation7], 4294966784 }
  0x5a   :  { %3421 = dma.done.wait [#allocation10], 4096  }
  0x5b   :  { %3422 = vsyncadd [#allocation10], 4294963200 }
  0x5c   :  { %3423 = dma.done.wait [#allocation13], 3072  }
  0x5d   :  { %3424 = vsyncadd [#allocation13], 4294964224  ;;  %v3436_v2 = vmov 0.0   ;;  %v157_v3 = vld [vmem:[#allocation6 + $0x8] sm:$0xff]  ;;  %v159_v4 = vld [vmem:[#allocation6 + $0x18] sm:$0xff]  ;;  %s4173_s19 = sld [smem:[#allocation20_spill]]  ;;  %v125_v35 = vlaneseq }
  0x5e   :  { %243 = vmatprep.mubr.f32.mxu0 %v3436_v2  ;;  %348 = vmatprep.mubr.f32.mxu1 %v3436_v2  ;;  %v257_v5 = vld [vmem:[#allocation9 + $0x8] sm:$0xff]  ;;  %v2777_v6 = vpack.c.bf16 %v159_v4, %v157_v3  ;;  %v259_v7 = vld [vmem:[#allocation9 + $0x18] sm:$0xff]  ;;  %v156_v8 = vld [vmem:[#allocation6] sm:$0xff]  ;;  %vm172_vm0 = vcmask 130048   ;;  %vm384_vm3 = vcmask 254976   ;;  %vm386_vm4 = vcmask 517376  }
  0x5f   :  { %v158_v9 = vld [vmem:[#allocation6 + $0x10] sm:$0xff]  ;;  %v3635_v10 = vpack.c.bf16 %v259_v7, %v257_v5  ;;  %v256_v12 = vld [vmem:[#allocation9] sm:$0xff]  ;;  %v261_v15 = vld [vmem:[#allocation9 + $0x28] sm:$0xff]  ;;  %v3689_v36 = vshrl.u32 %v125_v35, 7  ;;  %v126_v37 = vand.u32 127, %v125_v35  ;;  %vm280_vm5 = vcmask 523264  }
  0x60   :  { %v2779_v11 = vpack.c.bf16 %v158_v9, %v156_v8  ;;  %v258_v13 = vld [vmem:[#allocation9 + $0x10] sm:$0xff]  ;;  %2778 = vmatprep.subr.bf16.mxu0 %v2777_v6  ;;  %v263_v16 = vld [vmem:[#allocation9 + $0x38] sm:$0xff]  ;;  %v260_v17 = vld [vmem:[#allocation9 + $0x20] sm:$0xff]  ;;  %vm505_vm6 = vcmask 257026   ;;  %vm507_vm7 = vcmask 519426   ;;  %vm741_vm8 = vcmask 261126  }
  0x61   :  { %v3637_v14 = vpack.c.bf16 %v258_v13, %v256_v12  ;;  %2782 = vmatprep.subr.bf16.mxu1 %v3635_v10  ;;  %v3643_v19 = vpack.c.bf16 %v263_v16, %v261_v15  ;;  %v262_v20 = vld [vmem:[#allocation9 + $0x30] sm:$0xff]  ;;  %v265_v21 = vld [vmem:[#allocation9 + $0x48] sm:$0xff]  ;;  %v267_v23 = vld [vmem:[#allocation9 + $0x58] sm:$0xff]  ;;  %v164_v38 = vsub.s32 0, %v3689_v36  ;;  %v168_v40 = vsub.s32 1, %v3689_v36  ;;  %s3439_s5 = smov 5  }
  0x62   :  { %2780 = vmatpush1.bf16.msra.mxu0 %v2779_v11  ;;  %v3646_v22 = vpack.c.bf16 %v262_v20, %v260_v17  ;;  %v3650_v24 = vpack.c.bf16 %v267_v23, %v265_v21  ;;  %v264_v25 = vld [vmem:[#allocation9 + $0x40] sm:$0xff]  ;;  %v266_v26 = vld [vmem:[#allocation9 + $0x50] sm:$0xff]  ;;  %v269_v27 = vld [vmem:[#allocation9 + $0x68] sm:$0xff]  ;;  %v127_v41 = vadd.s32 128, %v126_v37  ;;  %v132_v44 = vand.u32 63, %v126_v37  ;;  %s3441_s28 = smov 1  }
  0x63   :  { %v154_v18 = vld [vmem:[%s4173_s19] sm:$0xff]  ;;  %2784 = vmatpush1.bf16.msra.mxu1 %v3637_v14  ;;  %2798 = vmatprep.subr.bf16.mxu0 %v3635_v10  ;;  %v155_v29 = vld [vmem:[%s4173_s19 + $0x8] sm:$0xff]  ;;  %v3659_v30 = vpack.c.bf16 %v266_v26, %v264_v25  ;;  %v270_v33 = vld [vmem:[#allocation9 + $0x70] sm:$0xff]  ;;  %vm743_vm9 = vcmask 523526   ;;  %vm623_vm10 = vcmask 259076   ;;  %vm625_vm11 = vcmask 521476  }
  0x64   :  { %2786 = vmatprep.subr.bf16.mxu1 %v3643_v19  ;;  %v271_v28 = vld [vmem:[#allocation9 + $0x78] sm:$0xff]  ;;  %v268_v32 = vld [vmem:[#allocation9 + $0x60] sm:$0xff]  ;;  %v139_v46 = vand.u32 63, %v127_v41  ;;  %vm3700_vm1 = vcmp.lt.s32.totalorder %v132_v44, 32  ;;  %vm2382_vm12 = vcmask 261120   ;;  %s3442_s0 = smov 6  }
  0x65   :  { %2645 = vmatmul.mubr.msk.f32.vlgmr.msra.gmra.mrb[0].mxu0 %vm172_vm0, %v154_v18  ;;  %v3663_v31 = vpack.c.bf16 %v271_v28, %v269_v27  ;;  %v3669_v34 = vpack.c.bf16 %v270_v33, %v268_v32  ;;  %v160_v39 = vld [vmem:[%s4157_s3] sm:$0x3]  ;;  %s3437_s3 = smov 64   ;;  %s3443_s17 = smov 3   ;;  %vm2427_vm13 = vcmask 7168   ;;  %vm2429_vm14 = vcmask 15360  }
  0x66   :  { %249 = vmatprep.mubr.f32.mxu0 %v3436_v2  ;;  %2800 = vmatpush1.bf16.msra.mxu0 %v3637_v14  ;;  %v165_v42 = vrot.slane %v160_v39, %v164_v38  ;;  %v169_v43 = vrot.slane %v160_v39, %v168_v40  ;;  %vm3704_vm2 = vcmp.lt.s32.totalorder %v139_v46, 32  ;;  %s3444_s2 = smov 7   ;;  %vm2431_vm15 = vcmask 23552  }
  0x67   :  { %2788 = vmatpush1.bf16.msra.mxu1 %v3646_v22  ;;  %2802 = vmatprep.subr.bf16.mxu0 %v3643_v19 }
  0x68   :  { %2790 = vmatprep.subr.bf16.mxu1 %v3650_v24 }
  0x69   :  { %2646 = vmatmul.mubr.msk.f32.gmra.mrb[2].mxu0 %vm172_vm0, %v155_v29  ;;  %vm2433_vm0 = vcmask 31744  }
  0x6a   :  { %2804 = vmatpush1.bf16.msra.mxu0 %v3646_v22  ;;  %460 = vmatprep.mubr.f32.mxu0 %v3436_v2 }
  0x6b   :  { %2792 = vmatpush1.bf16.msra.mxu1 %v3659_v30  ;;  %2806 = vmatprep.subr.bf16.mxu0 %v3650_v24 }
  0x6c   :  { %2794 = vmatprep.subr.bf16.mxu1 %v3663_v31 }
  0x6e   :  { %2808 = vmatpush1.bf16.msra.mxu0 %v3659_v30 }
  0x6f   :  { %2796 = vmatpush1.bf16.msra.mxu1 %v3669_v34  ;;  %2810 = vmatprep.subr.bf16.mxu0 %v3663_v31 }
  0x70   :  { %2814 = vmatprep.subr.bf16.mxu1 %v3635_v10 }
  0x72   :  { %349 = vmatmul.mubr.f32.vlgmr.msra.gmra.mrb[0].mxu1 %v3436_v2  ;;  %2812 = vmatpush1.bf16.msra.mxu0 %v3669_v34 }
  0x73   :  { %2816 = vmatpush1.bf16.msra.mxu1 %v3637_v14  ;;  %578 = vmatprep.mubr.f32.mxu1 %v3436_v2 }
  0x74   :  { %2818 = vmatprep.subr.bf16.mxu1 %v3643_v19  ;;  %2830 = vmatprep.subr.bf16.mxu0 %v3635_v10 }
  0x77   :  { %2820 = vmatpush1.bf16.msra.mxu1 %v3646_v22 }
  0x78   :  { %2822 = vmatprep.subr.bf16.mxu1 %v3650_v24 }
  0x7b   :  { %2824 = vmatpush1.bf16.msra.mxu1 %v3659_v30 }
  0x7c   :  { %2826 = vmatprep.subr.bf16.mxu1 %v3663_v31 }
  0x7f   :  { %2828 = vmatpush1.bf16.msra.mxu1 %v3669_v34 }
  0x80   :  { %2846 = vmatprep.subr.bf16.mxu1 %v3635_v10 }
 0x138   :  { %v245_v45 = vpop.f32.mrb[0].mxu0 }
 0x139   :  { %v246_v47 = vadd.f32 %v245_v45, %v165_v42  ;;  %v247_v48 = vpop.f32.mrb[1].mxu0 }
 0x13a   :  { %v248_v49 = vadd.f32 %v247_v48, %v169_v43 }
 0x13b   :  { %v747_v50 = vrot.slane %v246_v47, 6  ;;  %v863_v51 = vrot.slane %v246_v47, 2 }
 0x13c   :  { %v251_v53 = vpop.f32.mrb[2].mxu0  ;;  %v748_v54 = vrot.slane %v248_v49, 6  ;;  %v864_v55 = vrot.slane %v248_v49, 2 }
 0x13d   :  { %v252_v57 = vadd.f32 %v251_v53, %v165_v42  ;;  %v253_v58 = vpop.f32.mrb[3].mxu0 }
 0x13e   :  { %v254_v59 = vadd.f32 %v253_v58, %v169_v43 }
 0x13f   :  { %v274_v60 = vrot.slane %v252_v57, 6  ;;  %v388_v61 = vrot.slane %v252_v57, 2  ;;  %v3710_v62 = vsel %vm3700_vm1, %v252_v57, %v747_v50  ;;  %v3714_v63 = vsel %vm3700_vm1, %v252_v57, %v863_v51 }
 0x140   :  { %v275_v0 = vrot.slane %v254_v59, 6  ;;  %v389_v1 = vrot.slane %v254_v59, 2  ;;  %v3718_v3 = vsel %vm3704_vm2, %v254_v59, %v748_v54  ;;  %v3722_v4 = vsel %vm3704_vm2, %v254_v59, %v864_v55 }
 0x141   :  { %v3726_v5 = vsel %vm3700_vm1, %v246_v47, %v274_v60  ;;  %v3730_v6 = vsel %vm3700_vm1, %v246_v47, %v388_v61 }
 0x142   :  { %v3734_v7 = vsel %vm3704_vm2, %v248_v49, %v275_v0  ;;  %v3738_v8 = vsel %vm3704_vm2, %v248_v49, %v389_v1 }
 0x145   :  { %v350_v9 = vpop.f32.mrb[0].mxu1 }
 0x146   :  { %v355_v11 = vadd.f32 %v350_v9, %v3726_v5  ;;  %v352_v12 = vpop.f32.mrb[1].mxu1 }
 0x147   :  { %v356_v13 = vadd.f32 %v352_v12, %v3734_v7 }
 0x148   :  { %v2647_v15 = vmul.f32 -1.442695, %v355_v11 }
 0x149   :  { %v2648_v16 = vmul.f32 -1.442695, %v356_v13 }
 0x14a   :  { %3119 = vpow2.f32 %v2647_v15 }
 0x14b   :  { %3121 = vpow2.f32 %v2648_v16 }
 0x154   :  { %v3120_v17 = vpop.eup %3119 }
 0x155   :  { %v3122_v18 = vpop.eup %3121  ;;  %v363_v21 = vadd.f32 1.0, %v3120_v17 }
 0x156   :  { %v364_v20 = vadd.f32 1.0, %v3122_v18 }
 0x158   :  { %3123 = vrcp.f32 %v364_v20 }
 0x159   :  { %3125 = vrcp.f32 %v363_v21 }
 0x162   :  { %v3124_v23 = vpop.eup %3123 }
 0x163   :  { %v369_v25 = vmul.f32 2.0, %v3124_v23  ;;  %v3126_v27 = vpop.eup %3125 }
 0x164   :  { %v371_v29 = vmul.f32 0.0, %v3126_v27 }
 0x165   :  { %v2649_v26 = vadd.f32 -1.0, %v369_v25 }
 0x167   :  { %v372_v28 = vmul.f32 %v3126_v27, %v2649_v26 }
 0x169   :  { %374 = vrot.lane.b32.xlu0 %v372_v28, %s3437_s3 }
 0x1db   :  { %v375_v32 = vpop.permute.xlu0 %374 }
 0x1dc   :  { %v377_v33 = vadd.f32 %v375_v32, %v371_v29 }
 0x1de   :  { %3127 = vtanh.f32 %v377_v33  ;;  %v490_v54 = vrot.slane %v377_v33, 6 }
 0x1e8   :  { %v3128_v35 = vpop.eup %3127 }
 0x1e9   :  { %v379_v37 = vmul.f32 %v3128_v35, %v3124_v23 }
 0x1eb   :  { %381 = vrot.lane.b32.xlu0 %v379_v37, %s3437_s3 }
 0x25d   :  { %v382_v39 = vpop.permute.xlu0 %381 }
 0x25e   :  { %385 = vst.msk [vmem:[#allocation2] sm:$0x3] %vm384_vm3, %v382_v39  ;;  %2650 = vmatmul.mubr.msk.f32.vlgmr.msra.gmra.mrb[4].mxu0 %vm280_vm5, %v382_v39 }
 0x25f   :  { %387 = vst.msk [vmem:[#allocation2 + $0xe] sm:$0x3] %vm386_vm4, %v382_v39  ;;  %2832 = vmatpush1.bf16.msra.mxu0 %v3637_v14  ;;  %696 = vmatprep.mubr.f32.mxu0 %v3436_v2 }
 0x260   :  { %2834 = vmatprep.subr.bf16.mxu0 %v3643_v19 }
 0x263   :  { %2836 = vmatpush1.bf16.msra.mxu0 %v3646_v22 }
 0x264   :  { %2838 = vmatprep.subr.bf16.mxu0 %v3650_v24 }
 0x267   :  { %2840 = vmatpush1.bf16.msra.mxu0 %v3659_v30 }
 0x268   :  { %2842 = vmatprep.subr.bf16.mxu0 %v3663_v31 }
 0x26b   :  { %2844 = vmatpush1.bf16.msra.mxu0 %v3669_v34 }
 0x26c   :  { %2862 = vmatprep.subr.bf16.mxu0 %v3635_v10 }
 0x331   :  { %v462_v41 = vpop.f32.mrb[4].mxu0 }
 0x332   :  { %v469_v42 = vrot.slane %v462_v41, 6  ;;  %v464_v43 = vpop.f32.mrb[5].mxu0 }
 0x333   :  { %v470_v44 = vrot.slane %v464_v43, 6 }
 0x334   :  { %v473_v45 = vadd.f32 %v469_v42, %v3730_v6 }
 0x335   :  { %v474_v46 = vadd.f32 %v470_v44, %v3738_v8 }
 0x336   :  { %v2651_v47 = vmul.f32 -1.442695, %v473_v45 }
 0x337   :  { %v2652_v48 = vmul.f32 -1.442695, %v474_v46 }
 0x338   :  { %3129 = vpow2.f32 %v2651_v47 }
 0x339   :  { %3131 = vpow2.f32 %v2652_v48 }
 0x342   :  { %v3130_v49 = vpop.eup %3129 }
 0x343   :  { %v3132_v50 = vpop.eup %3131  ;;  %v481_v51 = vadd.f32 1.0, %v3130_v49 }
 0x344   :  { %v482_v53 = vadd.f32 1.0, %v3132_v50 }
 0x345   :  { %3133 = vrcp.f32 %v481_v51 }
 0x346   :  { %3135 = vrcp.f32 %v482_v53 }
 0x34f   :  { %v3134_v55 = vpop.eup %3133 }
 0x350   :  { %v3136_v57 = vpop.eup %3135  ;;  %v492_v58 = vmul.f32 %v3134_v55, %v490_v54 }
 0x351   :  { %v487_v59 = vmul.f32 2.0, %v3136_v57 }
 0x353   :  { %v2653_v60 = vadd.f32 -1.0, %v487_v59 }
 0x355   :  { %v493_v61 = vmul.f32 %v3134_v55, %v2653_v60 }
 0x357   :  { %495 = vrot.lane.b32.xlu1 %v493_v61, %s3437_s3 }
 0x3c9   :  { %v496_v0 = vpop.permute.xlu1 %495 }
 0x3ca   :  { %v498_v1 = vadd.f32 %v496_v0, %v492_v58 }
 0x3cc   :  { %3137 = vtanh.f32 %v498_v1  ;;  %v608_v32 = vrot.slane %v498_v1, 6 }
 0x3d6   :  { %v3138_v9 = vpop.eup %3137 }
 0x3d7   :  { %v3759_v11 = vmul.f32 %v3138_v9, %v3136_v57 }
 0x3d9   :  { %v509_v12 = vrot.slane %v3759_v11, 2 }
 0x3db   :  { %510 = vrot.lane.b32.xlu1 %v509_v12, %s3437_s3 }
 0x44d   :  { %v511_v13 = vpop.permute.xlu1 %510 }
 0x44e   :  { %2654 = vmatmul.mubr.msk.f32.vlgmr.msra.gmra.mrb[2].mxu1 %vm280_vm5, %v511_v13 }
 0x44f   :  { %2848 = vmatpush1.bf16.msra.mxu1 %v3637_v14  ;;  %822 = vmatprep.mubr.f32.mxu1 %v3436_v2 }
 0x450   :  { %2850 = vmatprep.subr.bf16.mxu1 %v3643_v19 }
 0x453   :  { %2852 = vmatpush1.bf16.msra.mxu1 %v3646_v22 }
 0x454   :  { %2854 = vmatprep.subr.bf16.mxu1 %v3650_v24 }
 0x457   :  { %2856 = vmatpush1.bf16.msra.mxu1 %v3659_v30 }
 0x458   :  { %2858 = vmatprep.subr.bf16.mxu1 %v3663_v31 }
 0x45b   :  { %2860 = vmatpush1.bf16.msra.mxu1 %v3669_v34 }
 0x45c   :  { %2878 = vmatprep.subr.bf16.mxu1 %v3635_v10 }
 0x521   :  { %v580_v15 = vpop.f32.mrb[2].mxu1 }
 0x522   :  { %v587_v16 = vrot.slane %v580_v15, 4  ;;  %v582_v17 = vpop.f32.mrb[3].mxu1 }
 0x523   :  { %v588_v18 = vrot.slane %v582_v17, 4 }
 0x524   :  { %v591_v20 = vadd.f32 %v587_v16, %v3726_v5 }
 0x525   :  { %v592_v21 = vadd.f32 %v588_v18, %v3734_v7 }
 0x526   :  { %v2655_v23 = vmul.f32 -1.442695, %v591_v20 }
 0x527   :  { %v2656_v25 = vmul.f32 -1.442695, %v592_v21 }
 0x528   :  { %3139 = vpow2.f32 %v2655_v23 }
 0x529   :  { %3141 = vpow2.f32 %v2656_v25 }
 0x532   :  { %v3140_v26 = vpop.eup %3139 }
 0x533   :  { %v3142_v27 = vpop.eup %3141  ;;  %v599_v28 = vadd.f32 1.0, %v3140_v26 }
 0x534   :  { %v600_v29 = vadd.f32 1.0, %v3142_v27 }
 0x535   :  { %3143 = vrcp.f32 %v599_v28 }
 0x536   :  { %3145 = vrcp.f32 %v600_v29 }
 0x53f   :  { %v3144_v33 = vpop.eup %3143 }
 0x540   :  { %v3146_v35 = vpop.eup %3145  ;;  %v610_v37 = vmul.f32 %v3144_v33, %v608_v32 }
 0x541   :  { %v605_v39 = vmul.f32 2.0, %v3146_v35 }
 0x543   :  { %v2657_v41 = vadd.f32 -1.0, %v605_v39 }
 0x545   :  { %v611_v42 = vmul.f32 %v3144_v33, %v2657_v41 }
 0x547   :  { %613 = vrot.lane.b32.xlu0 %v611_v42, %s3437_s3 }
 0x5b9   :  { %v614_v5 = vpop.permute.xlu0 %613 }
 0x5ba   :  { %v616_v7 = vadd.f32 %v614_v5, %v610_v37 }
 0x5bc   :  { %3147 = vtanh.f32 %v616_v7  ;;  %v726_v61 = vrot.slane %v616_v7, 6 }
 0x5c6   :  { %v3148_v43 = vpop.eup %3147 }
 0x5c7   :  { %v3776_v44 = vmul.f32 %v3148_v43, %v3146_v35 }
 0x5c9   :  { %v627_v45 = vrot.slane %v3776_v44, 4 }
 0x5cb   :  { %628 = vrot.lane.b32.xlu1 %v627_v45, %s3437_s3 }
 0x63d   :  { %v629_v46 = vpop.permute.xlu1 %628 }
 0x63e   :  { %2658 = vmatmul.mubr.msk.f32.vlgmr.msra.gmra.mrb[6].mxu0 %vm280_vm5, %v629_v46 }
 0x63f   :  { %2864 = vmatpush1.bf16.msra.mxu0 %v3637_v14  ;;  %935 = vmatprep.mubr.f32.mxu0 %v3436_v2 }
 0x640   :  { %2866 = vmatprep.subr.bf16.mxu0 %v3643_v19 }
 0x643   :  { %2868 = vmatpush1.bf16.msra.mxu0 %v3646_v22 }
 0x644   :  { %2870 = vmatprep.subr.bf16.mxu0 %v3650_v24 }
 0x647   :  { %2872 = vmatpush1.bf16.msra.mxu0 %v3659_v30 }
 0x648   :  { %2874 = vmatprep.subr.bf16.mxu0 %v3663_v31 }
 0x64b   :  { %2876 = vmatpush1.bf16.msra.mxu0 %v3669_v34 }
 0x64c   :  { %2894 = vmatprep.subr.bf16.mxu0 %v3635_v10 }
 0x711   :  { %v698_v47 = vpop.f32.mrb[6].mxu0 }
 0x712   :  { %v705_v48 = vrot.slane %v698_v47, 2  ;;  %v700_v49 = vpop.f32.mrb[7].mxu0 }
 0x713   :  { %v706_v50 = vrot.slane %v700_v49, 2 }
 0x714   :  { %v709_v51 = vadd.f32 %v705_v48, %v3730_v6 }
 0x715   :  { %v710_v53 = vadd.f32 %v706_v50, %v3738_v8 }
 0x716   :  { %v2659_v54 = vmul.f32 -1.442695, %v709_v51 }
 0x717   :  { %v2660_v55 = vmul.f32 -1.442695, %v710_v53 }
 0x718   :  { %3149 = vpow2.f32 %v2659_v54 }
 0x719   :  { %3151 = vpow2.f32 %v2660_v55 }
 0x722   :  { %v3150_v57 = vpop.eup %3149 }
 0x723   :  { %v3152_v58 = vpop.eup %3151  ;;  %v717_v59 = vadd.f32 1.0, %v3150_v57 }
 0x724   :  { %v718_v60 = vadd.f32 1.0, %v3152_v58 }
 0x725   :  { %3153 = vrcp.f32 %v717_v59 }
 0x726   :  { %3155 = vrcp.f32 %v718_v60 }
 0x72f   :  { %v3154_v10 = vpop.eup %3153 }
 0x730   :  { %v3156_v0 = vpop.eup %3155  ;;  %v728_v1 = vmul.f32 %v3154_v10, %v726_v61 }
 0x731   :  { %v723_v9 = vmul.f32 2.0, %v3156_v0 }
 0x733   :  { %v2661_v12 = vadd.f32 -1.0, %v723_v9 }
 0x735   :  { %v729_v13 = vmul.f32 %v3154_v10, %v2661_v12 }
 0x737   :  { %731 = vrot.lane.b32.xlu0 %v729_v13, %s3437_s3 }
 0x7a9   :  { %v732_v6 = vpop.permute.xlu0 %731 }
 0x7aa   :  { %v734_v8 = vadd.f32 %v732_v6, %v728_v1 }
 0x7ac   :  { %3157 = vtanh.f32 %v734_v8  ;;  %v846_v35 = vrot.slane %v734_v8, 6 }
 0x7b6   :  { %v3158_v15 = vpop.eup %3157 }
 0x7b7   :  { %v3793_v16 = vmul.f32 %v3158_v15, %v3156_v0 }
 0x7b9   :  { %v753_v17 = vrot.slane %v3793_v16, 6 }
 0x7bb   :  { %754 = vrot.lane.b32.xlu1 %v753_v17, %s3437_s3 }
 0x82d   :  { %v755_v18 = vpop.permute.xlu1 %754 }
 0x82e   :  { %2662 = vmatmul.mubr.msk.f32.vlgmr.msra.gmra.mrb[4].mxu1 %vm280_vm5, %v755_v18 }
 0x82f   :  { %2880 = vmatpush1.bf16.msra.mxu1 %v3637_v14  ;;  %1051 = vmatprep.mubr.f32.mxu1 %v3436_v2 }
 0x830   :  { %2882 = vmatprep.subr.bf16.mxu1 %v3643_v19 }
 0x833   :  { %2884 = vmatpush1.bf16.msra.mxu1 %v3646_v22 }
 0x834   :  { %2886 = vmatprep.subr.bf16.mxu1 %v3650_v24 }
 0x837   :  { %2888 = vmatpush1.bf16.msra.mxu1 %v3659_v30 }
 0x838   :  { %2890 = vmatprep.subr.bf16.mxu1 %v3663_v31 }
 0x83b   :  { %2892 = vmatpush1.bf16.msra.mxu1 %v3669_v34 }
 0x901   :  { %v824_v20 = vpop.f32.mrb[4].mxu1 }
 0x902   :  { %v829_v21 = vadd.f32 %v824_v20, %v3710_v62  ;;  %v826_v23 = vpop.f32.mrb[5].mxu1 }
 0x903   :  { %v830_v25 = vadd.f32 %v826_v23, %v3718_v3 }
 0x904   :  { %v2663_v26 = vmul.f32 -1.442695, %v829_v21 }
 0x905   :  { %v2664_v27 = vmul.f32 -1.442695, %v830_v25 }
 0x906   :  { %3159 = vpow2.f32 %v2663_v26 }
 0x907   :  { %3161 = vpow2.f32 %v2664_v27 }
 0x910   :  { %v3160_v28 = vpop.eup %3159 }
 0x911   :  { %v3162_v29 = vpop.eup %3161  ;;  %v837_v32 = vadd.f32 1.0, %v3160_v28 }
 0x912   :  { %v838_v33 = vadd.f32 1.0, %v3162_v29 }
 0x913   :  { %3163 = vrcp.f32 %v837_v32 }
 0x914   :  { %3165 = vrcp.f32 %v838_v33 }
 0x91d   :  { %v3164_v37 = vpop.eup %3163 }
 0x91e   :  { %v3166_v39 = vpop.eup %3165  ;;  %v848_v41 = vmul.f32 %v3164_v37, %v846_v35 }
 0x91f   :  { %v843_v42 = vmul.f32 2.0, %v3166_v39 }
 0x921   :  { %v2665_v5 = vadd.f32 -1.0, %v843_v42 }
 0x923   :  { %v849_v7 = vmul.f32 %v3164_v37, %v2665_v5 }
 0x925   :  { %851 = vrot.lane.b32.xlu0 %v849_v7, %s3437_s3 }
 0x997   :  { %v852_v43 = vpop.permute.xlu0 %851 }
 0x998   :  { %v854_v45 = vadd.f32 %v852_v43, %v848_v41 }
 0x99a   :  { %3167 = vtanh.f32 %v854_v45 }
 0x9a4   :  { %v3168_v46 = vpop.eup %3167 }
 0x9a5   :  { %v856_v47 = vmul.f32 %v3168_v46, %v3166_v39 }
 0x9a7   :  { %858 = vrot.lane.b32.xlu1 %v856_v47, %s3437_s3 }
 0xa19   :  { %v3810_v48 = vpop.permute.xlu1 %858 }
 0xa1a   :  { %2666 = vmatmul.mubr.msk.f32.vlgmr.msra.gmra.mrb[8].mxu0 %vm280_vm5, %v3810_v48 }
 0xa1b   :  { %2896 = vmatpush1.bf16.msra.mxu0 %v3637_v14  ;;  %1167 = vmatprep.mubr.f32.mxu0 %v3436_v2 }
 0xa1c   :  { %2898 = vmatprep.subr.bf16.mxu0 %v3643_v19 }
 0xa1f   :  { %2900 = vmatpush1.bf16.msra.mxu0 %v3646_v22 }
 0xa20   :  { %2902 = vmatprep.subr.bf16.mxu0 %v3650_v24 }
 0xa23   :  { %2904 = vmatpush1.bf16.msra.mxu0 %v3659_v30 }
 0xa24   :  { %2906 = vmatprep.subr.bf16.mxu0 %v3663_v31  ;;  %v965_v31 = vrot.slane %v854_v45, 6 }
 0xa27   :  { %2908 = vmatpush1.bf16.msra.mxu0 %v3669_v34 }
 0xaed   :  { %v937_v49 = vpop.f32.mrb[8].mxu0 }
 0xaee   :  { %v944_v50 = vrot.slane %v937_v49, 6  ;;  %v939_v51 = vpop.f32.mrb[9].mxu0 }
 0xaef   :  { %v945_v53 = vrot.slane %v939_v51, 6 }
 0xaf0   :  { %v948_v14 = vadd.f32 %v944_v50, %v3714_v63 }
 0xaf1   :  { %v949_v54 = vadd.f32 %v945_v53, %v3722_v4 }
 0xaf2   :  { %v2667_v55 = vmul.f32 -1.442695, %v948_v14 }
 0xaf3   :  { %v2668_v19 = vmul.f32 -1.442695, %v949_v54 }
 0xaf4   :  { %3169 = vpow2.f32 %v2667_v55 }
 0xaf5   :  { %3171 = vpow2.f32 %v2668_v19 }
 0xafe   :  { %v3170_v22 = vpop.eup %3169 }
 0xaff   :  { %v3172_v24 = vpop.eup %3171  ;;  %v956_v57 = vadd.f32 1.0, %v3170_v22 }
 0xb00   :  { %v957_v30 = vadd.f32 1.0, %v3172_v24 }
 0xb01   :  { %3173 = vrcp.f32 %v956_v57 }
 0xb02   :  { %3175 = vrcp.f32 %v957_v30 }
 0xb0b   :  { %v3174_v34 = vpop.eup %3173 }
 0xb0c   :  { %v3176_v58 = vpop.eup %3175  ;;  %v967_v59 = vmul.f32 %v3174_v34, %v965_v31 }
 0xb0d   :  { %v962_v60 = vmul.f32 2.0, %v3176_v58 }
 0xb0f   :  { %v2669_v61 = vadd.f32 -1.0, %v962_v60  ;;  %v1219_v60 = vld [vmem:[#allocation11 + $0x18] sm:$0xff] }
 0xb11   :  { %v968_v10 = vmul.f32 %v3174_v34, %v2669_v61  ;;  %v1216_v61 = vld [vmem:[#allocation11] sm:$0xff] }
 0xb13   :  { %970 = vrot.lane.b32.xlu0 %v968_v10, %s3437_s3 }
 0xb85   :  { %v971_v0 = vpop.permute.xlu0 %970 }
 0xb86   :  { %v973_v1 = vadd.f32 %v971_v0, %v967_v59  ;;  %v1218_v0 = vld [vmem:[#allocation11 + $0x10] sm:$0xff] }
 0xb88   :  { %3177 = vtanh.f32 %v973_v1  ;;  %v1081_v32 = vrot.slane %v973_v1, 6  ;;  %v1221_v1 = vld [vmem:[#allocation11 + $0x28] sm:$0xff] }
 0xb92   :  { %v3178_v9 = vpop.eup %3177 }
 0xb93   :  { %v3825_v12 = vmul.f32 %v3178_v9, %v3176_v58  ;;  %v1223_v9 = vld [vmem:[#allocation11 + $0x38] sm:$0xff] }
 0xb95   :  { %v982_v13 = vrot.slane %v3825_v12, 2 }
 0xb97   :  { %983 = vrot.lane.b32.xlu1 %v982_v13, %s3437_s3  ;;  %v2911_v13 = vpack.c.bf16 %v1218_v0, %v1216_v61 }
 0xc09   :  { %v984_v6 = vpop.permute.xlu1 %983 }
 0xc0a   :  { %2670 = vmatmul.mubr.msk.f32.vlgmr.msra.gmra.mrb[6].mxu1 %vm280_vm5, %v984_v6  ;;  %v2913_v6 = vpack.c.bf16 %v1223_v9, %v1221_v1 }
 0xc0b   :  { %1314 = vmatprep.mubr.f32.mxu1 %v3436_v2 }
 0xcdd   :  { %v1053_v8 = vpop.f32.mrb[6].mxu1 }
 0xcde   :  { %v1060_v15 = vrot.slane %v1053_v8, 4  ;;  %v1055_v17 = vpop.f32.mrb[7].mxu1  ;;  %v1220_v8 = vld [vmem:[#allocation11 + $0x20] sm:$0xff] }
 0xcdf   :  { %v1061_v18 = vrot.slane %v1055_v17, 4 }
 0xce0   :  { %v1064_v20 = vadd.f32 %v1060_v15, %v3710_v62  ;;  %v1222_v15 = vld [vmem:[#allocation11 + $0x30] sm:$0xff] }
 0xce1   :  { %v1065_v21 = vadd.f32 %v1061_v18, %v3718_v3  ;;  %v2915_v17 = vpack.c.bf16 %v1222_v15, %v1220_v8 }
 0xce2   :  { %v2671_v23 = vmul.f32 -1.442695, %v1064_v20  ;;  %v1225_v20 = vld [vmem:[#allocation11 + $0x48] sm:$0xff] }
 0xce3   :  { %v2672_v25 = vmul.f32 -1.442695, %v1065_v21  ;;  %v1227_v21 = vld [vmem:[#allocation11 + $0x58] sm:$0xff] }
 0xce4   :  { %3179 = vpow2.f32 %v2671_v23  ;;  %v1328_v23 = vld [vmem:[#allocation12 + $0x8] sm:$0xff] }
 0xce5   :  { %3181 = vpow2.f32 %v2672_v25 }
 0xcee   :  { %v3180_v26 = vpop.eup %3179 }
 0xcef   :  { %v3182_v27 = vpop.eup %3181  ;;  %v1072_v28 = vadd.f32 1.0, %v3180_v26  ;;  %v2917_v26 = vpack.c.bf16 %v1227_v21, %v1225_v20 }
 0xcf0   :  { %v1073_v29 = vadd.f32 1.0, %v3182_v27  ;;  %v1330_v27 = vld [vmem:[#allocation12 + $0x18] sm:$0xff] }
 0xcf1   :  { %3183 = vrcp.f32 %v1072_v28  ;;  %v1226_v28 = vld [vmem:[#allocation11 + $0x50] sm:$0xff] }
 0xcf2   :  { %3185 = vrcp.f32 %v1073_v29  ;;  %v3862_v29 = vpack.c.bf16 %v1330_v27, %v1328_v23 }
 0xcf4   :  { %2926 = vmatprep.subr.bf16.mxu0 %v3862_v29 }
 0xcfb   :  { %v3184_v33 = vpop.eup %3183 }
 0xcfc   :  { %v3186_v35 = vpop.eup %3185  ;;  %v1083_v37 = vmul.f32 %v3184_v33, %v1081_v32 }
 0xcfd   :  { %v1078_v39 = vmul.f32 2.0, %v3186_v35 }
 0xcff   :  { %v2673_v41 = vadd.f32 -1.0, %v1078_v39  ;;  %v1231_v39 = vld [vmem:[#allocation11 + $0x78] sm:$0xff] }
 0xd01   :  { %v1084_v42 = vmul.f32 %v3184_v33, %v2673_v41  ;;  %v1327_v33 = vld [vmem:[#allocation12] sm:$0xff]  ;;  %v1332_v41 = vld [vmem:[#allocation12 + $0x28] sm:$0xff] }
 0xd03   :  { %1086 = vrot.lane.b32.xlu0 %v1084_v42, %s3437_s3 }
 0xd75   :  { %v1087_v62 = vpop.permute.xlu0 %1086 }
 0xd76   :  { %v1089_v3 = vadd.f32 %v1087_v62, %v1083_v37 }
 0xd78   :  { %3187 = vtanh.f32 %v1089_v3  ;;  %v1197_v57 = vrot.slane %v1089_v3, 6  ;;  %v1334_v3 = vld [vmem:[#allocation12 + $0x38] sm:$0xff] }
 0xd82   :  { %v3188_v5 = vpop.eup %3187 }
 0xd83   :  { %v1091_v7 = vmul.f32 %v3188_v5, %v3186_v35  ;;  %v1329_v35 = vld [vmem:[#allocation12 + $0x10] sm:$0xff]  ;;  %v1228_v5 = vld [vmem:[#allocation11 + $0x60] sm:$0xff] }
 0xd84   :  { %v3864_v37 = vpack.c.bf16 %v1329_v35, %v1327_v33 }
 0xd85   :  { %v1098_v43 = vrot.slane %v1091_v7, 4 }
 0xd87   :  { %1099 = vrot.lane.b32.xlu1 %v1098_v43, %s3437_s3  ;;  %v3870_v43 = vpack.c.bf16 %v1334_v3, %v1332_v41 }
 0xd8b   :  { %502 = vrot.lane.b32.xlu1 %v3759_v11, %s3437_s3 }
 0xd8f   :  { %738 = vrot.lane.b32.xlu1 %v3793_v16, %s3437_s3 }
 0xd93   :  { %1093 = vrot.lane.b32.xlu1 %v1091_v7, %s3437_s3  ;;  %v1230_v7 = vld [vmem:[#allocation11 + $0x70] sm:$0xff] }
 0xdf9   :  { %v1100_v45 = vpop.permute.xlu1 %1099 }
 0xdfa   :  { %2674 = vmatmul.mubr.msk.f32.vlgmr.msra.gmra.mrb[10].mxu0 %vm280_vm5, %v1100_v45  ;;  %v2923_v45 = vpack.c.bf16 %v1230_v7, %v1228_v5 }
 0xdfb   :  { %1415 = vmatprep.mubr.f32.mxu0 %v3436_v2  ;;  %2928 = vmatpush1.bf16.msra.mxu0 %v3864_v37 }
 0xdfc   :  { %2930 = vmatprep.subr.bf16.mxu0 %v3870_v43 }
 0xdfd   :  { %v503_v46 = vpop.permute.xlu1 %502 }
 0xdfe   :  { %506 = vst.msk [vmem:[#allocation2] sm:$0xc] %vm505_vm6, %v503_v46 }
 0xdff   :  { %508 = vst.msk [vmem:[#allocation2 + $0xa] sm:$0xc] %vm507_vm7, %v503_v46  ;;  %v1331_v46 = vld [vmem:[#allocation12 + $0x20] sm:$0xff] }
 0xe01   :  { %v739_v11 = vpop.permute.xlu1 %738 }
 0xe02   :  { %742 = vst.msk [vmem:[#allocation2] sm:$0xc0] %vm741_vm8, %v739_v11 }
 0xe03   :  { %744 = vst.msk [vmem:[#allocation2 + $0x2] sm:$0xc0] %vm743_vm9, %v739_v11  ;;  %v1333_v11 = vld [vmem:[#allocation12 + $0x30] sm:$0xff] }
 0xe04   :  { %861 = vst.msk [vmem:[#allocation2 + $0x8] sm:$0x3] %vm384_vm3, %v3810_v48 }
 0xe05   :  { %862 = vst.msk [vmem:[#allocation2 + $0x6] sm:$0x3] %vm386_vm4, %v3810_v48  ;;  %v1094_v16 = vpop.permute.xlu1 %1093 }
 0xe06   :  { %1096 = vst.msk [vmem:[#allocation2 + $0x8] sm:$0x30] %vm623_vm10, %v1094_v16 }
 0xe07   :  { %1097 = vst.msk [vmem:[#allocation2 - $0x2] sm:$0x30] %vm625_vm11, %v1094_v16  ;;  %v3872_v16 = vpack.c.bf16 %v1333_v11, %v1331_v46 }
 0xe09   :  { %2932 = vmatpush1.bf16.msra.mxu0 %v3872_v16 }
 0xecd   :  { %v1169_v47 = vpop.f32.mrb[10].mxu0 }
 0xece   :  { %v1176_v49 = vrot.slane %v1169_v47, 2  ;;  %v1171_v50 = vpop.f32.mrb[11].mxu0 }
 0xecf   :  { %v1177_v51 = vrot.slane %v1171_v50, 2  ;;  %v1338_v50 = vld [vmem:[#allocation12 + $0x58] sm:$0xff] }
 0xed0   :  { %v1180_v53 = vadd.f32 %v1176_v49, %v3714_v63  ;;  %v1336_v49 = vld [vmem:[#allocation12 + $0x48] sm:$0xff] }
 0xed1   :  { %v1181_v14 = vadd.f32 %v1177_v51, %v3722_v4  ;;  %v1217_v4 = vld [vmem:[#allocation11 + $0x8] sm:$0xff]  ;;  %v3878_v51 = vpack.c.bf16 %v1338_v50, %v1336_v49 }
 0xed2   :  { %v2675_v54 = vmul.f32 -1.442695, %v1180_v53  ;;  %v2909_v10 = vpack.c.bf16 %v1219_v60, %v1217_v4  ;;  %v1335_v53 = vld [vmem:[#allocation12 + $0x40] sm:$0xff]  ;;  %v1232_v60 = vld [vmem:[%s4160_s6] sm:$0x3] }
 0xed3   :  { %v2676_v55 = vmul.f32 -1.442695, %v1181_v14  ;;  %v1337_v14 = vld [vmem:[#allocation12 + $0x50] sm:$0xff]  ;;  %2934 = vmatprep.subr.bf16.mxu0 %v3878_v51  ;;  %v1237_v61 = vrot.slane %v1232_v60, %v164_v38 }
 0xed4   :  { %3189 = vpow2.f32 %v2675_v54  ;;  %2910 = vmatprep.subr.bf16.mxu1 %v2909_v10  ;;  %v3881_v54 = vpack.c.bf16 %v1337_v14, %v1335_v53  ;;  %v1241_v10 = vrot.slane %v1232_v60, %v168_v40 }
 0xed5   :  { %3191 = vpow2.f32 %v2676_v55  ;;  %2912 = vmatpush1.bf16.msra.mxu1 %v2911_v13  ;;  %v1340_v55 = vld [vmem:[#allocation12 + $0x68] sm:$0xff] }
 0xed6   :  { %2914 = vmatprep.subr.bf16.mxu1 %v2913_v6  ;;  %2936 = vmatpush1.bf16.msra.mxu0 %v3881_v54 }
 0xed9   :  { %2916 = vmatpush1.bf16.msra.mxu1 %v2915_v17 }
 0xeda   :  { %2918 = vmatprep.subr.bf16.mxu1 %v2917_v26 }
 0xede   :  { %v3190_v48 = vpop.eup %3189 }
 0xedf   :  { %v3192_v19 = vpop.eup %3191  ;;  %v1188_v22 = vadd.f32 1.0, %v3190_v48  ;;  %v1342_v48 = vld [vmem:[#allocation12 + $0x78] sm:$0xff] }
 0xee0   :  { %v1189_v24 = vadd.f32 1.0, %v3192_v19 }
 0xee1   :  { %3193 = vrcp.f32 %v1188_v22  ;;  %v3885_v22 = vpack.c.bf16 %v1342_v48, %v1340_v55 }
 0xee2   :  { %3195 = vrcp.f32 %v1189_v24  ;;  %v1339_v24 = vld [vmem:[#allocation12 + $0x60] sm:$0xff] }
 0xee3   :  { %2938 = vmatprep.subr.bf16.mxu0 %v3885_v22 }
 0xeeb   :  { %v3194_v30 = vpop.eup %3193 }
 0xeec   :  { %v3854_v31 = vpop.eup %3195  ;;  %v1199_v34 = vmul.f32 %v3194_v30, %v1197_v57  ;;  %v1341_v57 = vld [vmem:[#allocation12 + $0x70] sm:$0xff] }
 0xeed   :  { %v1194_v58 = vmul.f32 2.0, %v3854_v31 }
 0xeef   :  { %v2677_v63 = vadd.f32 -1.0, %v1194_v58 }
 0xef1   :  { %v1200_v59 = vmul.f32 %v3194_v30, %v2677_v63 }
 0xef3   :  { %1202 = vrot.lane.b32.xlu0 %v1200_v59, %s3437_s3 }
 0xef7   :  { %620 = vrot.lane.b32.xlu0 %v3776_v44, %s3437_s3  ;;  %v1224_v44 = vld [vmem:[#allocation11 + $0x40] sm:$0xff] }
 0xef8   :  { %v2919_v32 = vpack.c.bf16 %v1226_v28, %v1224_v44 }
 0xefa   :  { %2920 = vmatpush1.bf16.msra.mxu1 %v2919_v32 }
 0xefb   :  { %977 = vrot.lane.b32.xlu0 %v3825_v12, %s3437_s3  ;;  %v1229_v12 = vld [vmem:[#allocation11 + $0x68] sm:$0xff] }
 0xefc   :  { %v2921_v62 = vpack.c.bf16 %v1231_v39, %v1229_v12 }
 0xefe   :  { %2922 = vmatprep.subr.bf16.mxu1 %v2921_v62 }
 0xeff   :  { %2924 = vmatpush1.bf16.msra.mxu1 %v2923_v45 }
 0xf00   :  { %2942 = vmatprep.subr.bf16.mxu1 %v3862_v29 }
 0xf65   :  { %v1203_v18 = vpop.permute.xlu0 %1202 }
 0xf66   :  { %v1205_v25 = vadd.f32 %v1203_v18, %v1199_v34  ;;  %v3888_v34 = vpack.c.bf16 %v1341_v57, %v1339_v24 }
 0xf68   :  { %3197 = vtanh.f32 %v1205_v25  ;;  %2940 = vmatpush1.bf16.msra.mxu0 %v3888_v34 }
 0xf69   :  { %v621_v42 = vpop.permute.xlu0 %620  ;;  %2958 = vmatprep.subr.bf16.mxu0 %v3862_v29 }
 0xf6a   :  { %624 = vst.msk [vmem:[#allocation2] sm:$0x30] %vm623_vm10, %v621_v42 }
 0xf6b   :  { %626 = vst.msk [vmem:[#allocation2 + $0x6] sm:$0x30] %vm625_vm11, %v621_v42  ;;  %1416 = vmatmul.mubr.f32.vlgmr.msra.gmra.mrb[12].mxu0 %v3436_v2 }
 0xf6c   :  { %2960 = vmatpush1.bf16.msra.mxu0 %v3864_v37  ;;  %1641 = vmatprep.mubr.f32.mxu0 %v3436_v2 }
 0xf6d   :  { %v978_v47 = vpop.permute.xlu0 %977  ;;  %2962 = vmatprep.subr.bf16.mxu0 %v3870_v43 }
 0xf6e   :  { %980 = vst.msk [vmem:[#allocation2 + $0x8] sm:$0xc] %vm505_vm6, %v978_v47 }
 0xf6f   :  { %981 = vst.msk [vmem:[#allocation2 + $0x2] sm:$0xc] %vm507_vm7, %v978_v47 }
 0xf70   :  { %2964 = vmatpush1.bf16.msra.mxu0 %v3872_v16 }
 0xf71   :  { %2966 = vmatprep.subr.bf16.mxu0 %v3878_v51 }
 0xf72   :  { %v3198_v19 = vpop.eup %3197 }
 0xf73   :  { %v1207_v30 = vmul.f32 %v3198_v19, %v3854_v31 }
 0xf74   :  { %2968 = vmatpush1.bf16.msra.mxu0 %v3881_v54 }
 0xf75   :  { %1209 = vrot.lane.b32.xlu0 %v1207_v30, %s3437_s3  ;;  %2970 = vmatprep.subr.bf16.mxu0 %v3885_v22 }
 0xf78   :  { %2972 = vmatpush1.bf16.msra.mxu0 %v3888_v34 }
 0xf79   :  { %2990 = vmatprep.subr.bf16.mxu0 %v3862_v29 }
 0xfe7   :  { %v1210_v31 = vpop.permute.xlu0 %1209 }
 0xfe8   :  { %1212 = vst.msk [vmem:[#allocation2 + $0x8] sm:$0xc0] %vm741_vm8, %v1210_v31 }
 0xfe9   :  { %1213 = vst.msk [vmem:[#allocation2 - $0x6] sm:$0xc0] %vm743_vm9, %v1210_v31 }
 0xfef   :  { %v1215_v63 = vld [vmem:[#allocation2 + $0x8] sm:$0xff] }
 0xff0   :  { %v1214_v58 = vld [vmem:[#allocation2] sm:$0xff] }
 0xff1   :  { %2678 = vmatmul.mubr.msk.f32.vlgmr.msra.gmra.mrb[8].mxu1 %vm280_vm5, %v1214_v58 }
 0xff2   :  { %1320 = vmatprep.mubr.f32.mxu1 %v3436_v2  ;;  %2944 = vmatpush1.bf16.msra.mxu1 %v3864_v37 }
 0xff3   :  { %2946 = vmatprep.subr.bf16.mxu1 %v3870_v43 }
 0xff5   :  { %2679 = vmatmul.mubr.msk.f32.gmra.mrb[10].mxu1 %vm280_vm5, %v1215_v63 }
 0xff6   :  { %2948 = vmatpush1.bf16.msra.mxu1 %v3872_v16  ;;  %1525 = vmatprep.mubr.f32.mxu1 %v3436_v2 }
 0xff7   :  { %2950 = vmatprep.subr.bf16.mxu1 %v3878_v51 }
 0xffa   :  { %2952 = vmatpush1.bf16.msra.mxu1 %v3881_v54 }
 0xffb   :  { %2954 = vmatprep.subr.bf16.mxu1 %v3885_v22 }
 0xffe   :  { %2956 = vmatpush1.bf16.msra.mxu1 %v3888_v34 }
 0xfff   :  { %2974 = vmatprep.subr.bf16.mxu1 %v3862_v29 }
0x103e   :  { %v1417_v59 = vpop.f32.mrb[12].mxu0 }
0x103f   :  { %v1419_v4 = vpop.f32.mrb[13].mxu0 }
0x10c4   :  { %v1316_v0 = vpop.f32.mrb[8].mxu1 }
0x10c5   :  { %v1317_v1 = vadd.f32 %v1316_v0, %v1237_v61  ;;  %v1318_v9 = vpop.f32.mrb[9].mxu1 }
0x10c6   :  { %v1319_v13 = vadd.f32 %v1318_v9, %v1241_v10 }
0x10c7   :  { %v1806_v17 = vrot.slane %v1317_v1, 6  ;;  %v1922_v18 = vrot.slane %v1317_v1, 2 }
0x10c8   :  { %v1322_v6 = vpop.f32.mrb[10].mxu1  ;;  %v1807_v21 = vrot.slane %v1319_v13, 6  ;;  %v1923_v23 = vrot.slane %v1319_v13, 2 }
0x10c9   :  { %v1323_v8 = vadd.f32 %v1322_v6, %v1237_v61  ;;  %v1324_v15 = vpop.f32.mrb[11].mxu1 }
0x10ca   :  { %v1325_v20 = vadd.f32 %v1324_v15, %v1241_v10 }
0x10cb   :  { %v1345_v25 = vrot.slane %v1323_v8, 6  ;;  %v1453_v26 = vrot.slane %v1323_v8, 2  ;;  %v3927_v38 = vsel %vm3700_vm1, %v1323_v8, %v1806_v17  ;;  %v3931_v36 = vsel %vm3700_vm1, %v1323_v8, %v1922_v18 }
0x10cc   :  { %v1346_v40 = vrot.slane %v1325_v20, 6  ;;  %v1454_v27 = vrot.slane %v1325_v20, 2  ;;  %v3935_v44 = vsel %vm3704_vm2, %v1325_v20, %v1807_v21  ;;  %v3939_v28 = vsel %vm3704_vm2, %v1325_v20, %v1923_v23 }
0x10cd   :  { %v3943_v32 = vsel %vm3700_vm1, %v1317_v1, %v1345_v25  ;;  %v3947_v33 = vsel %vm3700_vm1, %v1317_v1, %v1453_v26  ;;  %vm2435_vm1 = vcmask 39936  }
0x10ce   :  { %v1422_v35 = vadd.f32 %v1417_v59, %v3943_v32  ;;  %v3952_v12 = vsel %vm3704_vm2, %v1319_v13, %v1346_v40  ;;  %v3956_v39 = vsel %vm3704_vm2, %v1319_v13, %v1454_v27  ;;  %vm2437_vm2 = vcmask 48128  }
0x10cf   :  { %v1423_v41 = vadd.f32 %v1419_v4, %v3952_v12 }
0x10d0   :  { %v2680_v42 = vmul.f32 -1.442695, %v1422_v35 }
0x10d1   :  { %v2681_v62 = vmul.f32 -1.442695, %v1423_v41 }
0x10d2   :  { %3199 = vpow2.f32 %v2680_v42 }
0x10d3   :  { %3201 = vpow2.f32 %v2681_v62 }
0x10dc   :  { %v3200_v3 = vpop.eup %3199 }
0x10dd   :  { %v3202_v52 = vpop.eup %3201  ;;  %v1430_v7 = vadd.f32 1.0, %v3200_v3 }
0x10de   :  { %v1431_v5 = vadd.f32 1.0, %v3202_v52 }
0x10e0   :  { %3203 = vrcp.f32 %v1431_v5 }
0x10e1   :  { %3205 = vrcp.f32 %v1430_v7 }
0x10ea   :  { %v3204_v45 = vpop.eup %3203 }
0x10eb   :  { %v1436_v46 = vmul.f32 2.0, %v3204_v45  ;;  %v3206_v47 = vpop.eup %3205 }
0x10ec   :  { %v1438_v56 = vmul.f32 0.0, %v3206_v47 }
0x10ed   :  { %v2682_v11 = vadd.f32 -1.0, %v1436_v46 }
0x10ef   :  { %v1439_v49 = vmul.f32 %v3206_v47, %v2682_v11 }
0x10f1   :  { %1441 = vrot.lane.b32.xlu1 %v1439_v49, %s3437_s3 }
0x1163   :  { %v1442_v50 = vpop.permute.xlu1 %1441 }
0x1164   :  { %v1444_v53 = vadd.f32 %v1442_v50, %v1438_v56 }
0x1166   :  { %3207 = vtanh.f32 %v1444_v53  ;;  %v1555_v0 = vrot.slane %v1444_v53, 6 }
0x1170   :  { %v3208_v14 = vpop.eup %3207 }
0x1171   :  { %v1446_v55 = vmul.f32 %v3208_v14, %v3204_v45 }
0x1173   :  { %1448 = vrot.lane.b32.xlu0 %v1446_v55, %s3437_s3 }
0x11e5   :  { %v1449_v48 = vpop.permute.xlu0 %1448 }
0x11e6   :  { %1451 = vst.msk [vmem:[#allocation3] sm:$0x3] %vm384_vm3, %v1449_v48  ;;  %2683 = vmatmul.mubr.msk.f32.vlgmr.msra.gmra.mrb[12].mxu1 %vm280_vm5, %v1449_v48 }
0x11e7   :  { %1452 = vst.msk [vmem:[#allocation3 + $0xe] sm:$0x3] %vm386_vm4, %v1449_v48  ;;  %2976 = vmatpush1.bf16.msra.mxu1 %v3864_v37  ;;  %1757 = vmatprep.mubr.f32.mxu1 %v3436_v2 }
0x11e8   :  { %2978 = vmatprep.subr.bf16.mxu1 %v3870_v43 }
0x11eb   :  { %2980 = vmatpush1.bf16.msra.mxu1 %v3872_v16 }
0x11ec   :  { %2982 = vmatprep.subr.bf16.mxu1 %v3878_v51 }
0x11ef   :  { %2984 = vmatpush1.bf16.msra.mxu1 %v3881_v54 }
0x11f0   :  { %2986 = vmatprep.subr.bf16.mxu1 %v3885_v22 }
0x11f3   :  { %2988 = vmatpush1.bf16.msra.mxu1 %v3888_v34 }
0x11f4   :  { %3006 = vmatprep.subr.bf16.mxu1 %v3862_v29 }
0x12b9   :  { %v1527_v19 = vpop.f32.mrb[12].mxu1 }
0x12ba   :  { %v1534_v24 = vrot.slane %v1527_v19, 6  ;;  %v1529_v57 = vpop.f32.mrb[13].mxu1 }
0x12bb   :  { %v1535_v30 = vrot.slane %v1529_v57, 6 }
0x12bc   :  { %v1538_v31 = vadd.f32 %v1534_v24, %v3947_v33 }
0x12bd   :  { %v1539_v58 = vadd.f32 %v1535_v30, %v3956_v39 }
0x12be   :  { %v2684_v63 = vmul.f32 -1.442695, %v1538_v31 }
0x12bf   :  { %v2685_v59 = vmul.f32 -1.442695, %v1539_v58 }
0x12c0   :  { %3209 = vpow2.f32 %v2684_v63 }
0x12c1   :  { %3211 = vpow2.f32 %v2685_v59 }
0x12ca   :  { %v3210_v4 = vpop.eup %3209 }
0x12cb   :  { %v3212_v60 = vpop.eup %3211  ;;  %v1546_v61 = vadd.f32 1.0, %v3210_v4 }
0x12cc   :  { %v1547_v10 = vadd.f32 1.0, %v3212_v60 }
0x12cd   :  { %3213 = vrcp.f32 %v1546_v61 }
0x12ce   :  { %3215 = vrcp.f32 %v1547_v10 }
0x12d7   :  { %v3214_v1 = vpop.eup %3213 }
0x12d8   :  { %v3216_v9 = vpop.eup %3215  ;;  %v1557_v13 = vmul.f32 %v3214_v1, %v1555_v0 }
0x12d9   :  { %v1552_v6 = vmul.f32 2.0, %v3216_v9 }
0x12db   :  { %v2686_v8 = vadd.f32 -1.0, %v1552_v6 }
0x12dd   :  { %v1558_v15 = vmul.f32 %v3214_v1, %v2686_v8 }
0x12df   :  { %1560 = vrot.lane.b32.xlu1 %v1558_v15, %s3437_s3 }
0x1351   :  { %v1561_v17 = vpop.permute.xlu1 %1560 }
0x1352   :  { %v1563_v18 = vadd.f32 %v1561_v17, %v1557_v13 }
0x1354   :  { %3217 = vtanh.f32 %v1563_v18  ;;  %v1671_v46 = vrot.slane %v1563_v18, 6 }
0x135e   :  { %v3218_v20 = vpop.eup %3217 }
0x135f   :  { %v3976_v21 = vmul.f32 %v3218_v20, %v3216_v9 }
0x1361   :  { %v1572_v23 = vrot.slane %v3976_v21, 2 }
0x1363   :  { %1573 = vrot.lane.b32.xlu0 %v1572_v23, %s3437_s3 }
0x13d5   :  { %v1574_v25 = vpop.permute.xlu0 %1573 }
0x13d6   :  { %2687 = vmatmul.mubr.msk.f32.vlgmr.msra.gmra.mrb[14].mxu0 %vm280_vm5, %v1574_v25 }
0x13d7   :  { %2992 = vmatpush1.bf16.msra.mxu0 %v3864_v37  ;;  %1881 = vmatprep.mubr.f32.mxu0 %v3436_v2 }
0x13d8   :  { %2994 = vmatprep.subr.bf16.mxu0 %v3870_v43 }
0x13db   :  { %2996 = vmatpush1.bf16.msra.mxu0 %v3872_v16 }
0x13dc   :  { %2998 = vmatprep.subr.bf16.mxu0 %v3878_v51 }
0x13df   :  { %3000 = vmatpush1.bf16.msra.mxu0 %v3881_v54 }
0x13e0   :  { %3002 = vmatprep.subr.bf16.mxu0 %v3885_v22 }
0x13e3   :  { %3004 = vmatpush1.bf16.msra.mxu0 %v3888_v34 }
0x13e4   :  { %3022 = vmatprep.subr.bf16.mxu0 %v3862_v29 }
0x14a9   :  { %v1643_v26 = vpop.f32.mrb[14].mxu0 }
0x14aa   :  { %v1650_v40 = vrot.slane %v1643_v26, 4  ;;  %v1645_v27 = vpop.f32.mrb[15].mxu0 }
0x14ab   :  { %v1651_v35 = vrot.slane %v1645_v27, 4 }
0x14ac   :  { %v1654_v41 = vadd.f32 %v1650_v40, %v3943_v32 }
0x14ad   :  { %v1655_v42 = vadd.f32 %v1651_v35, %v3952_v12 }
0x14ae   :  { %v2688_v62 = vmul.f32 -1.442695, %v1654_v41 }
0x14af   :  { %v2689_v3 = vmul.f32 -1.442695, %v1655_v42 }
0x14b0   :  { %3219 = vpow2.f32 %v2688_v62 }
0x14b1   :  { %3221 = vpow2.f32 %v2689_v3 }
0x14ba   :  { %v3220_v52 = vpop.eup %3219 }
0x14bb   :  { %v3222_v5 = vpop.eup %3221  ;;  %v1662_v7 = vadd.f32 1.0, %v3220_v52 }
0x14bc   :  { %v1663_v45 = vadd.f32 1.0, %v3222_v5 }
0x14bd   :  { %3223 = vrcp.f32 %v1662_v7 }
0x14be   :  { %3225 = vrcp.f32 %v1663_v45 }
0x14c7   :  { %v3224_v11 = vpop.eup %3223 }
0x14c8   :  { %v3226_v47 = vpop.eup %3225  ;;  %v1673_v49 = vmul.f32 %v3224_v11, %v1671_v46 }
0x14c9   :  { %v1668_v56 = vmul.f32 2.0, %v3226_v47 }
0x14cb   :  { %v2690_v50 = vadd.f32 -1.0, %v1668_v56 }
0x14cd   :  { %v1674_v53 = vmul.f32 %v3224_v11, %v2690_v50 }
0x14cf   :  { %1676 = vrot.lane.b32.xlu1 %v1674_v53, %s3437_s3 }
0x1541   :  { %v1677_v32 = vpop.permute.xlu1 %1676 }
0x1542   :  { %v1679_v12 = vadd.f32 %v1677_v32, %v1673_v49 }
0x1544   :  { %3227 = vtanh.f32 %v1679_v12  ;;  %v1787_v1 = vrot.slane %v1679_v12, 6 }
0x154e   :  { %v3228_v14 = vpop.eup %3227 }
0x154f   :  { %v3993_v55 = vmul.f32 %v3228_v14, %v3226_v47 }
0x1551   :  { %v1688_v48 = vrot.slane %v3993_v55, 4 }
0x1553   :  { %1689 = vrot.lane.b32.xlu0 %v1688_v48, %s3437_s3 }
0x15c5   :  { %v1690_v19 = vpop.permute.xlu0 %1689 }
0x15c6   :  { %2691 = vmatmul.mubr.msk.f32.vlgmr.msra.gmra.mrb[14].mxu1 %vm280_vm5, %v1690_v19 }
0x15c7   :  { %3008 = vmatpush1.bf16.msra.mxu1 %v3864_v37  ;;  %1994 = vmatprep.mubr.f32.mxu1 %v3436_v2 }
0x15c8   :  { %3010 = vmatprep.subr.bf16.mxu1 %v3870_v43 }
0x15cb   :  { %3012 = vmatpush1.bf16.msra.mxu1 %v3872_v16 }
0x15cc   :  { %3014 = vmatprep.subr.bf16.mxu1 %v3878_v51 }
0x15cf   :  { %3016 = vmatpush1.bf16.msra.mxu1 %v3881_v54 }
0x15d0   :  { %3018 = vmatprep.subr.bf16.mxu1 %v3885_v22 }
0x15d3   :  { %3020 = vmatpush1.bf16.msra.mxu1 %v3888_v34 }
0x15d4   :  { %3038 = vmatprep.subr.bf16.mxu1 %v3862_v29 }
0x1699   :  { %v1759_v24 = vpop.f32.mrb[14].mxu1 }
0x169a   :  { %v1766_v57 = vrot.slane %v1759_v24, 2  ;;  %v1761_v30 = vpop.f32.mrb[15].mxu1 }
0x169b   :  { %v1767_v31 = vrot.slane %v1761_v30, 2 }
0x169c   :  { %v1770_v58 = vadd.f32 %v1766_v57, %v3947_v33 }
0x169d   :  { %v1771_v63 = vadd.f32 %v1767_v31, %v3956_v39 }
0x169e   :  { %v2692_v59 = vmul.f32 -1.442695, %v1770_v58 }
0x169f   :  { %v2693_v4 = vmul.f32 -1.442695, %v1771_v63 }
0x16a0   :  { %3229 = vpow2.f32 %v2692_v59 }
0x16a1   :  { %3231 = vpow2.f32 %v2693_v4 }
0x16aa   :  { %v3230_v60 = vpop.eup %3229 }
0x16ab   :  { %v3232_v61 = vpop.eup %3231  ;;  %v1778_v10 = vadd.f32 1.0, %v3230_v60 }
0x16ac   :  { %v1779_v0 = vadd.f32 1.0, %v3232_v61 }
0x16ad   :  { %3233 = vrcp.f32 %v1778_v10 }
0x16ae   :  { %3235 = vrcp.f32 %v1779_v0 }
0x16b7   :  { %v3234_v29 = vpop.eup %3233 }
0x16b8   :  { %v3236_v9 = vpop.eup %3235  ;;  %v1789_v13 = vmul.f32 %v3234_v29, %v1787_v1 }
0x16b9   :  { %v1784_v6 = vmul.f32 2.0, %v3236_v9 }
0x16bb   :  { %v2694_v8 = vadd.f32 -1.0, %v1784_v6 }
0x16bd   :  { %v1790_v15 = vmul.f32 %v3234_v29, %v2694_v8 }
0x16bf   :  { %1792 = vrot.lane.b32.xlu1 %v1790_v15, %s3437_s3 }
0x1731   :  { %v1793_v33 = vpop.permute.xlu1 %1792 }
0x1732   :  { %v1795_v39 = vadd.f32 %v1793_v33, %v1789_v13 }
0x1734   :  { %3237 = vtanh.f32 %v1795_v39  ;;  %v1905_v5 = vrot.slane %v1795_v39, 6 }
0x173e   :  { %v3238_v17 = vpop.eup %3237 }
0x173f   :  { %v4010_v18 = vmul.f32 %v3238_v17, %v3236_v9 }
0x1741   :  { %v1812_v20 = vrot.slane %v4010_v18, 6 }
0x1743   :  { %1813 = vrot.lane.b32.xlu0 %v1812_v20, %s3437_s3 }
0x17b5   :  { %v1814_v23 = vpop.permute.xlu0 %1813 }
0x17b6   :  { %2695 = vmatmul.mubr.msk.f32.vlgmr.msra.gmra.mrb[16].mxu0 %vm280_vm5, %v1814_v23 }
0x17b7   :  { %3024 = vmatpush1.bf16.msra.mxu0 %v3864_v37  ;;  %2110 = vmatprep.mubr.f32.mxu0 %v3436_v2 }
0x17b8   :  { %3026 = vmatprep.subr.bf16.mxu0 %v3870_v43 }
0x17bb   :  { %3028 = vmatpush1.bf16.msra.mxu0 %v3872_v16 }
0x17bc   :  { %3030 = vmatprep.subr.bf16.mxu0 %v3878_v51 }
0x17bf   :  { %3032 = vmatpush1.bf16.msra.mxu0 %v3881_v54 }
0x17c0   :  { %3034 = vmatprep.subr.bf16.mxu0 %v3885_v22 }
0x17c3   :  { %3036 = vmatpush1.bf16.msra.mxu0 %v3888_v34 }
0x1889   :  { %v1883_v25 = vpop.f32.mrb[16].mxu0 }
0x188a   :  { %v1888_v26 = vadd.f32 %v1883_v25, %v3927_v38  ;;  %v1885_v40 = vpop.f32.mrb[17].mxu0 }
0x188b   :  { %v1889_v27 = vadd.f32 %v1885_v40, %v3935_v44 }
0x188c   :  { %v2696_v35 = vmul.f32 -1.442695, %v1888_v26 }
0x188d   :  { %v2697_v41 = vmul.f32 -1.442695, %v1889_v27 }
0x188e   :  { %3239 = vpow2.f32 %v2696_v35 }
0x188f   :  { %3241 = vpow2.f32 %v2697_v41 }
0x1898   :  { %v3240_v42 = vpop.eup %3239 }
0x1899   :  { %v3242_v62 = vpop.eup %3241  ;;  %v1896_v3 = vadd.f32 1.0, %v3240_v42 }
0x189a   :  { %v1897_v52 = vadd.f32 1.0, %v3242_v62 }
0x189b   :  { %3243 = vrcp.f32 %v1896_v3 }
0x189c   :  { %3245 = vrcp.f32 %v1897_v52 }
0x18a5   :  { %v3244_v7 = vpop.eup %3243 }
0x18a6   :  { %v3246_v45 = vpop.eup %3245  ;;  %v1907_v46 = vmul.f32 %v3244_v7, %v1905_v5 }
0x18a7   :  { %v1902_v11 = vmul.f32 2.0, %v3246_v45 }
0x18a9   :  { %v2698_v47 = vadd.f32 -1.0, %v1902_v11 }
0x18ab   :  { %v1908_v49 = vmul.f32 %v3244_v7, %v2698_v47 }
0x18ad   :  { %1910 = vrot.lane.b32.xlu1 %v1908_v49, %s3437_s3 }
0x191f   :  { %v1911_v56 = vpop.permute.xlu1 %1910 }
0x1920   :  { %v1913_v50 = vadd.f32 %v1911_v56, %v1907_v46 }
0x1922   :  { %3247 = vtanh.f32 %v1913_v50 }
0x192c   :  { %v3248_v53 = vpop.eup %3247 }
0x192d   :  { %v1915_v32 = vmul.f32 %v3248_v53, %v3246_v45 }
0x192f   :  { %1917 = vrot.lane.b32.xlu0 %v1915_v32, %s3437_s3 }
0x19a1   :  { %v4027_v12 = vpop.permute.xlu0 %1917 }
0x19a2   :  { %2699 = vmatmul.mubr.msk.f32.vlgmr.msra.gmra.mrb[16].mxu1 %vm280_vm5, %v4027_v12 }
0x19a3   :  { %3040 = vmatpush1.bf16.msra.mxu1 %v3864_v37  ;;  %2226 = vmatprep.mubr.f32.mxu1 %v3436_v2 }
0x19a4   :  { %3042 = vmatprep.subr.bf16.mxu1 %v3870_v43 }
0x19a7   :  { %3044 = vmatpush1.bf16.msra.mxu1 %v3872_v16 }
0x19a8   :  { %3046 = vmatprep.subr.bf16.mxu1 %v3878_v51 }
0x19ab   :  { %3048 = vmatpush1.bf16.msra.mxu1 %v3881_v54 }
0x19ac   :  { %3050 = vmatprep.subr.bf16.mxu1 %v3885_v22  ;;  %v2024_v22 = vrot.slane %v1913_v50, 6 }
0x19af   :  { %3052 = vmatpush1.bf16.msra.mxu1 %v3888_v34 }
0x1a75   :  { %v1996_v14 = vpop.f32.mrb[16].mxu1 }
0x1a76   :  { %v2003_v48 = vrot.slane %v1996_v14, 6  ;;  %v1998_v19 = vpop.f32.mrb[17].mxu1 }
0x1a77   :  { %v2004_v24 = vrot.slane %v1998_v19, 6 }
0x1a78   :  { %v2007_v37 = vadd.f32 %v2003_v48, %v3931_v36 }
0x1a79   :  { %v2008_v57 = vadd.f32 %v2004_v24, %v3939_v28 }
0x1a7a   :  { %v2700_v30 = vmul.f32 -1.442695, %v2007_v37 }
0x1a7b   :  { %v2701_v43 = vmul.f32 -1.442695, %v2008_v57 }
0x1a7c   :  { %3249 = vpow2.f32 %v2700_v30 }
0x1a7d   :  { %3251 = vpow2.f32 %v2701_v43 }
0x1a86   :  { %v3250_v16 = vpop.eup %3249 }
0x1a87   :  { %v3252_v51 = vpop.eup %3251  ;;  %v2015_v31 = vadd.f32 1.0, %v3250_v16 }
0x1a88   :  { %v2016_v54 = vadd.f32 1.0, %v3252_v51 }
0x1a89   :  { %3253 = vrcp.f32 %v2015_v31 }
0x1a8a   :  { %3255 = vrcp.f32 %v2016_v54 }
0x1a93   :  { %v3254_v34 = vpop.eup %3253 }
0x1a94   :  { %v3256_v58 = vpop.eup %3255  ;;  %v2026_v63 = vmul.f32 %v3254_v34, %v2024_v22  ;;  %v2277_v22 = vld [vmem:[#allocation14 + $0x10] sm:$0xff] }
0x1a95   :  { %v2021_v59 = vmul.f32 2.0, %v3256_v58 }
0x1a97   :  { %v2702_v4 = vadd.f32 -1.0, %v2021_v59 }
0x1a99   :  { %v2027_v60 = vmul.f32 %v3254_v34, %v2702_v4 }
0x1a9b   :  { %2029 = vrot.lane.b32.xlu1 %v2027_v60, %s3437_s3  ;;  %v2279_v60 = vld [vmem:[#allocation14 + $0x20] sm:$0xff] }
0x1b0d   :  { %v2030_v61 = vpop.permute.xlu1 %2029 }
0x1b0e   :  { %v2032_v10 = vadd.f32 %v2030_v61, %v2026_v63  ;;  %v2280_v61 = vld [vmem:[#allocation14 + $0x28] sm:$0xff] }
0x1b10   :  { %3257 = vtanh.f32 %v2032_v10  ;;  %v2140_v27 = vrot.slane %v2032_v10, 6  ;;  %v3061_v10 = vpack.c.bf16 %v2280_v61, %v2279_v60  ;;  %v3449_v60 = vmov 3  }
0x1b11   :  { %v3450_v61 = vmov 4  }
0x1b1a   :  { %v3258_v0 = vpop.eup %3257 }
0x1b1b   :  { %v4042_v1 = vmul.f32 %v3258_v0, %v3256_v58  ;;  %v2278_v58 = vld [vmem:[#allocation14 + $0x18] sm:$0xff]  ;;  %v2281_v0 = vld [vmem:[#allocation14 + $0x30] sm:$0xff] }
0x1b1c   :  { %v3057_v63 = vpack.c.bf16 %v2278_v58, %v2277_v22  ;;  %v3446_v22 = vmov 0  }
0x1b1d   :  { %v2041_v29 = vrot.slane %v4042_v1, 2  ;;  %3110 = vset.pattern.permute.xlu0 %v3446_v22 }
0x1b1f   :  { %2042 = vrot.lane.b32.xlu0 %v2041_v29, %s3437_s3  ;;  %v2282_v29 = vld [vmem:[#allocation14 + $0x38] sm:$0xff] }
0x1b91   :  { %v2043_v9 = vpop.permute.xlu0 %2042 }
0x1b92   :  { %2703 = vmatmul.mubr.msk.f32.vlgmr.msra.gmra.mrb[18].mxu0 %vm280_vm5, %v2043_v9 }
0x1c65   :  { %v2112_v13 = vpop.f32.mrb[18].mxu0 }
0x1c66   :  { %v2119_v6 = vrot.slane %v2112_v13, 4  ;;  %v2114_v8 = vpop.f32.mrb[19].mxu0  ;;  %v3065_v13 = vpack.c.bf16 %v2282_v29, %v2281_v0  ;;  %v2514_v0 = vld [vmem:[%s4165_s11 + $0x8] sm:$0xff] }
0x1c67   :  { %v2120_v15 = vrot.slane %v2114_v8, 4 }
0x1c68   :  { %v2123_v33 = vadd.f32 %v2119_v6, %v3927_v38 }
0x1c69   :  { %v2124_v39 = vadd.f32 %v2120_v15, %v3935_v44 }
0x1c6a   :  { %v2704_v17 = vmul.f32 -1.442695, %v2123_v33 }
0x1c6b   :  { %v2705_v20 = vmul.f32 -1.442695, %v2124_v39  ;;  %v2711_v39 = vld [vmem:[%s4162_s8] ss:$0 sm:$0xff]  ;;  %s3438_s8 = smov 4  }
0x1c6c   :  { %3259 = vpow2.f32 %v2704_v17 }
0x1c6d   :  { %3261 = vpow2.f32 %v2705_v20 }
0x1c76   :  { %v3260_v23 = vpop.eup %3259 }
0x1c77   :  { %v3262_v25 = vpop.eup %3261  ;;  %v2131_v26 = vadd.f32 1.0, %v3260_v23 }
0x1c78   :  { %v2132_v40 = vadd.f32 1.0, %v3262_v25 }
0x1c79   :  { %3263 = vrcp.f32 %v2131_v26  ;;  %v2714_v26 = vld [vmem:[%s4163_s9] ss:$0 sm:$0xff]  ;;  %s3440_s9 = smov 2  }
0x1c7a   :  { %3265 = vrcp.f32 %v2132_v40 }
0x1c83   :  { %v3264_v35 = vpop.eup %3263 }
0x1c84   :  { %v3266_v41 = vpop.eup %3265  ;;  %v2142_v42 = vmul.f32 %v3264_v35, %v2140_v27 }
0x1c85   :  { %v2137_v62 = vmul.f32 2.0, %v3266_v41 }
0x1c87   :  { %v2706_v3 = vadd.f32 -1.0, %v2137_v62 }
0x1c89   :  { %v2143_v52 = vmul.f32 %v3264_v35, %v2706_v3  ;;  %v2715_v3 = vld [vmem:[#allocation4] ss:$0 sm:$0xff] }
0x1c8b   :  { %2145 = vrot.lane.b32.xlu1 %v2143_v52, %s3437_s3 }
0x1cfd   :  { %v2146_v38 = vpop.permute.xlu1 %2145 }
0x1cfe   :  { %v2148_v44 = vadd.f32 %v2146_v38, %v2142_v42 }
0x1d00   :  { %3267 = vtanh.f32 %v2148_v44  ;;  %v2256_v57 = vrot.slane %v2148_v44, 6 }
0x1d0a   :  { %v3268_v5 = vpop.eup %3267 }
0x1d0b   :  { %v2150_v7 = vmul.f32 %v3268_v5, %v3266_v41 }
0x1d0d   :  { %v2157_v45 = vrot.slane %v2150_v7, 4 }
0x1d0f   :  { %2158 = vrot.lane.b32.xlu0 %v2157_v45, %s3437_s3 }
0x1d13   :  { %1567 = vrot.lane.b32.xlu0 %v3976_v21, %s3437_s3 }
0x1d17   :  { %1799 = vrot.lane.b32.xlu0 %v4010_v18, %s3437_s3 }
0x1d1b   :  { %2152 = vrot.lane.b32.xlu0 %v2150_v7, %s3437_s3 }
0x1d81   :  { %v2159_v46 = vpop.permute.xlu0 %2158 }
0x1d82   :  { %2707 = vmatmul.mubr.msk.f32.vlgmr.msra.gmra.mrb[18].mxu1 %vm280_vm5, %v2159_v46 }
0x1d85   :  { %v1568_v11 = vpop.permute.xlu0 %1567 }
0x1d86   :  { %1570 = vst.msk [vmem:[#allocation3] sm:$0xc] %vm505_vm6, %v1568_v11 }
0x1d87   :  { %1571 = vst.msk [vmem:[#allocation3 + $0xa] sm:$0xc] %vm507_vm7, %v1568_v11 }
0x1d89   :  { %v1800_v47 = vpop.permute.xlu0 %1799 }
0x1d8a   :  { %1802 = vst.msk [vmem:[#allocation3] sm:$0xc0] %vm741_vm8, %v1800_v47 }
0x1d8b   :  { %1803 = vst.msk [vmem:[#allocation3 + $0x2] sm:$0xc0] %vm743_vm9, %v1800_v47 }
0x1d8c   :  { %1920 = vst.msk [vmem:[#allocation3 + $0x8] sm:$0x3] %vm384_vm3, %v4027_v12 }
0x1d8d   :  { %1921 = vst.msk [vmem:[#allocation3 + $0x6] sm:$0x3] %vm386_vm4, %v4027_v12  ;;  %v2153_v21 = vpop.permute.xlu0 %2152  ;;  %vm2439_vm4 = vcmask 56320  }
0x1d8e   :  { %2155 = vst.msk [vmem:[#allocation3 + $0x8] sm:$0x30] %vm623_vm10, %v2153_v21 }
0x1d8f   :  { %2156 = vst.msk [vmem:[#allocation3 - $0x2] sm:$0x30] %vm625_vm11, %v2153_v21 }
0x1e55   :  { %v2228_v18 = vpop.f32.mrb[18].mxu1 }
0x1e56   :  { %v2235_v49 = vrot.slane %v2228_v18, 2  ;;  %v2230_v56 = vpop.f32.mrb[19].mxu1 }
0x1e57   :  { %v2236_v50 = vrot.slane %v2230_v56, 2 }
0x1e58   :  { %v2239_v53 = vadd.f32 %v2235_v49, %v3931_v36  ;;  %v2275_v36 = vld [vmem:[#allocation14] sm:$0xff] }
0x1e59   :  { %v2240_v32 = vadd.f32 %v2236_v50, %v3939_v28  ;;  %v2276_v28 = vld [vmem:[#allocation14 + $0x8] sm:$0xff] }
0x1e5a   :  { %v2708_v14 = vmul.f32 -1.442695, %v2239_v53  ;;  %v3053_v34 = vpack.c.bf16 %v2276_v28, %v2275_v36  ;;  %v3445_v28 = vmov 1  }
0x1e5b   :  { %v2709_v48 = vmul.f32 -1.442695, %v2240_v32  ;;  %3111 = vset.pattern.permute.xlu1 %v3445_v28 }
0x1e5c   :  { %3269 = vpow2.f32 %v2708_v14  ;;  %3054 = vmatprep.subr.bf16.mxu0 %v3053_v34 }
0x1e5d   :  { %3271 = vpow2.f32 %v2709_v48  ;;  %3056 = vmatpush3.bf16.msra.mxu0 %v3053_v34 }
0x1e5e   :  { %3058 = vmatprep.subr.bf16.mxu0 %v3057_v63 }
0x1e61   :  { %3060 = vmatpush3.bf16.msra.mxu0 %v3057_v63 }
0x1e62   :  { %3062 = vmatprep.subr.bf16.mxu0 %v3061_v10 }
0x1e65   :  { %3064 = vmatpush3.bf16.msra.mxu0 %v3061_v10  ;;  %v2513_v10 = vld [vmem:[%s4165_s11] sm:$0xff] }
0x1e66   :  { %v3270_v19 = vpop.eup %3269  ;;  %3066 = vmatprep.subr.bf16.mxu0 %v3065_v13  ;;  %v3070_v29 = vpack.c.bf16 %v2514_v0, %v2513_v10 }
0x1e67   :  { %v3272_v24 = vpop.eup %3271  ;;  %v2247_v12 = vadd.f32 1.0, %v3270_v19 }
0x1e68   :  { %v2248_v37 = vadd.f32 1.0, %v3272_v24 }
0x1e69   :  { %3273 = vrcp.f32 %v2247_v12  ;;  %3068 = vmatpush3.bf16.msra.mxu0 %v3065_v13  ;;  %v3452_v13 = vmov 5  }
0x1e6a   :  { %3275 = vrcp.f32 %v2248_v37 }
0x1e73   :  { %v3274_v30 = vpop.eup %3273 }
0x1e74   :  { %v3276_v43 = vpop.eup %3275  ;;  %v2258_v16 = vmul.f32 %v3274_v30, %v2256_v57 }
0x1e75   :  { %v2253_v51 = vmul.f32 2.0, %v3276_v43 }
0x1e77   :  { %v2710_v31 = vadd.f32 -1.0, %v2253_v51 }
0x1e79   :  { %v2259_v54 = vmul.f32 %v3274_v30, %v2710_v31 }
0x1e7b   :  { %2261 = vrot.lane.b32.xlu1 %v2259_v54, %s3437_s3 }
0x1e7f   :  { %1683 = vrot.lane.b32.xlu1 %v3993_v55, %s3437_s3 }
0x1e83   :  { %2036 = vrot.lane.b32.xlu1 %v4042_v1, %s3437_s3 }
0x1eed   :  { %v2262_v59 = vpop.permute.xlu1 %2261 }
0x1eee   :  { %v2264_v4 = vadd.f32 %v2262_v59, %v2258_v16  ;;  %v3447_v59 = vmov 2  }
0x1ef0   :  { %3277 = vtanh.f32 %v2264_v4  ;;  %v3448_v4 = vmov 7  }
0x1ef1   :  { %v1684_v9 = vpop.permute.xlu1 %1683 }
0x1ef2   :  { %1686 = vst.msk [vmem:[#allocation3] sm:$0x30] %vm623_vm10, %v1684_v9 }
0x1ef3   :  { %1687 = vst.msk [vmem:[#allocation3 + $0x6] sm:$0x30] %vm625_vm11, %v1684_v9  ;;  %v3451_v9 = vmov 0.0|0.0  }
0x1ef4   :  { %3069 = vmatprep.subr.bf16.mxu1 %v3451_v9 }
0x1ef5   :  { %v2037_v55 = vpop.permute.xlu1 %2036  ;;  %3071 = vmatpush3.bf16.msra.mxu1 %v3070_v29 }
0x1ef6   :  { %2039 = vst.msk [vmem:[#allocation3 + $0x8] sm:$0xc] %vm505_vm6, %v2037_v55  ;;  %vm2441_vm6 = vcmask 58368   ;;  %3072 = vmatprep.subr.bf16.mxu1 %v3451_v9 }
0x1ef7   :  { %2040 = vst.msk [vmem:[#allocation3 + $0x2] sm:$0xc] %vm507_vm7, %v2037_v55  ;;  %v2515_v55 = vld [vmem:[%s4165_s11 + $0x10] sm:$0xff]  ;;  %vm3454_vm7 = vmmov 0  }
0x1ef8   :  { %2774 = vmatprep.mubr.msk.f32.mxu1 %vm3454_vm7, %v3436_v2 }
0x1efa   :  { %v3278_v1 = vpop.eup %3277 }
0x1efb   :  { %v2266_v6 = vmul.f32 %v3278_v1, %v3276_v43  ;;  %v2516_v1 = vld [vmem:[%s4165_s11 + $0x18] sm:$0xff] }
0x1efd   :  { %2268 = vrot.lane.b32.xlu1 %v2266_v6, %s3437_s3  ;;  %v3073_v6 = vpack.c.bf16 %v2516_v1, %v2515_v55 }
0x1eff   :  { %3074 = vmatpush3.bf16.msra.mxu1 %v3073_v6 }
0x1f00   :  { %3075 = vmatprep.subr.bf16.mxu1 %v3451_v9 }
0x1f6f   :  { %v2269_v8 = vpop.permute.xlu1 %2268 }
0x1f70   :  { %2271 = vst.msk [vmem:[#allocation3 + $0x8] sm:$0xc0] %vm741_vm8, %v2269_v8 }
0x1f71   :  { %2272 = vst.msk [vmem:[#allocation3 - $0x6] sm:$0xc0] %vm743_vm9, %v2269_v8  ;;  %v3453_v8 = vmov 6  }
0x1f77   :  { %v4083_v33 = vld [vmem:[#allocation3 + $0x8] sm:$0xff] }
0x1f78   :  { %v4081_v15 = vld [vmem:[#allocation3] sm:$0xff] }
0x1f79   :  { %2755 = vmatprep.mubr.msk.f32.mxu0 %vm280_vm5, %v4081_v15 }
0x1f7a   :  { %2756 = vmatmul.mubr.msk.f32.vlgmr.msra.gmra.mrb[20].mxu0 %vm280_vm5, %v4083_v33 }
0x204d   :  { %v2757_v17 = vpop.f32.mrb[20].mxu0 }
0x204e   :  { %v2368_v20 = vadd.f32 %v2757_v17, %v2711_v39  ;;  %v2362_v23 = vpop.f32.mrb[21].mxu0  ;;  %v2518_v17 = vld [vmem:[%s4165_s11 + $0x28] sm:$0xff] }
0x204f   :  { %v2363_v25 = vadd.f32 %v2711_v39, %v2362_v23  ;;  %v2517_v39 = vld [vmem:[%s4165_s11 + $0x20] sm:$0xff]  ;;  %v2519_v23 = vld [vmem:[%s4165_s11 + $0x30] sm:$0xff] }
0x2050   :  { %3279 = vtanh.f32 %v2368_v20  ;;  %v3076_v20 = vpack.c.bf16 %v2518_v17, %v2517_v39 }
0x2051   :  { %3281 = vtanh.f32 %v2363_v25  ;;  %v2520_v25 = vld [vmem:[%s4165_s11 + $0x38] sm:$0xff] }
0x2052   :  { %3077 = vmatpush3.bf16.msra.mxu1 %v3076_v20 }
0x2053   :  { %3078 = vmatprep.subr.bf16.mxu1 %v3451_v9 }
0x205a   :  { %v3280_v40 = vpop.eup %3279 }
0x205b   :  { %v3282_v27 = vpop.eup %3281  ;;  %v2381_v35 = vmul.f32 %v3280_v40, %v2714_v26 }
0x205c   :  { %v2380_v41 = vmul.f32 %v3282_v27, %v2714_v26  ;;  %v3079_v26 = vpack.c.bf16 %v2520_v25, %v2519_v23 }
0x205d   :  { %v2386_v42 = vsel %vm2382_vm12, %v2381_v35, 0.0 }
0x205e   :  { %2387 = vadd.xlane.f32.xlu1 %v2386_v42  ;;  %v2383_v62 = vsel %vm2382_vm12, %v2380_v41, 0.0  ;;  %3080 = vmatpush3.bf16.msra.mxu1 %v3079_v26  ;;  %v2463_v42 = vrot.slane %v4081_v15, 2 }
0x205f   :  { %2384 = vadd.xlane.f32.xlu0 %v2383_v62 }
0x20eb   :  { %v2388_v52 = vpop.xlane.xlu1 %2387 }
0x20ec   :  { %v2397_v38 = vadd.f32 %v2715_v3, %v2388_v52  ;;  %v2385_v44 = vpop.xlane.xlu0 %2384 }
0x20ed   :  { %v2396_v5 = vadd.f32 %v2715_v3, %v2385_v44 }
0x20ee   :  { %2412 = vrot.lane.b32.xlu1 %v2397_v38, %s3438_s8  ;;  %v2415_v7 = vrot.slane %v2397_v38, 2  ;;  %v2419_v11 = vrot.slane %v2397_v38, 4  ;;  %v2423_v21 = vrot.slane %v2397_v38, 6  ;;  %v2471_v38 = vrot.slane %v4081_v15, 4  ;;  %s3455_s8 = smov [#allocation15]  }
0x20ef   :  { %v2403_v45 = vrot.slane %v2396_v5, 4  ;;  %v2399_v46 = vrot.slane %v2396_v5, 2  ;;  %v2407_v47 = vrot.slane %v2396_v5, 6 }
0x20f0   :  { %2416 = vrot.lane.b32.xlu0 %v2415_v7, %s3439_s5  ;;  %s2632_s5 = sshll.u32 %s3455_s8, 4  ;;  %s2633_s5 = int_to_ptr.vmem [resolvable:$true] %s2632_s5 }
0x20f1   :  { %p3402_p13 = scmp.lt.s32.totalorder %s2633_s5, %s2633_s5 }
0x20f2   :  { %2404 = vrot.lane.b32.xlu1 %v2403_v45, %s3440_s9  ;;  %s3397_s9 = scalar_lea.vmem %s2633_s5, 32 }
0x20f3   :  { %p3398_p12 = scmp.ne.s32.totalorder %s2633_s5, %s3397_s9  ;;  %p3403_p0 = scmp.lt.s32.totalorder %s3397_s9, %s3397_s9 }
0x20f4   :  { %2400 = vrot.lane.b32.xlu0 %v2399_v46, %s3441_s28 }
0x20f5   :  { %p3404_p1 = por %p3403_p0, %p3402_p13 }
0x20f6   :  { %2420 = vrot.lane.b32.xlu1 %v2419_v11, %s3442_s0 }
0x20f7   :  { %p3405_p2 = pnand %p3404_p1, %p3398_p12 }
0x20f8   :  { %2408 = vrot.lane.b32.xlu0 %v2407_v47, %s3443_s17  ;;  %v2493_v47 = vrot.slane %v4083_v33, 2 }
0x20fc   :  { %2424 = vrot.lane.b32.xlu0 %v2423_v21, %s3444_s2 }
0x2160   :  { %v2413_v18 = vpop.permute.xlu1 %2412 }
0x2162   :  { %v2417_v49 = vpop.permute.xlu0 %2416 }
0x2164   :  { %v2405_v50 = vpop.permute.xlu1 %2404 }
0x2166   :  { %v2401_v56 = vpop.permute.xlu0 %2400 }
0x2167   :  { %v2428_v53 = vsel %vm2427_vm13, %v2396_v5, %v2401_v56  ;;  %v2479_v5 = vrot.slane %v4081_v15, 6 }
0x2168   :  { %v2430_v32 = vsel %vm2429_vm14, %v2428_v53, %v2405_v50  ;;  %v2421_v24 = vpop.permute.xlu1 %2420 }
0x216a   :  { %v2409_v14 = vpop.permute.xlu0 %2408 }
0x216b   :  { %v2432_v48 = vsel %vm2431_vm15, %v2430_v32, %v2409_v14  ;;  %v2509_v14 = vrot.slane %v4083_v33, 6 }
0x216c   :  { %v2434_v19 = vsel %vm2433_vm0, %v2432_v48, %v2413_v18 }
0x216d   :  { %v2436_v12 = vsel %vm2435_vm1, %v2434_v19, %v2417_v49  ;;  %v2501_v49 = vrot.slane %v4083_v33, 4 }
0x216e   :  { %v2425_v37 = vpop.permute.xlu0 %2424  ;;  %v2438_v57 = vsel %vm2437_vm2, %v2436_v12, %v2421_v24  ;;  %v2716_v12 = vld [vmem:[%s4166_s12] ss:$0 sm:$0xff] }
0x216f   :  { %v2440_v30 = vsel %vm2439_vm4, %v2438_v57, %v2425_v37 }
0x2170   :  { %v2442_v43 = vsel %vm2441_vm6, %v2440_v30, -inf }
0x2171   :  { %2443 = vmax.xlane.f32.xlu1 %v2442_v43  ;;  %v2718_v43 = vld [vmem:[%s4167_s13] ss:$0 sm:$0xff] }
0x21fe   :  { %v2444_v16 = vpop.xlane.xlu1 %2443 }
0x21ff   :  { %v2445_v51 = vsub.f32 %v2440_v30, %v2444_v16 }
0x2201   :  { %v2446_v31 = vmul.f32 1.442695, %v2445_v51 }
0x2203   :  { %3283 = vpow2.f32 %v2446_v31 }
0x220d   :  { %v3284_v54 = vpop.eup %3283 }
0x220e   :  { %v2448_v36 = vsel %vm2441_vm6, %v3284_v54, 0.0 }
0x220f   :  { %2449 = vadd.xlane.f32.xlu0 %v2448_v36 }
0x229c   :  { %v2450_v34 = vpop.xlane.xlu0 %2449 }
0x229d   :  { %3285 = vrcp.f32 %v2450_v34 }
0x22a7   :  { %v3286_v58 = vpop.eup %3285 }
0x22a8   :  { %v2452_v63 = vmul.f32 %v3286_v58, %v3284_v54 }
0x22aa   :  { %2623 = vst.msk [vmem:[#allocation15] sm:$0x3] %vm2441_vm6, %v2452_v63  ;;  %2460 = vperm.xlu1 %3111, %v2452_v63   ;;  %2455 = vperm.xlu0 %3110, %v2452_v63  }
0x22ae   :  { %3112 = vset.pattern.permute.xlu1 %v3447_v59  ;;  %3118 = vset.pattern.permute.xlu0 %v3448_v4 }
0x22af   :  { %2468 = vperm.xlu1 %3112, %v2452_v63  }
0x22b3   :  { %3113 = vset.pattern.permute.xlu1 %v3449_v60 }
0x22b4   :  { %2476 = vperm.xlu1 %3113, %v2452_v63  }
0x22b8   :  { %3114 = vset.pattern.permute.xlu1 %v3450_v61 }
0x22b9   :  { %2484 = vperm.xlu1 %3114, %v2452_v63  }
0x22bd   :  { %3115 = vset.pattern.permute.xlu1 %v3452_v13 }
0x22be   :  { %2490 = vperm.xlu1 %3115, %v2452_v63  }
0x22c2   :  { %3116 = vset.pattern.permute.xlu1 %v3453_v8 }
0x22c3   :  { %2498 = vperm.xlu1 %3116, %v2452_v63  }
0x22c7   :  { %3117 = vset.pattern.permute.xlu1 %v3448_v4 }
0x22c8   :  { %2506 = vperm.xlu1 %3117, %v2452_v63  }
0x2329   :  { %v2461_v40 = vpop.permute.xlu1 %2460  ;;  %v2456_v41 = vpop.permute.xlu0 %2455 }
0x232a   :  { %v2465_v3 = vmul.f32 %v2463_v42, %v2461_v40  ;;  %v2458_v52 = vmul.f32 %v2456_v41, %v4081_v15 }
0x232c   :  { %v2466_v45 = vadd.f32 %v2465_v3, %v2458_v52 }
0x232e   :  { %v2469_v27 = vpop.permute.xlu1 %2468 }
0x232f   :  { %v2473_v44 = vmul.f32 %v2471_v38, %v2469_v27 }
0x2331   :  { %v2474_v11 = vadd.f32 %v2473_v44, %v2466_v45 }
0x2333   :  { %v2477_v35 = vpop.permute.xlu1 %2476 }
0x2334   :  { %v2481_v46 = vmul.f32 %v2479_v5, %v2477_v35 }
0x2336   :  { %v2482_v21 = vadd.f32 %v2481_v46, %v2474_v11 }
0x2338   :  { %v2485_v62 = vpop.permute.xlu1 %2484 }
0x2339   :  { %v2487_v2 = vmul.f32 %v2485_v62, %v4083_v33 }
0x233b   :  { %v2488_v50 = vadd.f32 %v2487_v2, %v2482_v21 }
0x233d   :  { %v2491_v7 = vpop.permute.xlu1 %2490 }
0x233e   :  { %v2495_v18 = vmul.f32 %v2493_v47, %v2491_v7 }
0x2340   :  { %v2496_v32 = vadd.f32 %v2495_v18, %v2488_v50 }
0x2342   :  { %v2499_v56 = vpop.permute.xlu1 %2498 }
0x2343   :  { %v2503_v53 = vmul.f32 %v2501_v49, %v2499_v56 }
0x2345   :  { %v2504_v15 = vadd.f32 %v2503_v53, %v2496_v32 }
0x2347   :  { %v2507_v48 = vpop.permute.xlu1 %2506 }
0x2348   :  { %v2511_v19 = vmul.f32 %v2509_v14, %v2507_v48 }
0x234a   :  { %v2512_v24 = vadd.f32 %v2511_v19, %v2504_v15 }
0x234c   :  { %2775 = vmatmul.mubr.msk.f32.vlgmr.msra.gmra.mrb[20].mxu1 %vm280_vm5, %v2512_v24 }
0x241f   :  { %v2597_v37 = vpop.f32.mrb[20].mxu1 }
0x2420   :  { %v2598_v57 = vadd.f32 %v2716_v12, %v2597_v37  ;;  %v2776_v30 = vpop.f32.mrb[21].mxu1 }
0x2422   :  { %v2601_v16 = vmax.f32 %v2598_v57, 0.0 }
0x2424   :  { %v2609_v51 = vmul.f32 %v2718_v43, %v2601_v16 }
0x2426   :  { %v2610_v33 = vsel %vm384_vm3, %v2609_v51, 0.0 }
0x2427   :  { %2611 = vadd.xlane.f32.xlu1 %v2610_v33 }
0x2428   :  { %3408 = shalt.err (!%p3405_p2)
}
0x2429   :  { %s3409_s0 = scalar_lea.hbm %s4169_s16, 32 }
0x242a   :  { %p3410_p3 = scmp.ne.s32.totalorder %s4169_s16, %s3409_s0  ;;  %p3413_p4 = scmp.lt.u32.totalorder %s3409_s0, %s4169_s16 }
0x242c   :  { %p3415_p5 = pnand %p3413_p4, %p3410_p3 }
0x242e   :  { %3418 = shalt.err (!%p3415_p5)
}
0x242f   :  { %2635 = dma.vmem_to_hbm [thread:$0]  %s2633_s5, 32, %s4169_s16, [#allocation8]   ;;  %v2719_v31 = vld [vmem:[#allocation5] ss:$0 sm:$0xff]  ;;  %vm2621_vm3 = vcmask 1024  }
0x24b4   :  { %v2612_v54 = vpop.xlane.xlu1 %2611 }
0x24b5   :  { %v2620_v36 = vadd.f32 %v2719_v31, %v2612_v54 }
0x24b7   :  { %2622 = vst.msk [vmem:[%s4168_s15] sm:$0x3] %vm2621_vm3, %v2620_v36 }
0x24b8   :  { %3425 = dma.done.wait [#allocation8], 32  }
0x24b9   :  { %3426 = vsyncadd [#allocation8], 4294967264 }
0x24ba   :  { %2641 = vsyncpa [#allocation7], 1 }
0x24bb   :  { %2642 = vsyncpa [#allocation10], 1 }
0x24bc   :  { %2643 = vsyncpa [#allocation13], 1 }
0x24bd   :  { %2644 = vsyncpa [#allocation8], 1 }

</bundles_post_ra>
